<compile_context>
chip_gen: v6e
topology: v6e:2x2x1
jax: 0.10.0
libtpu: 0.0.40
codegen_flags: <defaults>
</compile_context>

<pallas_src>
import functools
import math

import jax
import jax.numpy as jnp
from jax.experimental import pallas as pl
from jax.experimental.pallas import tpu as pltpu


# ---------------------------------------------------------------------------
# Small trace-time helpers (pure Python)
# ---------------------------------------------------------------------------
def _bilinear_pairs(n):
    """For a 2x bilinear upsample (align_corners=False, src clamped at 0):
    out[o] = w0 * in[i0] + w1 * in[i1].  Returns [(i0, i1, w0, w1)] * 2n."""
    pairs = []
    for o in range(2 * n):
        src = max((o + 0.5) / 2.0 - 0.5, 0.0)
        i0 = int(math.floor(src))
        i1 = min(i0 + 1, n - 1)
        f = src - i0
        pairs.append((i0, i1, 1.0 - f, f))
    return pairs


def _width_upsample_pad_matrix(w):
    """(w, 2w+2) matrix: right-multiplying a row of width w produces the
    2x-bilinear-upsampled row with one zero column of conv padding on each side."""
    mat = [[0.0] * (2 * w + 2) for _ in range(w)]
    for o, (i0, i1, w0, w1) in enumerate(_bilinear_pairs(w)):
        mat[i0][o + 1] += w0
        mat[i1][o + 1] += w1
    return jnp.array(mat, dtype=jnp.float32)


# ---------------------------------------------------------------------------
# Fused Pallas kernel: one image per grid step.
# ---------------------------------------------------------------------------
def _upconv_kernel(x_ref, y_ref, uw_ref, w1_ref, w2_ref, pp_ref, o_ref,
                   h0, h1, *, cx, cy, cout, h, w):
    """
    x_ref : (1, cx*h, w)             bf16  low-res input, rows = (channel, row)
    y_ref : (1, cy, 2h, 2w)          bf16  skip connection
    uw_ref: (w, 2w+2)                bf16  width-upsample (+ W zero pad) matrix
    w1_ref: (cout, 9*(cx+cy))        bf16  conv1 weights, cols ordered [tap, chan]
    w2_ref: (cout, 9*cout)           bf16  conv2 weights
    pp_ref: (cout, 6)                f32   columns: b1, s1, t1, b2, s2, t2
    o_ref : (1, cout, 2h*(2w+2))     f32   conv2 output, padded-width row layout
    h0    : VMEM (cx+cy, (2h+2)*(2w+2)+2) f32  zero-padded conv1 input (rows flat)
    h1    : VMEM (cout,  (2h+2)*(2w+2)+2) f32  zero-padded conv2 input (rows flat)
    """
    f32 = jnp.float32
    c1 = cx + cy
    h2, w2 = 2 * h, 2 * w
    wp = w2 + 2                         # padded row width
    lw = h2 * wp                        # length of "padded-width" output rows
    tap_offs = [dy * wp + dx for dy in range(3) for dx in range(3)]

    # ---- bilinear 2x upsample of x (align_corners=False), fully in VMEM ----
    # Width (+ left/right zero pad): one MXU matmul for all channels/rows.
    xw = jnp.dot(x_ref[0], uw_ref[...], preferred_element_type=f32)   # (cx*h, wp)
    # Height: out[2i] = .75*row[i] + .25*row[i-1]; out[2i+1] = .75*row[i] + .25*row[i+1]
    # (edge rows clamped).  Hoisted per channel into "even"/"odd" row banks.
    xe, xo = [], []
    for c in range(cx):
        xc = xw[c * h:(c + 1) * h, :]                                  # (h, wp)
        xc_up = jnp.concatenate([xc[:1], xc[:-1]], axis=0)             # row i-1
        xc_dn = jnp.concatenate([xc[1:], xc[-1:]], axis=0)             # row i+1
        xe.append(0.75 * xc + 0.25 * xc_up)
        xo.append(0.75 * xc + 0.25 * xc_dn)

    # ---- build conv1's zero-padded input in VMEM (no HBM concat / pad) -----
    # Layout: h0[c, r*wp + s] == padded_input[c, r, s]; channels on sublanes,
    # padded rows flattened along lanes.
    h0[...] = jnp.zeros_like(h0)
    zc = jnp.zeros((cy, 1), f32)
    for r in range(h2):                                   # static unroll
        bank = xe if r % 2 == 0 else xo
        i = r // 2
        x_rows = [b[i:i + 1, :] for b in bank]                          # cx x (1, wp)
        y_row = jnp.concatenate([zc, y_ref[0, :, r, :].astype(f32), zc], axis=1)
        slab = jnp.concatenate(x_rows + [y_row], axis=0)                # (c1, wp)
        h0[:, (r + 1) * wp:(r + 2) * wp] = slab

    # Lanes whose column index (mod wp) falls in the 2 wrap-around columns per
    # row are invalid; zeroing them makes them the next conv's zero padding.
    lane = jax.lax.broadcasted_iota(jnp.int32, (cout, lw), 1)
    valid = (lane % wp) < w2

    # ---- conv1 (3x3) + bias + ReLU + folded eval-mode BN --------------------
    h0v = h0[...].astype(jnp.bfloat16)
    p1 = jnp.concatenate([h0v[:, t:t + lw] for t in tap_offs], axis=0)  # (9*c1, lw)
    a1 = jnp.dot(w1_ref[...], p1, preferred_element_type=f32)           # (cout, lw)
    z1 = jnp.maximum(a1 + pp_ref[:, 0:1], 0.0) * pp_ref[:, 1:2] + pp_ref[:, 2:3]
    z1 = jnp.where(valid, z1, 0.0)

    h1[...] = jnp.zeros_like(h1)
    h1[:, wp + 1:wp + 1 + lw] = z1           # interior of conv2's padded input

    # ---- conv2 (3x3) + bias + ReLU + folded eval-mode BN --------------------
    h1v = h1[...].astype(jnp.bfloat16)
    p2 = jnp.concatenate([h1v[:, t:t + lw] for t in tap_offs], axis=0)  # (9*cout, lw)
    a2 = jnp.dot(w2_ref[...], p2, preferred_element_type=f32)
    z2 = jnp.maximum(a2 + pp_ref[:, 3:4], 0.0) * pp_ref[:, 4:5] + pp_ref[:, 5:6]

    # Lane-dense store; wrap columns are sliced off in the wrapper.
    o_ref[0] = z2.astype(o_ref.dtype)


# ---------------------------------------------------------------------------
# Wrapper: one pallas_call for the whole UpConv forward (NCHW in / NCHW out).
# ---------------------------------------------------------------------------
def upconv_pallas(x_nchw, y_nchw, kp):
    n, cx, h, w = x_nchw.shape
    _, cy, h2, w2 = y_nchw.shape
    cout = kp["w1"].shape[0]
    wp = w2 + 2
    lw = h2 * wp
    lpad = (h2 + 2) * wp + 2            # +2: last-row tap slices read past the end

    kernel = functools.partial(_upconv_kernel, cx=cx, cy=cy, cout=cout, h=h, w=w)

    out_flat = pl.pallas_call(
        kernel,
        out_shape=jax.ShapeDtypeStruct((n, cout, lw), jnp.float32),
        grid=(n,),
        in_specs=[
            pl.BlockSpec((1, cx * h, w), lambda i: (i, 0, 0)),
            pl.BlockSpec((1, cy, h2, w2), lambda i: (i, 0, 0, 0)),
            pl.BlockSpec((w, wp), lambda i: (0, 0)),
            pl.BlockSpec(kp["w1"].shape, lambda i: (0, 0)),
            pl.BlockSpec(kp["w2"].shape, lambda i: (0, 0)),
            pl.BlockSpec(kp["pp"].shape, lambda i: (0, 0)),
        ],
        out_specs=pl.BlockSpec((1, cout, lw), lambda i: (i, 0, 0)),
        scratch_shapes=[
            pltpu.VMEM((cx + cy, lpad), jnp.float32),
            pltpu.VMEM((cout, lpad), jnp.float32),
        ],
        compiler_params=pltpu.CompilerParams(
            dimension_semantics=("parallel",)),
    )(
        x_nchw.reshape(n, cx * h, w).astype(jnp.bfloat16),
        y_nchw.astype(jnp.bfloat16),
        kp["uw"], kp["w1"], kp["w2"], kp["pp"],
    )
    # Padded-width rows -> NCHW (pure layout plumbing, tiny).
    return out_flat.reshape(n, cout, h2, wp)[:, :, :, :w2]


# ---------------------------------------------------------------------------
# Deterministic parameter construction (eval-mode BN folded to scale/shift).
# ---------------------------------------------------------------------------
def init_params(key, cx, cy, cout, eps=1e-5):
    c1 = cx + cy
    k1, k2 = jax.random.split(key, 2)

    def conv_bn(k, cin, co):
        kk = jax.random.split(k, 6)
        wgt = jax.random.normal(kk[0], (co, cin, 3, 3), jnp.float32) * 0.1  # OIHW
        b = jax.random.normal(kk[1], (co,), jnp.float32) * 0.1
        gamma = 1.0 + 0.1 * jax.random.normal(kk[2], (co,), jnp.float32)
        beta = 0.1 * jax.random.normal(kk[3], (co,), jnp.float32)
        mean = 0.1 * jax.random.normal(kk[4], (co,), jnp.float32)
        var = 0.5 + jax.random.uniform(kk[5], (co,), jnp.float32)
        scale = gamma / jnp.sqrt(var + eps)
        shift = beta - mean * scale
        return wgt, b, scale, shift

    w1, b1, s1, t1 = conv_bn(k1, c1, cout)
    w2, b2, s2, t2 = conv_bn(k2, cout, cout)

    # Reference params (bf16-rounded weights so the check isolates real bugs).
    rp = dict(w1=w1.astype(jnp.bfloat16).astype(jnp.float32), b1=b1, s1=s1, t1=t1,
              w2=w2.astype(jnp.bfloat16).astype(jnp.float32), b2=b2, s2=s2, t2=t2)

    # Kernel params: OIHW -> (O, 3, 3, I) -> (O, 9*I), columns = [tap, channel].
    w1m = jnp.transpose(w1, (0, 2, 3, 1)).reshape(cout, 9 * c1).astype(jnp.bfloat16)
    w2m = jnp.transpose(w2, (0, 2, 3, 1)).reshape(cout, 9 * cout).astype(jnp.bfloat16)
    pp = jnp.stack([b1, s1, t1, b2, s2, t2], axis=1)                    # (cout, 6)
    kp = dict(w1=w1m, w2=w2m, pp=pp)
    return kp, rp


# ---------------------------------------------------------------------------
# Pure-JAX reference (mirrors the kernel's bf16 rounding points for a tight check)
# ---------------------------------------------------------------------------
def _upsample_bilinear_2x_ref(x):
    n, c, h, w = x.shape

    def coords(m):
        src = jnp.maximum((jnp.arange(2 * m, dtype=jnp.float32) + 0.5) / 2.0 - 0.5, 0.0)
        i0 = jnp.floor(src).astype(jnp.int32)
        i1 = jnp.minimum(i0 + 1, m - 1)
        f = src - i0.astype(jnp.float32)
        return i0, i1, f

    i0, i1, fh = coords(h)
    xh = (x[:, :, i0, :] * (1.0 - fh)[None, None, :, None]
          + x[:, :, i1, :] * fh[None, None, :, None])
    j0, j1, fw = coords(w)
    return xh[:, :, :, j0] * (1.0 - fw) + xh[:, :, :, j1] * fw


def upconv_reference(x, y, rp):
    f32, bf = jnp.float32, jnp.bfloat16
    xb = x.astype(bf).astype(f32)
    yb = y.astype(bf).astype(f32)
    z = jnp.concatenate([_upsample_bilinear_2x_ref(xb), yb], axis=1)

    def conv_bn(v, wgt, b, s, t):
        v = v.astype(bf).astype(f32)    # kernel feeds bf16 activations to the MXU
        v = jax.lax.conv_general_dilated(
            v, wgt, window_strides=(1, 1), padding=((1, 1), (1, 1)),
            dimension_numbers=("NCHW", "OIHW", "NCHW"),
            precision=jax.lax.Precision.HIGHEST)
        v = jnp.maximum(v + b[None, :, None, None], 0.0)
        return v * s[None, :, None, None] + t[None, :, None, None]

    z = conv_bn(z, rp["w1"], rp["b1"], rp["s1"], rp["t1"])
    z = conv_bn(z, rp["w2"], rp["b2"], rp["s2"], rp["t2"])
    return z


if __name__ == "__main__":
    key = jax.random.PRNGKey(0)
    kx, ky, kparams = jax.random.split(key, 3)

    N, Cx, H, W = 2, 4, 16, 16
    Cy, Cout = 4, 8

    x = jax.random.normal(kx, (N, Cx, H, W), jnp.float32)
    y = jax.random.normal(ky, (N, Cy, 2 * H, 2 * W), jnp.float32)

    kp, rp = init_params(kparams, Cx, Cy, Cout)
    kp["uw"] = _width_upsample_pad_matrix(W).astype(jnp.bfloat16)

    out = jax.jit(upconv_pallas)(x, y, kp)
    out = jax.block_until_ready(out)

    assert out.shape == (N, Cout, 2 * H, 2 * W), out.shape
    assert bool(jnp.all(jnp.isfinite(out)))

    ref = upconv_reference(x, y, rp)
    max_err = float(jnp.max(jnp.abs(out - ref)))
    assert max_err < 2e-2, f"max abs err vs reference: {max_err}"

    print("KERNEL_OK")
</pallas_src>

<mosaic_0001>
module attributes {stable_mosaic.version = 11 : i64} {
  func.func @_upconv_kernel(%arg0: i32, %arg1: memref<1x64x16xbf16, #tpu.memory_space<vmem>>, %arg2: memref<1x4x32x32xbf16, #tpu.memory_space<vmem>>, %arg3: memref<16x34xbf16, #tpu.memory_space<vmem>>, %arg4: memref<8x72xbf16, #tpu.memory_space<vmem>>, %arg5: memref<8x72xbf16, #tpu.memory_space<vmem>>, %arg6: memref<8x6xf32, #tpu.memory_space<vmem>>, %arg7: memref<1x8x1088xf32, #tpu.memory_space<vmem>>, %arg8: memref<8x1158xf32, #tpu.memory_space<vmem>>, %arg9: memref<8x1158xf32, #tpu.memory_space<vmem>>) attributes {dimension_semantics = [#tpu.dimension_semantics<parallel>], iteration_bounds = array<i64: 2>, scalar_prefetch = 0 : i64, scratch_operands = 2 : i64, tpu.core_type = #tpu.core_type<tc>, window_params = [{transform_indices = @transform_0, window_bounds = array<i64: 1, 64, 16>}, {transform_indices = @transform_1, window_bounds = array<i64: 1, 4, 32, 32>}, {pipeline_mode = #tpu.pipeline_mode<synchronous>, transform_indices = @transform_2, window_bounds = array<i64: 16, 34>}, {pipeline_mode = #tpu.pipeline_mode<synchronous>, transform_indices = @transform_3, window_bounds = array<i64: 8, 72>}, {pipeline_mode = #tpu.pipeline_mode<synchronous>, transform_indices = @transform_4, window_bounds = array<i64: 8, 72>}, {pipeline_mode = #tpu.pipeline_mode<synchronous>, transform_indices = @transform_5, window_bounds = array<i64: 8, 6>}, {transform_indices = @transform_6, window_bounds = array<i64: 1, 8, 1088>}]} {
    %c0 = arith.constant 0 : index
    %c0_0 = arith.constant 0 : index
    %c0_1 = arith.constant 0 : index
    %0 = vector.load %arg1[%c0, %c0_0, %c0_1] : memref<1x64x16xbf16, #tpu.memory_space<vmem>>, vector<1x64x16xbf16>
    %1 = vector.shape_cast %0 : vector<1x64x16xbf16> to vector<64x16xbf16>
    %c0_2 = arith.constant 0 : index
    %c0_3 = arith.constant 0 : index
    %2 = vector.load %arg3[%c0_2, %c0_3] : memref<16x34xbf16, #tpu.memory_space<vmem>>, vector<16x34xbf16>
    %cst = arith.constant dense<0.000000e+00> : vector<64x34xf32>
    %3 = tpu.matmul %1, %2, %cst {dimension_numbers = #tpu.dot_dimension_numbers<[1], [0], [0], [1], [0, 0, 1, 1], [], []>} : vector<64x16xbf16>, vector<16x34xbf16>, vector<64x34xf32> -> vector<64x34xf32>
    %4 = vector.extract_strided_slice %3 {offsets = [0, 0], sizes = [16, 34], strides = [1, 1]} : vector<64x34xf32> to vector<16x34xf32>
    %5 = vector.extract_strided_slice %4 {offsets = [0, 0], sizes = [1, 34], strides = [1, 1]} : vector<16x34xf32> to vector<1x34xf32>
    %6 = vector.extract_strided_slice %4 {offsets = [0, 0], sizes = [15, 34], strides = [1, 1]} : vector<16x34xf32> to vector<15x34xf32>
    %7 = tpu.concatenate %5, %6 in 0 : vector<1x34xf32>, vector<15x34xf32> -> vector<16x34xf32>
    %8 = vector.extract_strided_slice %4 {offsets = [1, 0], sizes = [15, 34], strides = [1, 1]} : vector<16x34xf32> to vector<15x34xf32>
    %9 = vector.extract_strided_slice %4 {offsets = [15, 0], sizes = [1, 34], strides = [1, 1]} : vector<16x34xf32> to vector<1x34xf32>
    %10 = tpu.concatenate %8, %9 in 0 : vector<15x34xf32>, vector<1x34xf32> -> vector<16x34xf32>
    %cst_4 = arith.constant 7.500000e-01 : f32
    %11 = vector.broadcast %cst_4 : f32 to vector<16x34xf32>
    %12 = arith.mulf %11, %4 : vector<16x34xf32>
    %cst_5 = arith.constant 2.500000e-01 : f32
    %13 = vector.broadcast %cst_5 : f32 to vector<16x34xf32>
    %14 = arith.mulf %13, %7 : vector<16x34xf32>
    %15 = arith.addf %12, %14 : vector<16x34xf32>
    %cst_6 = arith.constant 7.500000e-01 : f32
    %16 = vector.broadcast %cst_6 : f32 to vector<16x34xf32>
    %17 = arith.mulf %16, %4 : vector<16x34xf32>
    %cst_7 = arith.constant 2.500000e-01 : f32
    %18 = vector.broadcast %cst_7 : f32 to vector<16x34xf32>
    %19 = arith.mulf %18, %10 : vector<16x34xf32>
    %20 = arith.addf %17, %19 : vector<16x34xf32>
    %21 = vector.extract_strided_slice %3 {offsets = [16, 0], sizes = [16, 34], strides = [1, 1]} : vector<64x34xf32> to vector<16x34xf32>
    %22 = vector.extract_strided_slice %21 {offsets = [0, 0], sizes = [1, 34], strides = [1, 1]} : vector<16x34xf32> to vector<1x34xf32>
    %23 = vector.extract_strided_slice %21 {offsets = [0, 0], sizes = [15, 34], strides = [1, 1]} : vector<16x34xf32> to vector<15x34xf32>
    %24 = tpu.concatenate %22, %23 in 0 : vector<1x34xf32>, vector<15x34xf32> -> vector<16x34xf32>
    %25 = vector.extract_strided_slice %21 {offsets = [1, 0], sizes = [15, 34], strides = [1, 1]} : vector<16x34xf32> to vector<15x34xf32>
    %26 = vector.extract_strided_slice %21 {offsets = [15, 0], sizes = [1, 34], strides = [1, 1]} : vector<16x34xf32> to vector<1x34xf32>
    %27 = tpu.concatenate %25, %26 in 0 : vector<15x34xf32>, vector<1x34xf32> -> vector<16x34xf32>
    %cst_8 = arith.constant 7.500000e-01 : f32
    %28 = vector.broadcast %cst_8 : f32 to vector<16x34xf32>
    %29 = arith.mulf %28, %21 : vector<16x34xf32>
    %cst_9 = arith.constant 2.500000e-01 : f32
    %30 = vector.broadcast %cst_9 : f32 to vector<16x34xf32>
    %31 = arith.mulf %30, %24 : vector<16x34xf32>
    %32 = arith.addf %29, %31 : vector<16x34xf32>
    %cst_10 = arith.constant 7.500000e-01 : f32
    %33 = vector.broadcast %cst_10 : f32 to vector<16x34xf32>
    %34 = arith.mulf %33, %21 : vector<16x34xf32>
    %cst_11 = arith.constant 2.500000e-01 : f32
    %35 = vector.broadcast %cst_11 : f32 to vector<16x34xf32>
    %36 = arith.mulf %35, %27 : vector<16x34xf32>
    %37 = arith.addf %34, %36 : vector<16x34xf32>
    %38 = vector.extract_strided_slice %3 {offsets = [32, 0], sizes = [16, 34], strides = [1, 1]} : vector<64x34xf32> to vector<16x34xf32>
    %39 = vector.extract_strided_slice %38 {offsets = [0, 0], sizes = [1, 34], strides = [1, 1]} : vector<16x34xf32> to vector<1x34xf32>
    %40 = vector.extract_strided_slice %38 {offsets = [0, 0], sizes = [15, 34], strides = [1, 1]} : vector<16x34xf32> to vector<15x34xf32>
    %41 = tpu.concatenate %39, %40 in 0 : vector<1x34xf32>, vector<15x34xf32> -> vector<16x34xf32>
    %42 = vector.extract_strided_slice %38 {offsets = [1, 0], sizes = [15, 34], strides = [1, 1]} : vector<16x34xf32> to vector<15x34xf32>
    %43 = vector.extract_strided_slice %38 {offsets = [15, 0], sizes = [1, 34], strides = [1, 1]} : vector<16x34xf32> to vector<1x34xf32>
    %44 = tpu.concatenate %42, %43 in 0 : vector<15x34xf32>, vector<1x34xf32> -> vector<16x34xf32>
    %cst_12 = arith.constant 7.500000e-01 : f32
    %45 = vector.broadcast %cst_12 : f32 to vector<16x34xf32>
    %46 = arith.mulf %45, %38 : vector<16x34xf32>
    %cst_13 = arith.constant 2.500000e-01 : f32
    %47 = vector.broadcast %cst_13 : f32 to vector<16x34xf32>
    %48 = arith.mulf %47, %41 : vector<16x34xf32>
    %49 = arith.addf %46, %48 : vector<16x34xf32>
    %cst_14 = arith.constant 7.500000e-01 : f32
    %50 = vector.broadcast %cst_14 : f32 to vector<16x34xf32>
    %51 = arith.mulf %50, %38 : vector<16x34xf32>
    %cst_15 = arith.constant 2.500000e-01 : f32
    %52 = vector.broadcast %cst_15 : f32 to vector<16x34xf32>
    %53 = arith.mulf %52, %44 : vector<16x34xf32>
    %54 = arith.addf %51, %53 : vector<16x34xf32>
    %55 = vector.extract_strided_slice %3 {offsets = [48, 0], sizes = [16, 34], strides = [1, 1]} : vector<64x34xf32> to vector<16x34xf32>
    %56 = vector.extract_strided_slice %55 {offsets = [0, 0], sizes = [1, 34], strides = [1, 1]} : vector<16x34xf32> to vector<1x34xf32>
    %57 = vector.extract_strided_slice %55 {offsets = [0, 0], sizes = [15, 34], strides = [1, 1]} : vector<16x34xf32> to vector<15x34xf32>
    %58 = tpu.concatenate %56, %57 in 0 : vector<1x34xf32>, vector<15x34xf32> -> vector<16x34xf32>
    %59 = vector.extract_strided_slice %55 {offsets = [1, 0], sizes = [15, 34], strides = [1, 1]} : vector<16x34xf32> to vector<15x34xf32>
    %60 = vector.extract_strided_slice %55 {offsets = [15, 0], sizes = [1, 34], strides = [1, 1]} : vector<16x34xf32> to vector<1x34xf32>
    %61 = tpu.concatenate %59, %60 in 0 : vector<15x34xf32>, vector<1x34xf32> -> vector<16x34xf32>
    %cst_16 = arith.constant 7.500000e-01 : f32
    %62 = vector.broadcast %cst_16 : f32 to vector<16x34xf32>
    %63 = arith.mulf %62, %55 : vector<16x34xf32>
    %cst_17 = arith.constant 2.500000e-01 : f32
    %64 = vector.broadcast %cst_17 : f32 to vector<16x34xf32>
    %65 = arith.mulf %64, %58 : vector<16x34xf32>
    %66 = arith.addf %63, %65 : vector<16x34xf32>
    %cst_18 = arith.constant 7.500000e-01 : f32
    %67 = vector.broadcast %cst_18 : f32 to vector<16x34xf32>
    %68 = arith.mulf %67, %55 : vector<16x34xf32>
    %cst_19 = arith.constant 2.500000e-01 : f32
    %69 = vector.broadcast %cst_19 : f32 to vector<16x34xf32>
    %70 = arith.mulf %69, %61 : vector<16x34xf32>
    %71 = arith.addf %68, %70 : vector<16x34xf32>
    %cst_20 = arith.constant 0.000000e+00 : f32
    %72 = vector.broadcast %cst_20 : f32 to vector<8x1158xf32>
    %c0_21 = arith.constant 0 : index
    %c0_22 = arith.constant 0 : index
    %73 = vector.load %arg8[%c0_21, %c0_22] : memref<8x1158xf32, #tpu.memory_space<vmem>>, vector<8x1158xf32>
    tpu.vector_store %arg8[%c0_21, %c0_22], %72 {strides = array<i32>} : memref<8x1158xf32, #tpu.memory_space<vmem>>, vector<8x1158xf32>,
    %cst_23 = arith.constant 0.000000e+00 : f32
    %74 = vector.broadcast %cst_23 : f32 to vector<4x1xf32>
    %75 = vector.extract_strided_slice %15 {offsets = [0, 0], sizes = [1, 34], strides = [1, 1]} : vector<16x34xf32> to vector<1x34xf32>
    %76 = vector.extract_strided_slice %32 {offsets = [0, 0], sizes = [1, 34], strides = [1, 1]} : vector<16x34xf32> to vector<1x34xf32>
    %77 = vector.extract_strided_slice %49 {offsets = [0, 0], sizes = [1, 34], strides = [1, 1]} : vector<16x34xf32> to vector<1x34xf32>
    %78 = vector.extract_strided_slice %66 {offsets = [0, 0], sizes = [1, 34], strides = [1, 1]} : vector<16x34xf32> to vector<1x34xf32>
    %c0_24 = arith.constant 0 : index
    %c0_25 = arith.constant 0 : index
    %c0_26 = arith.constant 0 : index
    %c0_27 = arith.constant 0 : index
    %79 = vector.load %arg2[%c0_24, %c0_25, %c0_26, %c0_27] : memref<1x4x32x32xbf16, #tpu.memory_space<vmem>>, vector<1x4x1x32xbf16>
    %80 = vector.shape_cast %79 : vector<1x4x1x32xbf16> to vector<4x32xbf16>
    %81 = arith.extf %80 : vector<4x32xbf16> to vector<4x32xf32>
    %82 = tpu.concatenate %74, %81, %74 in 1 : vector<4x1xf32>, vector<4x32xf32>, vector<4x1xf32> -> vector<4x34xf32>
    %83 = tpu.concatenate %75, %76, %77, %78, %82 in 0 : vector<1x34xf32>, vector<1x34xf32>, vector<1x34xf32>, vector<1x34xf32>, vector<4x34xf32> -> vector<8x34xf32>
    %c0_28 = arith.constant 0 : index
    %c34 = arith.constant 34 : index
    %84 = vector.load %arg8[%c0_28, %c34] : memref<8x1158xf32, #tpu.memory_space<vmem>>, vector<8x34xf32>
    tpu.vector_store %arg8[%c0_28, %c34], %83 {strides = array<i32>} : memref<8x1158xf32, #tpu.memory_space<vmem>>, vector<8x34xf32>,
    %85 = vector.extract_strided_slice %20 {offsets = [0, 0], sizes = [1, 34], strides = [1, 1]} : vector<16x34xf32> to vector<1x34xf32>
    %86 = vector.extract_strided_slice %37 {offsets = [0, 0], sizes = [1, 34], strides = [1, 1]} : vector<16x34xf32> to vector<1x34xf32>
    %87 = vector.extract_strided_slice %54 {offsets = [0, 0], sizes = [1, 34], strides = [1, 1]} : vector<16x34xf32> to vector<1x34xf32>
    %88 = vector.extract_strided_slice %71 {offsets = [0, 0], sizes = [1, 34], strides = [1, 1]} : vector<16x34xf32> to vector<1x34xf32>
    %c0_29 = arith.constant 0 : index
    %c0_30 = arith.constant 0 : index
    %c1 = arith.constant 1 : index
    %c0_31 = arith.constant 0 : index
    %89 = vector.load %arg2[%c0_29, %c0_30, %c1, %c0_31] : memref<1x4x32x32xbf16, #tpu.memory_space<vmem>>, vector<1x4x1x32xbf16>
    %90 = vector.shape_cast %89 : vector<1x4x1x32xbf16> to vector<4x32xbf16>
    %91 = arith.extf %90 : vector<4x32xbf16> to vector<4x32xf32>
    %92 = tpu.concatenate %74, %91, %74 in 1 : vector<4x1xf32>, vector<4x32xf32>, vector<4x1xf32> -> vector<4x34xf32>
    %93 = tpu.concatenate %85, %86, %87, %88, %92 in 0 : vector<1x34xf32>, vector<1x34xf32>, vector<1x34xf32>, vector<1x34xf32>, vector<4x34xf32> -> vector<8x34xf32>
    %c0_32 = arith.constant 0 : index
    %c68 = arith.constant 68 : index
    %94 = vector.load %arg8[%c0_32, %c68] : memref<8x1158xf32, #tpu.memory_space<vmem>>, vector<8x34xf32>
    tpu.vector_store %arg8[%c0_32, %c68], %93 {strides = array<i32>} : memref<8x1158xf32, #tpu.memory_space<vmem>>, vector<8x34xf32>,
    %95 = vector.extract_strided_slice %15 {offsets = [1, 0], sizes = [1, 34], strides = [1, 1]} : vector<16x34xf32> to vector<1x34xf32>
    %96 = vector.extract_strided_slice %32 {offsets = [1, 0], sizes = [1, 34], strides = [1, 1]} : vector<16x34xf32> to vector<1x34xf32>
    %97 = vector.extract_strided_slice %49 {offsets = [1, 0], sizes = [1, 34], strides = [1, 1]} : vector<16x34xf32> to vector<1x34xf32>
    %98 = vector.extract_strided_slice %66 {offsets = [1, 0], sizes = [1, 34], strides = [1, 1]} : vector<16x34xf32> to vector<1x34xf32>
    %c0_33 = arith.constant 0 : index
    %c0_34 = arith.constant 0 : index
    %c2 = arith.constant 2 : index
    %c0_35 = arith.constant 0 : index
    %99 = vector.load %arg2[%c0_33, %c0_34, %c2, %c0_35] : memref<1x4x32x32xbf16, #tpu.memory_space<vmem>>, vector<1x4x1x32xbf16>
    %100 = vector.shape_cast %99 : vector<1x4x1x32xbf16> to vector<4x32xbf16>
    %101 = arith.extf %100 : vector<4x32xbf16> to vector<4x32xf32>
    %102 = tpu.concatenate %74, %101, %74 in 1 : vector<4x1xf32>, vector<4x32xf32>, vector<4x1xf32> -> vector<4x34xf32>
    %103 = tpu.concatenate %95, %96, %97, %98, %102 in 0 : vector<1x34xf32>, vector<1x34xf32>, vector<1x34xf32>, vector<1x34xf32>, vector<4x34xf32> -> vector<8x34xf32>
    %c0_36 = arith.constant 0 : index
    %c102 = arith.constant 102 : index
    %104 = vector.load %arg8[%c0_36, %c102] : memref<8x1158xf32, #tpu.memory_space<vmem>>, vector<8x34xf32>
    tpu.vector_store %arg8[%c0_36, %c102], %103 {strides = array<i32>} : memref<8x1158xf32, #tpu.memory_space<vmem>>, vector<8x34xf32>,
    %105 = vector.extract_strided_slice %20 {offsets = [1, 0], sizes = [1, 34], strides = [1, 1]} : vector<16x34xf32> to vector<1x34xf32>
    %106 = vector.extract_strided_slice %37 {offsets = [1, 0], sizes = [1, 34], strides = [1, 1]} : vector<16x34xf32> to vector<1x34xf32>
    %107 = vector.extract_strided_slice %54 {offsets = [1, 0], sizes = [1, 34], strides = [1, 1]} : vector<16x34xf32> to vector<1x34xf32>
    %108 = vector.extract_strided_slice %71 {offsets = [1, 0], sizes = [1, 34], strides = [1, 1]} : vector<16x34xf32> to vector<1x34xf32>
    %c0_37 = arith.constant 0 : index
    %c0_38 = arith.constant 0 : index
    %c3 = arith.constant 3 : index
    %c0_39 = arith.constant 0 : index
    %109 = vector.load %arg2[%c0_37, %c0_38, %c3, %c0_39] : memref<1x4x32x32xbf16, #tpu.memory_space<vmem>>, vector<1x4x1x32xbf16>
    %110 = vector.shape_cast %109 : vector<1x4x1x32xbf16> to vector<4x32xbf16>
    %111 = arith.extf %110 : vector<4x32xbf16> to vector<4x32xf32>
    %112 = tpu.concatenate %74, %111, %74 in 1 : vector<4x1xf32>, vector<4x32xf32>, vector<4x1xf32> -> vector<4x34xf32>
    %113 = tpu.concatenate %105, %106, %107, %108, %112 in 0 : vector<1x34xf32>, vector<1x34xf32>, vector<1x34xf32>, vector<1x34xf32>, vector<4x34xf32> -> vector<8x34xf32>
    %c0_40 = arith.constant 0 : index
    %c136 = arith.constant 136 : index
    %114 = vector.load %arg8[%c0_40, %c136] : memref<8x1158xf32, #tpu.memory_space<vmem>>, vector<8x34xf32>
    tpu.vector_store %arg8[%c0_40, %c136], %113 {strides = array<i32>} : memref<8x1158xf32, #tpu.memory_space<vmem>>, vector<8x34xf32>,
    %115 = vector.extract_strided_slice %15 {offsets = [2, 0], sizes = [1, 34], strides = [1, 1]} : vector<16x34xf32> to vector<1x34xf32>
    %116 = vector.extract_strided_slice %32 {offsets = [2, 0], sizes = [1, 34], strides = [1, 1]} : vector<16x34xf32> to vector<1x34xf32>
    %117 = vector.extract_strided_slice %49 {offsets = [2, 0], sizes = [1, 34], strides = [1, 1]} : vector<16x34xf32> to vector<1x34xf32>
    %118 = vector.extract_strided_slice %66 {offsets = [2, 0], sizes = [1, 34], strides = [1, 1]} : vector<16x34xf32> to vector<1x34xf32>
    %c0_41 = arith.constant 0 : index
    %c0_42 = arith.constant 0 : index
    %c4 = arith.constant 4 : index
    %c0_43 = arith.constant 0 : index
    %119 = vector.load %arg2[%c0_41, %c0_42, %c4, %c0_43] : memref<1x4x32x32xbf16, #tpu.memory_space<vmem>>, vector<1x4x1x32xbf16>
    %120 = vector.shape_cast %119 : vector<1x4x1x32xbf16> to vector<4x32xbf16>
    %121 = arith.extf %120 : vector<4x32xbf16> to vector<4x32xf32>
    %122 = tpu.concatenate %74, %121, %74 in 1 : vector<4x1xf32>, vector<4x32xf32>, vector<4x1xf32> -> vector<4x34xf32>
    %123 = tpu.concatenate %115, %116, %117, %118, %122 in 0 : vector<1x34xf32>, vector<1x34xf32>, vector<1x34xf32>, vector<1x34xf32>, vector<4x34xf32> -> vector<8x34xf32>
    %c0_44 = arith.constant 0 : index
    %c170 = arith.constant 170 : index
    %124 = vector.load %arg8[%c0_44, %c170] : memref<8x1158xf32, #tpu.memory_space<vmem>>, vector<8x34xf32>
    tpu.vector_store %arg8[%c0_44, %c170], %123 {strides = array<i32>} : memref<8x1158xf32, #tpu.memory_space<vmem>>, vector<8x34xf32>,
    %125 = vector.extract_strided_slice %20 {offsets = [2, 0], sizes = [1, 34], strides = [1, 1]} : vector<16x34xf32> to vector<1x34xf32>
    %126 = vector.extract_strided_slice %37 {offsets = [2, 0], sizes = [1, 34], strides = [1, 1]} : vector<16x34xf32> to vector<1x34xf32>
    %127 = vector.extract_strided_slice %54 {offsets = [2, 0], sizes = [1, 34], strides = [1, 1]} : vector<16x34xf32> to vector<1x34xf32>
    %128 = vector.extract_strided_slice %71 {offsets = [2, 0], sizes = [1, 34], strides = [1, 1]} : vector<16x34xf32> to vector<1x34xf32>
    %c0_45 = arith.constant 0 : index
    %c0_46 = arith.constant 0 : index
    %c5 = arith.constant 5 : index
    %c0_47 = arith.constant 0 : index
    %129 = vector.load %arg2[%c0_45, %c0_46, %c5, %c0_47] : memref<1x4x32x32xbf16, #tpu.memory_space<vmem>>, vector<1x4x1x32xbf16>
    %130 = vector.shape_cast %129 : vector<1x4x1x32xbf16> to vector<4x32xbf16>
    %131 = arith.extf %130 : vector<4x32xbf16> to vector<4x32xf32>
    %132 = tpu.concatenate %74, %131, %74 in 1 : vector<4x1xf32>, vector<4x32xf32>, vector<4x1xf32> -> vector<4x34xf32>
    %133 = tpu.concatenate %125, %126, %127, %128, %132 in 0 : vector<1x34xf32>, vector<1x34xf32>, vector<1x34xf32>, vector<1x34xf32>, vector<4x34xf32> -> vector<8x34xf32>
    %c0_48 = arith.constant 0 : index
    %c204 = arith.constant 204 : index
    %134 = vector.load %arg8[%c0_48, %c204] : memref<8x1158xf32, #tpu.memory_space<vmem>>, vector<8x34xf32>
    tpu.vector_store %arg8[%c0_48, %c204], %133 {strides = array<i32>} : memref<8x1158xf32, #tpu.memory_space<vmem>>, vector<8x34xf32>,
    %135 = vector.extract_strided_slice %15 {offsets = [3, 0], sizes = [1, 34], strides = [1, 1]} : vector<16x34xf32> to vector<1x34xf32>
    %136 = vector.extract_strided_slice %32 {offsets = [3, 0], sizes = [1, 34], strides = [1, 1]} : vector<16x34xf32> to vector<1x34xf32>
    %137 = vector.extract_strided_slice %49 {offsets = [3, 0], sizes = [1, 34], strides = [1, 1]} : vector<16x34xf32> to vector<1x34xf32>
    %138 = vector.extract_strided_slice %66 {offsets = [3, 0], sizes = [1, 34], strides = [1, 1]} : vector<16x34xf32> to vector<1x34xf32>
    %c0_49 = arith.constant 0 : index
    %c0_50 = arith.constant 0 : index
    %c6 = arith.constant 6 : index
    %c0_51 = arith.constant 0 : index
    %139 = vector.load %arg2[%c0_49, %c0_50, %c6, %c0_51] : memref<1x4x32x32xbf16, #tpu.memory_space<vmem>>, vector<1x4x1x32xbf16>
    %140 = vector.shape_cast %139 : vector<1x4x1x32xbf16> to vector<4x32xbf16>
    %141 = arith.extf %140 : vector<4x32xbf16> to vector<4x32xf32>
    %142 = tpu.concatenate %74, %141, %74 in 1 : vector<4x1xf32>, vector<4x32xf32>, vector<4x1xf32> -> vector<4x34xf32>
    %143 = tpu.concatenate %135, %136, %137, %138, %142 in 0 : vector<1x34xf32>, vector<1x34xf32>, vector<1x34xf32>, vector<1x34xf32>, vector<4x34xf32> -> vector<8x34xf32>
    %c0_52 = arith.constant 0 : index
    %c238 = arith.constant 238 : index
    %144 = vector.load %arg8[%c0_52, %c238] : memref<8x1158xf32, #tpu.memory_space<vmem>>, vector<8x34xf32>
    tpu.vector_store %arg8[%c0_52, %c238], %143 {strides = array<i32>} : memref<8x1158xf32, #tpu.memory_space<vmem>>, vector<8x34xf32>,
    %145 = vector.extract_strided_slice %20 {offsets = [3, 0], sizes = [1, 34], strides = [1, 1]} : vector<16x34xf32> to vector<1x34xf32>
    %146 = vector.extract_strided_slice %37 {offsets = [3, 0], sizes = [1, 34], strides = [1, 1]} : vector<16x34xf32> to vector<1x34xf32>
    %147 = vector.extract_strided_slice %54 {offsets = [3, 0], sizes = [1, 34], strides = [1, 1]} : vector<16x34xf32> to vector<1x34xf32>
    %148 = vector.extract_strided_slice %71 {offsets = [3, 0], sizes = [1, 34], strides = [1, 1]} : vector<16x34xf32> to vector<1x34xf32>
    %c0_53 = arith.constant 0 : index
    %c0_54 = arith.constant 0 : index
    %c7 = arith.constant 7 : index
    %c0_55 = arith.constant 0 : index
    %149 = vector.load %arg2[%c0_53, %c0_54, %c7, %c0_55] : memref<1x4x32x32xbf16, #tpu.memory_space<vmem>>, vector<1x4x1x32xbf16>
    %150 = vector.shape_cast %149 : vector<1x4x1x32xbf16> to vector<4x32xbf16>
    %151 = arith.extf %150 : vector<4x32xbf16> to vector<4x32xf32>
    %152 = tpu.concatenate %74, %151, %74 in 1 : vector<4x1xf32>, vector<4x32xf32>, vector<4x1xf32> -> vector<4x34xf32>
    %153 = tpu.concatenate %145, %146, %147, %148, %152 in 0 : vector<1x34xf32>, vector<1x34xf32>, vector<1x34xf32>, vector<1x34xf32>, vector<4x34xf32> -> vector<8x34xf32>
    %c0_56 = arith.constant 0 : index
    %c272 = arith.constant 272 : index
    %154 = vector.load %arg8[%c0_56, %c272] : memref<8x1158xf32, #tpu.memory_space<vmem>>, vector<8x34xf32>
    tpu.vector_store %arg8[%c0_56, %c272], %153 {strides = array<i32>} : memref<8x1158xf32, #tpu.memory_space<vmem>>, vector<8x34xf32>,
    %155 = vector.extract_strided_slice %15 {offsets = [4, 0], sizes = [1, 34], strides = [1, 1]} : vector<16x34xf32> to vector<1x34xf32>
    %156 = vector.extract_strided_slice %32 {offsets = [4, 0], sizes = [1, 34], strides = [1, 1]} : vector<16x34xf32> to vector<1x34xf32>
    %157 = vector.extract_strided_slice %49 {offsets = [4, 0], sizes = [1, 34], strides = [1, 1]} : vector<16x34xf32> to vector<1x34xf32>
    %158 = vector.extract_strided_slice %66 {offsets = [4, 0], sizes = [1, 34], strides = [1, 1]} : vector<16x34xf32> to vector<1x34xf32>
    %c0_57 = arith.constant 0 : index
    %c0_58 = arith.constant 0 : index
    %c8 = arith.constant 8 : index
    %c0_59 = arith.constant 0 : index
    %159 = vector.load %arg2[%c0_57, %c0_58, %c8, %c0_59] : memref<1x4x32x32xbf16, #tpu.memory_space<vmem>>, vector<1x4x1x32xbf16>
    %160 = vector.shape_cast %159 : vector<1x4x1x32xbf16> to vector<4x32xbf16>
    %161 = arith.extf %160 : vector<4x32xbf16> to vector<4x32xf32>
    %162 = tpu.concatenate %74, %161, %74 in 1 : vector<4x1xf32>, vector<4x32xf32>, vector<4x1xf32> -> vector<4x34xf32>
    %163 = tpu.concatenate %155, %156, %157, %158, %162 in 0 : vector<1x34xf32>, vector<1x34xf32>, vector<1x34xf32>, vector<1x34xf32>, vector<4x34xf32> -> vector<8x34xf32>
    %c0_60 = arith.constant 0 : index
    %c306 = arith.constant 306 : index
    %164 = vector.load %arg8[%c0_60, %c306] : memref<8x1158xf32, #tpu.memory_space<vmem>>, vector<8x34xf32>
    tpu.vector_store %arg8[%c0_60, %c306], %163 {strides = array<i32>} : memref<8x1158xf32, #tpu.memory_space<vmem>>, vector<8x34xf32>,
    %165 = vector.extract_strided_slice %20 {offsets = [4, 0], sizes = [1, 34], strides = [1, 1]} : vector<16x34xf32> to vector<1x34xf32>
    %166 = vector.extract_strided_slice %37 {offsets = [4, 0], sizes = [1, 34], strides = [1, 1]} : vector<16x34xf32> to vector<1x34xf32>
    %167 = vector.extract_strided_slice %54 {offsets = [4, 0], sizes = [1, 34], strides = [1, 1]} : vector<16x34xf32> to vector<1x34xf32>
    %168 = vector.extract_strided_slice %71 {offsets = [4, 0], sizes = [1, 34], strides = [1, 1]} : vector<16x34xf32> to vector<1x34xf32>
    %c0_61 = arith.constant 0 : index
    %c0_62 = arith.constant 0 : index
    %c9 = arith.constant 9 : index
    %c0_63 = arith.constant 0 : index
    %169 = vector.load %arg2[%c0_61, %c0_62, %c9, %c0_63] : memref<1x4x32x32xbf16, #tpu.memory_space<vmem>>, vector<1x4x1x32xbf16>
    %170 = vector.shape_cast %169 : vector<1x4x1x32xbf16> to vector<4x32xbf16>
    %171 = arith.extf %170 : vector<4x32xbf16> to vector<4x32xf32>
    %172 = tpu.concatenate %74, %171, %74 in 1 : vector<4x1xf32>, vector<4x32xf32>, vector<4x1xf32> -> vector<4x34xf32>
    %173 = tpu.concatenate %165, %166, %167, %168, %172 in 0 : vector<1x34xf32>, vector<1x34xf32>, vector<1x34xf32>, vector<1x34xf32>, vector<4x34xf32> -> vector<8x34xf32>
    %c0_64 = arith.constant 0 : index
    %c340 = arith.constant 340 : index
    %174 = vector.load %arg8[%c0_64, %c340] : memref<8x1158xf32, #tpu.memory_space<vmem>>, vector<8x34xf32>
    tpu.vector_store %arg8[%c0_64, %c340], %173 {strides = array<i32>} : memref<8x1158xf32, #tpu.memory_space<vmem>>, vector<8x34xf32>,
    %175 = vector.extract_strided_slice %15 {offsets = [5, 0], sizes = [1, 34], strides = [1, 1]} : vector<16x34xf32> to vector<1x34xf32>
    %176 = vector.extract_strided_slice %32 {offsets = [5, 0], sizes = [1, 34], strides = [1, 1]} : vector<16x34xf32> to vector<1x34xf32>
    %177 = vector.extract_strided_slice %49 {offsets = [5, 0], sizes = [1, 34], strides = [1, 1]} : vector<16x34xf32> to vector<1x34xf32>
    %178 = vector.extract_strided_slice %66 {offsets = [5, 0], sizes = [1, 34], strides = [1, 1]} : vector<16x34xf32> to vector<1x34xf32>
    %c0_65 = arith.constant 0 : index
    %c0_66 = arith.constant 0 : index
    %c10 = arith.constant 10 : index
    %c0_67 = arith.constant 0 : index
    %179 = vector.load %arg2[%c0_65, %c0_66, %c10, %c0_67] : memref<1x4x32x32xbf16, #tpu.memory_space<vmem>>, vector<1x4x1x32xbf16>
    %180 = vector.shape_cast %179 : vector<1x4x1x32xbf16> to vector<4x32xbf16>
    %181 = arith.extf %180 : vector<4x32xbf16> to vector<4x32xf32>
    %182 = tpu.concatenate %74, %181, %74 in 1 : vector<4x1xf32>, vector<4x32xf32>, vector<4x1xf32> -> vector<4x34xf32>
    %183 = tpu.concatenate %175, %176, %177, %178, %182 in 0 : vector<1x34xf32>, vector<1x34xf32>, vector<1x34xf32>, vector<1x34xf32>, vector<4x34xf32> -> vector<8x34xf32>
    %c0_68 = arith.constant 0 : index
    %c374 = arith.constant 374 : index
    %184 = vector.load %arg8[%c0_68, %c374] : memref<8x1158xf32, #tpu.memory_space<vmem>>, vector<8x34xf32>
    tpu.vector_store %arg8[%c0_68, %c374], %183 {strides = array<i32>} : memref<8x1158xf32, #tpu.memory_space<vmem>>, vector<8x34xf32>,
    %185 = vector.extract_strided_slice %20 {offsets = [5, 0], sizes = [1, 34], strides = [1, 1]} : vector<16x34xf32> to vector<1x34xf32>
    %186 = vector.extract_strided_slice %37 {offsets = [5, 0], sizes = [1, 34], strides = [1, 1]} : vector<16x34xf32> to vector<1x34xf32>
    %187 = vector.extract_strided_slice %54 {offsets = [5, 0], sizes = [1, 34], strides = [1, 1]} : vector<16x34xf32> to vector<1x34xf32>
    %188 = vector.extract_strided_slice %71 {offsets = [5, 0], sizes = [1, 34], strides = [1, 1]} : vector<16x34xf32> to vector<1x34xf32>
    %c0_69 = arith.constant 0 : index
    %c0_70 = arith.constant 0 : index
    %c11 = arith.constant 11 : index
    %c0_71 = arith.constant 0 : index
    %189 = vector.load %arg2[%c0_69, %c0_70, %c11, %c0_71] : memref<1x4x32x32xbf16, #tpu.memory_space<vmem>>, vector<1x4x1x32xbf16>
    %190 = vector.shape_cast %189 : vector<1x4x1x32xbf16> to vector<4x32xbf16>
    %191 = arith.extf %190 : vector<4x32xbf16> to vector<4x32xf32>
    %192 = tpu.concatenate %74, %191, %74 in 1 : vector<4x1xf32>, vector<4x32xf32>, vector<4x1xf32> -> vector<4x34xf32>
    %193 = tpu.concatenate %185, %186, %187, %188, %192 in 0 : vector<1x34xf32>, vector<1x34xf32>, vector<1x34xf32>, vector<1x34xf32>, vector<4x34xf32> -> vector<8x34xf32>
    %c0_72 = arith.constant 0 : index
    %c408 = arith.constant 408 : index
    %194 = vector.load %arg8[%c0_72, %c408] : memref<8x1158xf32, #tpu.memory_space<vmem>>, vector<8x34xf32>
    tpu.vector_store %arg8[%c0_72, %c408], %193 {strides = array<i32>} : memref<8x1158xf32, #tpu.memory_space<vmem>>, vector<8x34xf32>,
    %195 = vector.extract_strided_slice %15 {offsets = [6, 0], sizes = [1, 34], strides = [1, 1]} : vector<16x34xf32> to vector<1x34xf32>
    %196 = vector.extract_strided_slice %32 {offsets = [6, 0], sizes = [1, 34], strides = [1, 1]} : vector<16x34xf32> to vector<1x34xf32>
    %197 = vector.extract_strided_slice %49 {offsets = [6, 0], sizes = [1, 34], strides = [1, 1]} : vector<16x34xf32> to vector<1x34xf32>
    %198 = vector.extract_strided_slice %66 {offsets = [6, 0], sizes = [1, 34], strides = [1, 1]} : vector<16x34xf32> to vector<1x34xf32>
    %c0_73 = arith.constant 0 : index
    %c0_74 = arith.constant 0 : index
    %c12 = arith.constant 12 : index
    %c0_75 = arith.constant 0 : index
    %199 = vector.load %arg2[%c0_73, %c0_74, %c12, %c0_75] : memref<1x4x32x32xbf16, #tpu.memory_space<vmem>>, vector<1x4x1x32xbf16>
    %200 = vector.shape_cast %199 : vector<1x4x1x32xbf16> to vector<4x32xbf16>
    %201 = arith.extf %200 : vector<4x32xbf16> to vector<4x32xf32>
    %202 = tpu.concatenate %74, %201, %74 in 1 : vector<4x1xf32>, vector<4x32xf32>, vector<4x1xf32> -> vector<4x34xf32>
    %203 = tpu.concatenate %195, %196, %197, %198, %202 in 0 : vector<1x34xf32>, vector<1x34xf32>, vector<1x34xf32>, vector<1x34xf32>, vector<4x34xf32> -> vector<8x34xf32>
    %c0_76 = arith.constant 0 : index
    %c442 = arith.constant 442 : index
    %204 = vector.load %arg8[%c0_76, %c442] : memref<8x1158xf32, #tpu.memory_space<vmem>>, vector<8x34xf32>
    tpu.vector_store %arg8[%c0_76, %c442], %203 {strides = array<i32>} : memref<8x1158xf32, #tpu.memory_space<vmem>>, vector<8x34xf32>,
    %205 = vector.extract_strided_slice %20 {offsets = [6, 0], sizes = [1, 34], strides = [1, 1]} : vector<16x34xf32> to vector<1x34xf32>
    %206 = vector.extract_strided_slice %37 {offsets = [6, 0], sizes = [1, 34], strides = [1, 1]} : vector<16x34xf32> to vector<1x34xf32>
    %207 = vector.extract_strided_slice %54 {offsets = [6, 0], sizes = [1, 34], strides = [1, 1]} : vector<16x34xf32> to vector<1x34xf32>
    %208 = vector.extract_strided_slice %71 {offsets = [6, 0], sizes = [1, 34], strides = [1, 1]} : vector<16x34xf32> to vector<1x34xf32>
    %c0_77 = arith.constant 0 : index
    %c0_78 = arith.constant 0 : index
    %c13 = arith.constant 13 : index
    %c0_79 = arith.constant 0 : index
    %209 = vector.load %arg2[%c0_77, %c0_78, %c13, %c0_79] : memref<1x4x32x32xbf16, #tpu.memory_space<vmem>>, vector<1x4x1x32xbf16>
    %210 = vector.shape_cast %209 : vector<1x4x1x32xbf16> to vector<4x32xbf16>
    %211 = arith.extf %210 : vector<4x32xbf16> to vector<4x32xf32>
    %212 = tpu.concatenate %74, %211, %74 in 1 : vector<4x1xf32>, vector<4x32xf32>, vector<4x1xf32> -> vector<4x34xf32>
    %213 = tpu.concatenate %205, %206, %207, %208, %212 in 0 : vector<1x34xf32>, vector<1x34xf32>, vector<1x34xf32>, vector<1x34xf32>, vector<4x34xf32> -> vector<8x34xf32>
    %c0_80 = arith.constant 0 : index
    %c476 = arith.constant 476 : index
    %214 = vector.load %arg8[%c0_80, %c476] : memref<8x1158xf32, #tpu.memory_space<vmem>>, vector<8x34xf32>
    tpu.vector_store %arg8[%c0_80, %c476], %213 {strides = array<i32>} : memref<8x1158xf32, #tpu.memory_space<vmem>>, vector<8x34xf32>,
    %215 = vector.extract_strided_slice %15 {offsets = [7, 0], sizes = [1, 34], strides = [1, 1]} : vector<16x34xf32> to vector<1x34xf32>
    %216 = vector.extract_strided_slice %32 {offsets = [7, 0], sizes = [1, 34], strides = [1, 1]} : vector<16x34xf32> to vector<1x34xf32>
    %217 = vector.extract_strided_slice %49 {offsets = [7, 0], sizes = [1, 34], strides = [1, 1]} : vector<16x34xf32> to vector<1x34xf32>
    %218 = vector.extract_strided_slice %66 {offsets = [7, 0], sizes = [1, 34], strides = [1, 1]} : vector<16x34xf32> to vector<1x34xf32>
    %c0_81 = arith.constant 0 : index
    %c0_82 = arith.constant 0 : index
    %c14 = arith.constant 14 : index
    %c0_83 = arith.constant 0 : index
    %219 = vector.load %arg2[%c0_81, %c0_82, %c14, %c0_83] : memref<1x4x32x32xbf16, #tpu.memory_space<vmem>>, vector<1x4x1x32xbf16>
    %220 = vector.shape_cast %219 : vector<1x4x1x32xbf16> to vector<4x32xbf16>
    %221 = arith.extf %220 : vector<4x32xbf16> to vector<4x32xf32>
    %222 = tpu.concatenate %74, %221, %74 in 1 : vector<4x1xf32>, vector<4x32xf32>, vector<4x1xf32> -> vector<4x34xf32>
    %223 = tpu.concatenate %215, %216, %217, %218, %222 in 0 : vector<1x34xf32>, vector<1x34xf32>, vector<1x34xf32>, vector<1x34xf32>, vector<4x34xf32> -> vector<8x34xf32>
    %c0_84 = arith.constant 0 : index
    %c510 = arith.constant 510 : index
    %224 = vector.load %arg8[%c0_84, %c510] : memref<8x1158xf32, #tpu.memory_space<vmem>>, vector<8x34xf32>
    tpu.vector_store %arg8[%c0_84, %c510], %223 {strides = array<i32>} : memref<8x1158xf32, #tpu.memory_space<vmem>>, vector<8x34xf32>,
    %225 = vector.extract_strided_slice %20 {offsets = [7, 0], sizes = [1, 34], strides = [1, 1]} : vector<16x34xf32> to vector<1x34xf32>
    %226 = vector.extract_strided_slice %37 {offsets = [7, 0], sizes = [1, 34], strides = [1, 1]} : vector<16x34xf32> to vector<1x34xf32>
    %227 = vector.extract_strided_slice %54 {offsets = [7, 0], sizes = [1, 34], strides = [1, 1]} : vector<16x34xf32> to vector<1x34xf32>
    %228 = vector.extract_strided_slice %71 {offsets = [7, 0], sizes = [1, 34], strides = [1, 1]} : vector<16x34xf32> to vector<1x34xf32>
    %c0_85 = arith.constant 0 : index
    %c0_86 = arith.constant 0 : index
    %c15 = arith.constant 15 : index
    %c0_87 = arith.constant 0 : index
    %229 = vector.load %arg2[%c0_85, %c0_86, %c15, %c0_87] : memref<1x4x32x32xbf16, #tpu.memory_space<vmem>>, vector<1x4x1x32xbf16>
    %230 = vector.shape_cast %229 : vector<1x4x1x32xbf16> to vector<4x32xbf16>
    %231 = arith.extf %230 : vector<4x32xbf16> to vector<4x32xf32>
    %232 = tpu.concatenate %74, %231, %74 in 1 : vector<4x1xf32>, vector<4x32xf32>, vector<4x1xf32> -> vector<4x34xf32>
    %233 = tpu.concatenate %225, %226, %227, %228, %232 in 0 : vector<1x34xf32>, vector<1x34xf32>, vector<1x34xf32>, vector<1x34xf32>, vector<4x34xf32> -> vector<8x34xf32>
    %c0_88 = arith.constant 0 : index
    %c544 = arith.constant 544 : index
    %234 = vector.load %arg8[%c0_88, %c544] : memref<8x1158xf32, #tpu.memory_space<vmem>>, vector<8x34xf32>
    tpu.vector_store %arg8[%c0_88, %c544], %233 {strides = array<i32>} : memref<8x1158xf32, #tpu.memory_space<vmem>>, vector<8x34xf32>,
    %235 = vector.extract_strided_slice %15 {offsets = [8, 0], sizes = [1, 34], strides = [1, 1]} : vector<16x34xf32> to vector<1x34xf32>
    %236 = vector.extract_strided_slice %32 {offsets = [8, 0], sizes = [1, 34], strides = [1, 1]} : vector<16x34xf32> to vector<1x34xf32>
    %237 = vector.extract_strided_slice %49 {offsets = [8, 0], sizes = [1, 34], strides = [1, 1]} : vector<16x34xf32> to vector<1x34xf32>
    %238 = vector.extract_strided_slice %66 {offsets = [8, 0], sizes = [1, 34], strides = [1, 1]} : vector<16x34xf32> to vector<1x34xf32>
    %c0_89 = arith.constant 0 : index
    %c0_90 = arith.constant 0 : index
    %c16 = arith.constant 16 : index
    %c0_91 = arith.constant 0 : index
    %239 = vector.load %arg2[%c0_89, %c0_90, %c16, %c0_91] : memref<1x4x32x32xbf16, #tpu.memory_space<vmem>>, vector<1x4x1x32xbf16>
    %240 = vector.shape_cast %239 : vector<1x4x1x32xbf16> to vector<4x32xbf16>
    %241 = arith.extf %240 : vector<4x32xbf16> to vector<4x32xf32>
    %242 = tpu.concatenate %74, %241, %74 in 1 : vector<4x1xf32>, vector<4x32xf32>, vector<4x1xf32> -> vector<4x34xf32>
    %243 = tpu.concatenate %235, %236, %237, %238, %242 in 0 : vector<1x34xf32>, vector<1x34xf32>, vector<1x34xf32>, vector<1x34xf32>, vector<4x34xf32> -> vector<8x34xf32>
    %c0_92 = arith.constant 0 : index
    %c578 = arith.constant 578 : index
    %244 = vector.load %arg8[%c0_92, %c578] : memref<8x1158xf32, #tpu.memory_space<vmem>>, vector<8x34xf32>
    tpu.vector_store %arg8[%c0_92, %c578], %243 {strides = array<i32>} : memref<8x1158xf32, #tpu.memory_space<vmem>>, vector<8x34xf32>,
    %245 = vector.extract_strided_slice %20 {offsets = [8, 0], sizes = [1, 34], strides = [1, 1]} : vector<16x34xf32> to vector<1x34xf32>
    %246 = vector.extract_strided_slice %37 {offsets = [8, 0], sizes = [1, 34], strides = [1, 1]} : vector<16x34xf32> to vector<1x34xf32>
    %247 = vector.extract_strided_slice %54 {offsets = [8, 0], sizes = [1, 34], strides = [1, 1]} : vector<16x34xf32> to vector<1x34xf32>
    %248 = vector.extract_strided_slice %71 {offsets = [8, 0], sizes = [1, 34], strides = [1, 1]} : vector<16x34xf32> to vector<1x34xf32>
    %c0_93 = arith.constant 0 : index
    %c0_94 = arith.constant 0 : index
    %c17 = arith.constant 17 : index
    %c0_95 = arith.constant 0 : index
    %249 = vector.load %arg2[%c0_93, %c0_94, %c17, %c0_95] : memref<1x4x32x32xbf16, #tpu.memory_space<vmem>>, vector<1x4x1x32xbf16>
    %250 = vector.shape_cast %249 : vector<1x4x1x32xbf16> to vector<4x32xbf16>
    %251 = arith.extf %250 : vector<4x32xbf16> to vector<4x32xf32>
    %252 = tpu.concatenate %74, %251, %74 in 1 : vector<4x1xf32>, vector<4x32xf32>, vector<4x1xf32> -> vector<4x34xf32>
    %253 = tpu.concatenate %245, %246, %247, %248, %252 in 0 : vector<1x34xf32>, vector<1x34xf32>, vector<1x34xf32>, vector<1x34xf32>, vector<4x34xf32> -> vector<8x34xf32>
    %c0_96 = arith.constant 0 : index
    %c612 = arith.constant 612 : index
    %254 = vector.load %arg8[%c0_96, %c612] : memref<8x1158xf32, #tpu.memory_space<vmem>>, vector<8x34xf32>
    tpu.vector_store %arg8[%c0_96, %c612], %253 {strides = array<i32>} : memref<8x1158xf32, #tpu.memory_space<vmem>>, vector<8x34xf32>,
    %255 = vector.extract_strided_slice %15 {offsets = [9, 0], sizes = [1, 34], strides = [1, 1]} : vector<16x34xf32> to vector<1x34xf32>
    %256 = vector.extract_strided_slice %32 {offsets = [9, 0], sizes = [1, 34], strides = [1, 1]} : vector<16x34xf32> to vector<1x34xf32>
    %257 = vector.extract_strided_slice %49 {offsets = [9, 0], sizes = [1, 34], strides = [1, 1]} : vector<16x34xf32> to vector<1x34xf32>
    %258 = vector.extract_strided_slice %66 {offsets = [9, 0], sizes = [1, 34], strides = [1, 1]} : vector<16x34xf32> to vector<1x34xf32>
    %c0_97 = arith.constant 0 : index
    %c0_98 = arith.constant 0 : index
    %c18 = arith.constant 18 : index
    %c0_99 = arith.constant 0 : index
    %259 = vector.load %arg2[%c0_97, %c0_98, %c18, %c0_99] : memref<1x4x32x32xbf16, #tpu.memory_space<vmem>>, vector<1x4x1x32xbf16>
    %260 = vector.shape_cast %259 : vector<1x4x1x32xbf16> to vector<4x32xbf16>
    %261 = arith.extf %260 : vector<4x32xbf16> to vector<4x32xf32>
    %262 = tpu.concatenate %74, %261, %74 in 1 : vector<4x1xf32>, vector<4x32xf32>, vector<4x1xf32> -> vector<4x34xf32>
    %263 = tpu.concatenate %255, %256, %257, %258, %262 in 0 : vector<1x34xf32>, vector<1x34xf32>, vector<1x34xf32>, vector<1x34xf32>, vector<4x34xf32> -> vector<8x34xf32>
    %c0_100 = arith.constant 0 : index
    %c646 = arith.constant 646 : index
    %264 = vector.load %arg8[%c0_100, %c646] : memref<8x1158xf32, #tpu.memory_space<vmem>>, vector<8x34xf32>
    tpu.vector_store %arg8[%c0_100, %c646], %263 {strides = array<i32>} : memref<8x1158xf32, #tpu.memory_space<vmem>>, vector<8x34xf32>,
    %265 = vector.extract_strided_slice %20 {offsets = [9, 0], sizes = [1, 34], strides = [1, 1]} : vector<16x34xf32> to vector<1x34xf32>
    %266 = vector.extract_strided_slice %37 {offsets = [9, 0], sizes = [1, 34], strides = [1, 1]} : vector<16x34xf32> to vector<1x34xf32>
    %267 = vector.extract_strided_slice %54 {offsets = [9, 0], sizes = [1, 34], strides = [1, 1]} : vector<16x34xf32> to vector<1x34xf32>
    %268 = vector.extract_strided_slice %71 {offsets = [9, 0], sizes = [1, 34], strides = [1, 1]} : vector<16x34xf32> to vector<1x34xf32>
    %c0_101 = arith.constant 0 : index
    %c0_102 = arith.constant 0 : index
    %c19 = arith.constant 19 : index
    %c0_103 = arith.constant 0 : index
    %269 = vector.load %arg2[%c0_101, %c0_102, %c19, %c0_103] : memref<1x4x32x32xbf16, #tpu.memory_space<vmem>>, vector<1x4x1x32xbf16>
    %270 = vector.shape_cast %269 : vector<1x4x1x32xbf16> to vector<4x32xbf16>
    %271 = arith.extf %270 : vector<4x32xbf16> to vector<4x32xf32>
    %272 = tpu.concatenate %74, %271, %74 in 1 : vector<4x1xf32>, vector<4x32xf32>, vector<4x1xf32> -> vector<4x34xf32>
    %273 = tpu.concatenate %265, %266, %267, %268, %272 in 0 : vector<1x34xf32>, vector<1x34xf32>, vector<1x34xf32>, vector<1x34xf32>, vector<4x34xf32> -> vector<8x34xf32>
    %c0_104 = arith.constant 0 : index
    %c680 = arith.constant 680 : index
    %274 = vector.load %arg8[%c0_104, %c680] : memref<8x1158xf32, #tpu.memory_space<vmem>>, vector<8x34xf32>
    tpu.vector_store %arg8[%c0_104, %c680], %273 {strides = array<i32>} : memref<8x1158xf32, #tpu.memory_space<vmem>>, vector<8x34xf32>,
    %275 = vector.extract_strided_slice %15 {offsets = [10, 0], sizes = [1, 34], strides = [1, 1]} : vector<16x34xf32> to vector<1x34xf32>
    %276 = vector.extract_strided_slice %32 {offsets = [10, 0], sizes = [1, 34], strides = [1, 1]} : vector<16x34xf32> to vector<1x34xf32>
    %277 = vector.extract_strided_slice %49 {offsets = [10, 0], sizes = [1, 34], strides = [1, 1]} : vector<16x34xf32> to vector<1x34xf32>
    %278 = vector.extract_strided_slice %66 {offsets = [10, 0], sizes = [1, 34], strides = [1, 1]} : vector<16x34xf32> to vector<1x34xf32>
    %c0_105 = arith.constant 0 : index
    %c0_106 = arith.constant 0 : index
    %c20 = arith.constant 20 : index
    %c0_107 = arith.constant 0 : index
    %279 = vector.load %arg2[%c0_105, %c0_106, %c20, %c0_107] : memref<1x4x32x32xbf16, #tpu.memory_space<vmem>>, vector<1x4x1x32xbf16>
    %280 = vector.shape_cast %279 : vector<1x4x1x32xbf16> to vector<4x32xbf16>
    %281 = arith.extf %280 : vector<4x32xbf16> to vector<4x32xf32>
    %282 = tpu.concatenate %74, %281, %74 in 1 : vector<4x1xf32>, vector<4x32xf32>, vector<4x1xf32> -> vector<4x34xf32>
    %283 = tpu.concatenate %275, %276, %277, %278, %282 in 0 : vector<1x34xf32>, vector<1x34xf32>, vector<1x34xf32>, vector<1x34xf32>, vector<4x34xf32> -> vector<8x34xf32>
    %c0_108 = arith.constant 0 : index
    %c714 = arith.constant 714 : index
    %284 = vector.load %arg8[%c0_108, %c714] : memref<8x1158xf32, #tpu.memory_space<vmem>>, vector<8x34xf32>
    tpu.vector_store %arg8[%c0_108, %c714], %283 {strides = array<i32>} : memref<8x1158xf32, #tpu.memory_space<vmem>>, vector<8x34xf32>,
    %285 = vector.extract_strided_slice %20 {offsets = [10, 0], sizes = [1, 34], strides = [1, 1]} : vector<16x34xf32> to vector<1x34xf32>
    %286 = vector.extract_strided_slice %37 {offsets = [10, 0], sizes = [1, 34], strides = [1, 1]} : vector<16x34xf32> to vector<1x34xf32>
    %287 = vector.extract_strided_slice %54 {offsets = [10, 0], sizes = [1, 34], strides = [1, 1]} : vector<16x34xf32> to vector<1x34xf32>
    %288 = vector.extract_strided_slice %71 {offsets = [10, 0], sizes = [1, 34], strides = [1, 1]} : vector<16x34xf32> to vector<1x34xf32>
    %c0_109 = arith.constant 0 : index
    %c0_110 = arith.constant 0 : index
    %c21 = arith.constant 21 : index
    %c0_111 = arith.constant 0 : index
    %289 = vector.load %arg2[%c0_109, %c0_110, %c21, %c0_111] : memref<1x4x32x32xbf16, #tpu.memory_space<vmem>>, vector<1x4x1x32xbf16>
    %290 = vector.shape_cast %289 : vector<1x4x1x32xbf16> to vector<4x32xbf16>
    %291 = arith.extf %290 : vector<4x32xbf16> to vector<4x32xf32>
    %292 = tpu.concatenate %74, %291, %74 in 1 : vector<4x1xf32>, vector<4x32xf32>, vector<4x1xf32> -> vector<4x34xf32>
    %293 = tpu.concatenate %285, %286, %287, %288, %292 in 0 : vector<1x34xf32>, vector<1x34xf32>, vector<1x34xf32>, vector<1x34xf32>, vector<4x34xf32> -> vector<8x34xf32>
    %c0_112 = arith.constant 0 : index
    %c748 = arith.constant 748 : index
    %294 = vector.load %arg8[%c0_112, %c748] : memref<8x1158xf32, #tpu.memory_space<vmem>>, vector<8x34xf32>
    tpu.vector_store %arg8[%c0_112, %c748], %293 {strides = array<i32>} : memref<8x1158xf32, #tpu.memory_space<vmem>>, vector<8x34xf32>,
    %295 = vector.extract_strided_slice %15 {offsets = [11, 0], sizes = [1, 34], strides = [1, 1]} : vector<16x34xf32> to vector<1x34xf32>
    %296 = vector.extract_strided_slice %32 {offsets = [11, 0], sizes = [1, 34], strides = [1, 1]} : vector<16x34xf32> to vector<1x34xf32>
    %297 = vector.extract_strided_slice %49 {offsets = [11, 0], sizes = [1, 34], strides = [1, 1]} : vector<16x34xf32> to vector<1x34xf32>
    %298 = vector.extract_strided_slice %66 {offsets = [11, 0], sizes = [1, 34], strides = [1, 1]} : vector<16x34xf32> to vector<1x34xf32>
    %c0_113 = arith.constant 0 : index
    %c0_114 = arith.constant 0 : index
    %c22 = arith.constant 22 : index
    %c0_115 = arith.constant 0 : index
    %299 = vector.load %arg2[%c0_113, %c0_114, %c22, %c0_115] : memref<1x4x32x32xbf16, #tpu.memory_space<vmem>>, vector<1x4x1x32xbf16>
    %300 = vector.shape_cast %299 : vector<1x4x1x32xbf16> to vector<4x32xbf16>
    %301 = arith.extf %300 : vector<4x32xbf16> to vector<4x32xf32>
    %302 = tpu.concatenate %74, %301, %74 in 1 : vector<4x1xf32>, vector<4x32xf32>, vector<4x1xf32> -> vector<4x34xf32>
    %303 = tpu.concatenate %295, %296, %297, %298, %302 in 0 : vector<1x34xf32>, vector<1x34xf32>, vector<1x34xf32>, vector<1x34xf32>, vector<4x34xf32> -> vector<8x34xf32>
    %c0_116 = arith.constant 0 : index
    %c782 = arith.constant 782 : index
    %304 = vector.load %arg8[%c0_116, %c782] : memref<8x1158xf32, #tpu.memory_space<vmem>>, vector<8x34xf32>
    tpu.vector_store %arg8[%c0_116, %c782], %303 {strides = array<i32>} : memref<8x1158xf32, #tpu.memory_space<vmem>>, vector<8x34xf32>,
    %305 = vector.extract_strided_slice %20 {offsets = [11, 0], sizes = [1, 34], strides = [1, 1]} : vector<16x34xf32> to vector<1x34xf32>
    %306 = vector.extract_strided_slice %37 {offsets = [11, 0], sizes = [1, 34], strides = [1, 1]} : vector<16x34xf32> to vector<1x34xf32>
    %307 = vector.extract_strided_slice %54 {offsets = [11, 0], sizes = [1, 34], strides = [1, 1]} : vector<16x34xf32> to vector<1x34xf32>
    %308 = vector.extract_strided_slice %71 {offsets = [11, 0], sizes = [1, 34], strides = [1, 1]} : vector<16x34xf32> to vector<1x34xf32>
    %c0_117 = arith.constant 0 : index
    %c0_118 = arith.constant 0 : index
    %c23 = arith.constant 23 : index
    %c0_119 = arith.constant 0 : index
    %309 = vector.load %arg2[%c0_117, %c0_118, %c23, %c0_119] : memref<1x4x32x32xbf16, #tpu.memory_space<vmem>>, vector<1x4x1x32xbf16>
    %310 = vector.shape_cast %309 : vector<1x4x1x32xbf16> to vector<4x32xbf16>
    %311 = arith.extf %310 : vector<4x32xbf16> to vector<4x32xf32>
    %312 = tpu.concatenate %74, %311, %74 in 1 : vector<4x1xf32>, vector<4x32xf32>, vector<4x1xf32> -> vector<4x34xf32>
    %313 = tpu.concatenate %305, %306, %307, %308, %312 in 0 : vector<1x34xf32>, vector<1x34xf32>, vector<1x34xf32>, vector<1x34xf32>, vector<4x34xf32> -> vector<8x34xf32>
    %c0_120 = arith.constant 0 : index
    %c816 = arith.constant 816 : index
    %314 = vector.load %arg8[%c0_120, %c816] : memref<8x1158xf32, #tpu.memory_space<vmem>>, vector<8x34xf32>
    tpu.vector_store %arg8[%c0_120, %c816], %313 {strides = array<i32>} : memref<8x1158xf32, #tpu.memory_space<vmem>>, vector<8x34xf32>,
    %315 = vector.extract_strided_slice %15 {offsets = [12, 0], sizes = [1, 34], strides = [1, 1]} : vector<16x34xf32> to vector<1x34xf32>
    %316 = vector.extract_strided_slice %32 {offsets = [12, 0], sizes = [1, 34], strides = [1, 1]} : vector<16x34xf32> to vector<1x34xf32>
    %317 = vector.extract_strided_slice %49 {offsets = [12, 0], sizes = [1, 34], strides = [1, 1]} : vector<16x34xf32> to vector<1x34xf32>
    %318 = vector.extract_strided_slice %66 {offsets = [12, 0], sizes = [1, 34], strides = [1, 1]} : vector<16x34xf32> to vector<1x34xf32>
    %c0_121 = arith.constant 0 : index
    %c0_122 = arith.constant 0 : index
    %c24 = arith.constant 24 : index
    %c0_123 = arith.constant 0 : index
    %319 = vector.load %arg2[%c0_121, %c0_122, %c24, %c0_123] : memref<1x4x32x32xbf16, #tpu.memory_space<vmem>>, vector<1x4x1x32xbf16>
    %320 = vector.shape_cast %319 : vector<1x4x1x32xbf16> to vector<4x32xbf16>
    %321 = arith.extf %320 : vector<4x32xbf16> to vector<4x32xf32>
    %322 = tpu.concatenate %74, %321, %74 in 1 : vector<4x1xf32>, vector<4x32xf32>, vector<4x1xf32> -> vector<4x34xf32>
    %323 = tpu.concatenate %315, %316, %317, %318, %322 in 0 : vector<1x34xf32>, vector<1x34xf32>, vector<1x34xf32>, vector<1x34xf32>, vector<4x34xf32> -> vector<8x34xf32>
    %c0_124 = arith.constant 0 : index
    %c850 = arith.constant 850 : index
    %324 = vector.load %arg8[%c0_124, %c850] : memref<8x1158xf32, #tpu.memory_space<vmem>>, vector<8x34xf32>
    tpu.vector_store %arg8[%c0_124, %c850], %323 {strides = array<i32>} : memref<8x1158xf32, #tpu.memory_space<vmem>>, vector<8x34xf32>,
    %325 = vector.extract_strided_slice %20 {offsets = [12, 0], sizes = [1, 34], strides = [1, 1]} : vector<16x34xf32> to vector<1x34xf32>
    %326 = vector.extract_strided_slice %37 {offsets = [12, 0], sizes = [1, 34], strides = [1, 1]} : vector<16x34xf32> to vector<1x34xf32>
    %327 = vector.extract_strided_slice %54 {offsets = [12, 0], sizes = [1, 34], strides = [1, 1]} : vector<16x34xf32> to vector<1x34xf32>
    %328 = vector.extract_strided_slice %71 {offsets = [12, 0], sizes = [1, 34], strides = [1, 1]} : vector<16x34xf32> to vector<1x34xf32>
    %c0_125 = arith.constant 0 : index
    %c0_126 = arith.constant 0 : index
    %c25 = arith.constant 25 : index
    %c0_127 = arith.constant 0 : index
    %329 = vector.load %arg2[%c0_125, %c0_126, %c25, %c0_127] : memref<1x4x32x32xbf16, #tpu.memory_space<vmem>>, vector<1x4x1x32xbf16>
    %330 = vector.shape_cast %329 : vector<1x4x1x32xbf16> to vector<4x32xbf16>
    %331 = arith.extf %330 : vector<4x32xbf16> to vector<4x32xf32>
    %332 = tpu.concatenate %74, %331, %74 in 1 : vector<4x1xf32>, vector<4x32xf32>, vector<4x1xf32> -> vector<4x34xf32>
    %333 = tpu.concatenate %325, %326, %327, %328, %332 in 0 : vector<1x34xf32>, vector<1x34xf32>, vector<1x34xf32>, vector<1x34xf32>, vector<4x34xf32> -> vector<8x34xf32>
    %c0_128 = arith.constant 0 : index
    %c884 = arith.constant 884 : index
    %334 = vector.load %arg8[%c0_128, %c884] : memref<8x1158xf32, #tpu.memory_space<vmem>>, vector<8x34xf32>
    tpu.vector_store %arg8[%c0_128, %c884], %333 {strides = array<i32>} : memref<8x1158xf32, #tpu.memory_space<vmem>>, vector<8x34xf32>,
    %335 = vector.extract_strided_slice %15 {offsets = [13, 0], sizes = [1, 34], strides = [1, 1]} : vector<16x34xf32> to vector<1x34xf32>
    %336 = vector.extract_strided_slice %32 {offsets = [13, 0], sizes = [1, 34], strides = [1, 1]} : vector<16x34xf32> to vector<1x34xf32>
    %337 = vector.extract_strided_slice %49 {offsets = [13, 0], sizes = [1, 34], strides = [1, 1]} : vector<16x34xf32> to vector<1x34xf32>
    %338 = vector.extract_strided_slice %66 {offsets = [13, 0], sizes = [1, 34], strides = [1, 1]} : vector<16x34xf32> to vector<1x34xf32>
    %c0_129 = arith.constant 0 : index
    %c0_130 = arith.constant 0 : index
    %c26 = arith.constant 26 : index
    %c0_131 = arith.constant 0 : index
    %339 = vector.load %arg2[%c0_129, %c0_130, %c26, %c0_131] : memref<1x4x32x32xbf16, #tpu.memory_space<vmem>>, vector<1x4x1x32xbf16>
    %340 = vector.shape_cast %339 : vector<1x4x1x32xbf16> to vector<4x32xbf16>
    %341 = arith.extf %340 : vector<4x32xbf16> to vector<4x32xf32>
    %342 = tpu.concatenate %74, %341, %74 in 1 : vector<4x1xf32>, vector<4x32xf32>, vector<4x1xf32> -> vector<4x34xf32>
    %343 = tpu.concatenate %335, %336, %337, %338, %342 in 0 : vector<1x34xf32>, vector<1x34xf32>, vector<1x34xf32>, vector<1x34xf32>, vector<4x34xf32> -> vector<8x34xf32>
    %c0_132 = arith.constant 0 : index
    %c918 = arith.constant 918 : index
    %344 = vector.load %arg8[%c0_132, %c918] : memref<8x1158xf32, #tpu.memory_space<vmem>>, vector<8x34xf32>
    tpu.vector_store %arg8[%c0_132, %c918], %343 {strides = array<i32>} : memref<8x1158xf32, #tpu.memory_space<vmem>>, vector<8x34xf32>,
    %345 = vector.extract_strided_slice %20 {offsets = [13, 0], sizes = [1, 34], strides = [1, 1]} : vector<16x34xf32> to vector<1x34xf32>
    %346 = vector.extract_strided_slice %37 {offsets = [13, 0], sizes = [1, 34], strides = [1, 1]} : vector<16x34xf32> to vector<1x34xf32>
    %347 = vector.extract_strided_slice %54 {offsets = [13, 0], sizes = [1, 34], strides = [1, 1]} : vector<16x34xf32> to vector<1x34xf32>
    %348 = vector.extract_strided_slice %71 {offsets = [13, 0], sizes = [1, 34], strides = [1, 1]} : vector<16x34xf32> to vector<1x34xf32>
    %c0_133 = arith.constant 0 : index
    %c0_134 = arith.constant 0 : index
    %c27 = arith.constant 27 : index
    %c0_135 = arith.constant 0 : index
    %349 = vector.load %arg2[%c0_133, %c0_134, %c27, %c0_135] : memref<1x4x32x32xbf16, #tpu.memory_space<vmem>>, vector<1x4x1x32xbf16>
    %350 = vector.shape_cast %349 : vector<1x4x1x32xbf16> to vector<4x32xbf16>
    %351 = arith.extf %350 : vector<4x32xbf16> to vector<4x32xf32>
    %352 = tpu.concatenate %74, %351, %74 in 1 : vector<4x1xf32>, vector<4x32xf32>, vector<4x1xf32> -> vector<4x34xf32>
    %353 = tpu.concatenate %345, %346, %347, %348, %352 in 0 : vector<1x34xf32>, vector<1x34xf32>, vector<1x34xf32>, vector<1x34xf32>, vector<4x34xf32> -> vector<8x34xf32>
    %c0_136 = arith.constant 0 : index
    %c952 = arith.constant 952 : index
    %354 = vector.load %arg8[%c0_136, %c952] : memref<8x1158xf32, #tpu.memory_space<vmem>>, vector<8x34xf32>
    tpu.vector_store %arg8[%c0_136, %c952], %353 {strides = array<i32>} : memref<8x1158xf32, #tpu.memory_space<vmem>>, vector<8x34xf32>,
    %355 = vector.extract_strided_slice %15 {offsets = [14, 0], sizes = [1, 34], strides = [1, 1]} : vector<16x34xf32> to vector<1x34xf32>
    %356 = vector.extract_strided_slice %32 {offsets = [14, 0], sizes = [1, 34], strides = [1, 1]} : vector<16x34xf32> to vector<1x34xf32>
    %357 = vector.extract_strided_slice %49 {offsets = [14, 0], sizes = [1, 34], strides = [1, 1]} : vector<16x34xf32> to vector<1x34xf32>
    %358 = vector.extract_strided_slice %66 {offsets = [14, 0], sizes = [1, 34], strides = [1, 1]} : vector<16x34xf32> to vector<1x34xf32>
    %c0_137 = arith.constant 0 : index
    %c0_138 = arith.constant 0 : index
    %c28 = arith.constant 28 : index
    %c0_139 = arith.constant 0 : index
    %359 = vector.load %arg2[%c0_137, %c0_138, %c28, %c0_139] : memref<1x4x32x32xbf16, #tpu.memory_space<vmem>>, vector<1x4x1x32xbf16>
    %360 = vector.shape_cast %359 : vector<1x4x1x32xbf16> to vector<4x32xbf16>
    %361 = arith.extf %360 : vector<4x32xbf16> to vector<4x32xf32>
    %362 = tpu.concatenate %74, %361, %74 in 1 : vector<4x1xf32>, vector<4x32xf32>, vector<4x1xf32> -> vector<4x34xf32>
    %363 = tpu.concatenate %355, %356, %357, %358, %362 in 0 : vector<1x34xf32>, vector<1x34xf32>, vector<1x34xf32>, vector<1x34xf32>, vector<4x34xf32> -> vector<8x34xf32>
    %c0_140 = arith.constant 0 : index
    %c986 = arith.constant 986 : index
    %364 = vector.load %arg8[%c0_140, %c986] : memref<8x1158xf32, #tpu.memory_space<vmem>>, vector<8x34xf32>
    tpu.vector_store %arg8[%c0_140, %c986], %363 {strides = array<i32>} : memref<8x1158xf32, #tpu.memory_space<vmem>>, vector<8x34xf32>,
    %365 = vector.extract_strided_slice %20 {offsets = [14, 0], sizes = [1, 34], strides = [1, 1]} : vector<16x34xf32> to vector<1x34xf32>
    %366 = vector.extract_strided_slice %37 {offsets = [14, 0], sizes = [1, 34], strides = [1, 1]} : vector<16x34xf32> to vector<1x34xf32>
    %367 = vector.extract_strided_slice %54 {offsets = [14, 0], sizes = [1, 34], strides = [1, 1]} : vector<16x34xf32> to vector<1x34xf32>
    %368 = vector.extract_strided_slice %71 {offsets = [14, 0], sizes = [1, 34], strides = [1, 1]} : vector<16x34xf32> to vector<1x34xf32>
    %c0_141 = arith.constant 0 : index
    %c0_142 = arith.constant 0 : index
    %c29 = arith.constant 29 : index
    %c0_143 = arith.constant 0 : index
    %369 = vector.load %arg2[%c0_141, %c0_142, %c29, %c0_143] : memref<1x4x32x32xbf16, #tpu.memory_space<vmem>>, vector<1x4x1x32xbf16>
    %370 = vector.shape_cast %369 : vector<1x4x1x32xbf16> to vector<4x32xbf16>
    %371 = arith.extf %370 : vector<4x32xbf16> to vector<4x32xf32>
    %372 = tpu.concatenate %74, %371, %74 in 1 : vector<4x1xf32>, vector<4x32xf32>, vector<4x1xf32> -> vector<4x34xf32>
    %373 = tpu.concatenate %365, %366, %367, %368, %372 in 0 : vector<1x34xf32>, vector<1x34xf32>, vector<1x34xf32>, vector<1x34xf32>, vector<4x34xf32> -> vector<8x34xf32>
    %c0_144 = arith.constant 0 : index
    %c1020 = arith.constant 1020 : index
    %374 = vector.load %arg8[%c0_144, %c1020] : memref<8x1158xf32, #tpu.memory_space<vmem>>, vector<8x34xf32>
    tpu.vector_store %arg8[%c0_144, %c1020], %373 {strides = array<i32>} : memref<8x1158xf32, #tpu.memory_space<vmem>>, vector<8x34xf32>,
    %375 = vector.extract_strided_slice %15 {offsets = [15, 0], sizes = [1, 34], strides = [1, 1]} : vector<16x34xf32> to vector<1x34xf32>
    %376 = vector.extract_strided_slice %32 {offsets = [15, 0], sizes = [1, 34], strides = [1, 1]} : vector<16x34xf32> to vector<1x34xf32>
    %377 = vector.extract_strided_slice %49 {offsets = [15, 0], sizes = [1, 34], strides = [1, 1]} : vector<16x34xf32> to vector<1x34xf32>
    %378 = vector.extract_strided_slice %66 {offsets = [15, 0], sizes = [1, 34], strides = [1, 1]} : vector<16x34xf32> to vector<1x34xf32>
    %c0_145 = arith.constant 0 : index
    %c0_146 = arith.constant 0 : index
    %c30 = arith.constant 30 : index
    %c0_147 = arith.constant 0 : index
    %379 = vector.load %arg2[%c0_145, %c0_146, %c30, %c0_147] : memref<1x4x32x32xbf16, #tpu.memory_space<vmem>>, vector<1x4x1x32xbf16>
    %380 = vector.shape_cast %379 : vector<1x4x1x32xbf16> to vector<4x32xbf16>
    %381 = arith.extf %380 : vector<4x32xbf16> to vector<4x32xf32>
    %382 = tpu.concatenate %74, %381, %74 in 1 : vector<4x1xf32>, vector<4x32xf32>, vector<4x1xf32> -> vector<4x34xf32>
    %383 = tpu.concatenate %375, %376, %377, %378, %382 in 0 : vector<1x34xf32>, vector<1x34xf32>, vector<1x34xf32>, vector<1x34xf32>, vector<4x34xf32> -> vector<8x34xf32>
    %c0_148 = arith.constant 0 : index
    %c1054 = arith.constant 1054 : index
    %384 = vector.load %arg8[%c0_148, %c1054] : memref<8x1158xf32, #tpu.memory_space<vmem>>, vector<8x34xf32>
    tpu.vector_store %arg8[%c0_148, %c1054], %383 {strides = array<i32>} : memref<8x1158xf32, #tpu.memory_space<vmem>>, vector<8x34xf32>,
    %385 = vector.extract_strided_slice %20 {offsets = [15, 0], sizes = [1, 34], strides = [1, 1]} : vector<16x34xf32> to vector<1x34xf32>
    %386 = vector.extract_strided_slice %37 {offsets = [15, 0], sizes = [1, 34], strides = [1, 1]} : vector<16x34xf32> to vector<1x34xf32>
    %387 = vector.extract_strided_slice %54 {offsets = [15, 0], sizes = [1, 34], strides = [1, 1]} : vector<16x34xf32> to vector<1x34xf32>
    %388 = vector.extract_strided_slice %71 {offsets = [15, 0], sizes = [1, 34], strides = [1, 1]} : vector<16x34xf32> to vector<1x34xf32>
    %c0_149 = arith.constant 0 : index
    %c0_150 = arith.constant 0 : index
    %c31 = arith.constant 31 : index
    %c0_151 = arith.constant 0 : index
    %389 = vector.load %arg2[%c0_149, %c0_150, %c31, %c0_151] : memref<1x4x32x32xbf16, #tpu.memory_space<vmem>>, vector<1x4x1x32xbf16>
    %390 = vector.shape_cast %389 : vector<1x4x1x32xbf16> to vector<4x32xbf16>
    %391 = arith.extf %390 : vector<4x32xbf16> to vector<4x32xf32>
    %392 = tpu.concatenate %74, %391, %74 in 1 : vector<4x1xf32>, vector<4x32xf32>, vector<4x1xf32> -> vector<4x34xf32>
    %393 = tpu.concatenate %385, %386, %387, %388, %392 in 0 : vector<1x34xf32>, vector<1x34xf32>, vector<1x34xf32>, vector<1x34xf32>, vector<4x34xf32> -> vector<8x34xf32>
    %c0_152 = arith.constant 0 : index
    %c1088 = arith.constant 1088 : index
    %394 = vector.load %arg8[%c0_152, %c1088] : memref<8x1158xf32, #tpu.memory_space<vmem>>, vector<8x34xf32>
    tpu.vector_store %arg8[%c0_152, %c1088], %393 {strides = array<i32>} : memref<8x1158xf32, #tpu.memory_space<vmem>>, vector<8x34xf32>,
    %395 = tpu.iota {dimensions = array<i32: 1>} : vector<8x1088xi32>
    %c34_i32 = arith.constant 34 : i32
    %c0_i32 = arith.constant 0 : i32
    %396 = arith.cmpi eq, %c34_i32, %c0_i32 : i32
    %c1_i32 = arith.constant 1 : i32
    %397 = arith.select %396, %c1_i32, %c34_i32 : i32
    %398 = vector.broadcast %397 : i32 to vector<8x1088xi32>
    %399 = arith.remsi %395, %398 : vector<8x1088xi32>
    %c0_i32_153 = arith.constant 0 : i32
    %400 = vector.broadcast %c0_i32_153 : i32 to vector<8x1088xi32>
    %401 = arith.cmpi ne, %399, %400 : vector<8x1088xi32>
    %c0_i32_154 = arith.constant 0 : i32
    %402 = vector.broadcast %c0_i32_154 : i32 to vector<8x1088xi32>
    %403 = arith.cmpi slt, %399, %402 : vector<8x1088xi32>
    %c0_i32_155 = arith.constant 0 : i32
    %404 = arith.cmpi slt, %397, %c0_i32_155 : i32
    %405 = vector.broadcast %404 : i1 to vector<8x1088xi1>
    %406 = vector.broadcast %405 : vector<8x1088xi1> to vector<8x1088xi1>
    %407 = arith.xori %403, %406 : vector<8x1088xi1>
    %408 = arith.andi %407, %401 : vector<8x1088xi1>
    %409 = vector.broadcast %397 : i32 to vector<8x1088xi32>
    %410 = arith.addi %399, %409 : vector<8x1088xi32>
    %411 = arith.select %408, %410, %399 : vector<8x1088xi1>, vector<8x1088xi32>
    %c32_i32 = arith.constant 32 : i32
    %412 = vector.broadcast %c32_i32 : i32 to vector<8x1088xi32>
    %413 = arith.cmpi slt, %411, %412 : vector<8x1088xi32>
    %c0_156 = arith.constant 0 : index
    %c0_157 = arith.constant 0 : index
    %414 = vector.load %arg8[%c0_156, %c0_157] : memref<8x1158xf32, #tpu.memory_space<vmem>>, vector<8x1158xf32>
    %415 = arith.truncf %414 : vector<8x1158xf32> to vector<8x1158xbf16>
    %416 = vector.extract_strided_slice %415 {offsets = [0, 0], sizes = [8, 1088], strides = [1, 1]} : vector<8x1158xbf16> to vector<8x1088xbf16>
    %417 = vector.extract_strided_slice %415 {offsets = [0, 1], sizes = [8, 1088], strides = [1, 1]} : vector<8x1158xbf16> to vector<8x1088xbf16>
    %418 = vector.extract_strided_slice %415 {offsets = [0, 2], sizes = [8, 1088], strides = [1, 1]} : vector<8x1158xbf16> to vector<8x1088xbf16>
    %419 = vector.extract_strided_slice %415 {offsets = [0, 34], sizes = [8, 1088], strides = [1, 1]} : vector<8x1158xbf16> to vector<8x1088xbf16>
    %420 = vector.extract_strided_slice %415 {offsets = [0, 35], sizes = [8, 1088], strides = [1, 1]} : vector<8x1158xbf16> to vector<8x1088xbf16>
    %421 = vector.extract_strided_slice %415 {offsets = [0, 36], sizes = [8, 1088], strides = [1, 1]} : vector<8x1158xbf16> to vector<8x1088xbf16>
    %422 = vector.extract_strided_slice %415 {offsets = [0, 68], sizes = [8, 1088], strides = [1, 1]} : vector<8x1158xbf16> to vector<8x1088xbf16>
    %423 = vector.extract_strided_slice %415 {offsets = [0, 69], sizes = [8, 1088], strides = [1, 1]} : vector<8x1158xbf16> to vector<8x1088xbf16>
    %424 = vector.extract_strided_slice %415 {offsets = [0, 70], sizes = [8, 1088], strides = [1, 1]} : vector<8x1158xbf16> to vector<8x1088xbf16>
    %425 = tpu.concatenate %416, %417, %418, %419, %420, %421, %422, %423, %424 in 0 : vector<8x1088xbf16>, vector<8x1088xbf16>, vector<8x1088xbf16>, vector<8x1088xbf16>, vector<8x1088xbf16>, vector<8x1088xbf16>, vector<8x1088xbf16>, vector<8x1088xbf16>, vector<8x1088xbf16> -> vector<72x1088xbf16>
    %c0_158 = arith.constant 0 : index
    %c0_159 = arith.constant 0 : index
    %426 = vector.load %arg4[%c0_158, %c0_159] : memref<8x72xbf16, #tpu.memory_space<vmem>>, vector<8x72xbf16>
    %cst_160 = arith.constant dense<0.000000e+00> : vector<8x1088xf32>
    %427 = tpu.matmul %426, %425, %cst_160 {dimension_numbers = #tpu.dot_dimension_numbers<[1], [0], [0], [1], [0, 0, 1, 1], [], []>} : vector<8x72xbf16>, vector<72x1088xbf16>, vector<8x1088xf32> -> vector<8x1088xf32>
    %c0_161 = arith.constant 0 : index
    %c0_162 = arith.constant 0 : index
    %428 = vector.load %arg6[%c0_161, %c0_162] : memref<8x6xf32, #tpu.memory_space<vmem>>, vector<8x1xf32>
    %429 = vector.broadcast %428 : vector<8x1xf32> to vector<8x1088xf32>
    %430 = arith.addf %427, %429 : vector<8x1088xf32>
    %cst_163 = arith.constant 0.000000e+00 : f32
    %431 = vector.broadcast %cst_163 : f32 to vector<8x1088xf32>
    %432 = arith.maximumf %430, %431 : vector<8x1088xf32>
    %c0_164 = arith.constant 0 : index
    %c1_165 = arith.constant 1 : index
    %433 = vector.load %arg6[%c0_164, %c1_165] : memref<8x6xf32, #tpu.memory_space<vmem>>, vector<8x1xf32>
    %434 = vector.broadcast %433 : vector<8x1xf32> to vector<8x1088xf32>
    %435 = arith.mulf %432, %434 : vector<8x1088xf32>
    %c0_166 = arith.constant 0 : index
    %c2_167 = arith.constant 2 : index
    %436 = vector.load %arg6[%c0_166, %c2_167] : memref<8x6xf32, #tpu.memory_space<vmem>>, vector<8x1xf32>
    %437 = vector.broadcast %436 : vector<8x1xf32> to vector<8x1088xf32>
    %438 = arith.addf %435, %437 : vector<8x1088xf32>
    %cst_168 = arith.constant 0.000000e+00 : f32
    %439 = vector.broadcast %cst_168 : f32 to vector<8x1088xf32>
    %440 = arith.select %413, %438, %439 : vector<8x1088xi1>, vector<8x1088xf32>
    %cst_169 = arith.constant 0.000000e+00 : f32
    %441 = vector.broadcast %cst_169 : f32 to vector<8x1158xf32>
    %c0_170 = arith.constant 0 : index
    %c0_171 = arith.constant 0 : index
    %442 = vector.load %arg9[%c0_170, %c0_171] : memref<8x1158xf32, #tpu.memory_space<vmem>>, vector<8x1158xf32>
    tpu.vector_store %arg9[%c0_170, %c0_171], %441 {strides = array<i32>} : memref<8x1158xf32, #tpu.memory_space<vmem>>, vector<8x1158xf32>,
    %c0_172 = arith.constant 0 : index
    %c35 = arith.constant 35 : index
    %443 = vector.load %arg9[%c0_172, %c35] : memref<8x1158xf32, #tpu.memory_space<vmem>>, vector<8x1088xf32>
    tpu.vector_store %arg9[%c0_172, %c35], %440 {strides = array<i32>} : memref<8x1158xf32, #tpu.memory_space<vmem>>, vector<8x1088xf32>,
    %c0_173 = arith.constant 0 : index
    %c0_174 = arith.constant 0 : index
    %444 = vector.load %arg9[%c0_173, %c0_174] : memref<8x1158xf32, #tpu.memory_space<vmem>>, vector<8x1158xf32>
    %445 = arith.truncf %444 : vector<8x1158xf32> to vector<8x1158xbf16>
    %446 = vector.extract_strided_slice %445 {offsets = [0, 0], sizes = [8, 1088], strides = [1, 1]} : vector<8x1158xbf16> to vector<8x1088xbf16>
    %447 = vector.extract_strided_slice %445 {offsets = [0, 1], sizes = [8, 1088], strides = [1, 1]} : vector<8x1158xbf16> to vector<8x1088xbf16>
    %448 = vector.extract_strided_slice %445 {offsets = [0, 2], sizes = [8, 1088], strides = [1, 1]} : vector<8x1158xbf16> to vector<8x1088xbf16>
    %449 = vector.extract_strided_slice %445 {offsets = [0, 34], sizes = [8, 1088], strides = [1, 1]} : vector<8x1158xbf16> to vector<8x1088xbf16>
    %450 = vector.extract_strided_slice %445 {offsets = [0, 35], sizes = [8, 1088], strides = [1, 1]} : vector<8x1158xbf16> to vector<8x1088xbf16>
    %451 = vector.extract_strided_slice %445 {offsets = [0, 36], sizes = [8, 1088], strides = [1, 1]} : vector<8x1158xbf16> to vector<8x1088xbf16>
    %452 = vector.extract_strided_slice %445 {offsets = [0, 68], sizes = [8, 1088], strides = [1, 1]} : vector<8x1158xbf16> to vector<8x1088xbf16>
    %453 = vector.extract_strided_slice %445 {offsets = [0, 69], sizes = [8, 1088], strides = [1, 1]} : vector<8x1158xbf16> to vector<8x1088xbf16>
    %454 = vector.extract_strided_slice %445 {offsets = [0, 70], sizes = [8, 1088], strides = [1, 1]} : vector<8x1158xbf16> to vector<8x1088xbf16>
    %455 = tpu.concatenate %446, %447, %448, %449, %450, %451, %452, %453, %454 in 0 : vector<8x1088xbf16>, vector<8x1088xbf16>, vector<8x1088xbf16>, vector<8x1088xbf16>, vector<8x1088xbf16>, vector<8x1088xbf16>, vector<8x1088xbf16>, vector<8x1088xbf16>, vector<8x1088xbf16> -> vector<72x1088xbf16>
    %c0_175 = arith.constant 0 : index
    %c0_176 = arith.constant 0 : index
    %456 = vector.load %arg5[%c0_175, %c0_176] : memref<8x72xbf16, #tpu.memory_space<vmem>>, vector<8x72xbf16>
    %cst_177 = arith.constant dense<0.000000e+00> : vector<8x1088xf32>
    %457 = tpu.matmul %456, %455, %cst_177 {dimension_numbers = #tpu.dot_dimension_numbers<[1], [0], [0], [1], [0, 0, 1, 1], [], []>} : vector<8x72xbf16>, vector<72x1088xbf16>, vector<8x1088xf32> -> vector<8x1088xf32>
    %c0_178 = arith.constant 0 : index
    %c3_179 = arith.constant 3 : index
    %458 = vector.load %arg6[%c0_178, %c3_179] : memref<8x6xf32, #tpu.memory_space<vmem>>, vector<8x1xf32>
    %459 = vector.broadcast %458 : vector<8x1xf32> to vector<8x1088xf32>
    %460 = arith.addf %457, %459 : vector<8x1088xf32>
    %cst_180 = arith.constant 0.000000e+00 : f32
    %461 = vector.broadcast %cst_180 : f32 to vector<8x1088xf32>
    %462 = arith.maximumf %460, %461 : vector<8x1088xf32>
    %c0_181 = arith.constant 0 : index
    %c4_182 = arith.constant 4 : index
    %463 = vector.load %arg6[%c0_181, %c4_182] : memref<8x6xf32, #tpu.memory_space<vmem>>, vector<8x1xf32>
    %464 = vector.broadcast %463 : vector<8x1xf32> to vector<8x1088xf32>
    %465 = arith.mulf %462, %464 : vector<8x1088xf32>
    %c0_183 = arith.constant 0 : index
    %c5_184 = arith.constant 5 : index
    %466 = vector.load %arg6[%c0_183, %c5_184] : memref<8x6xf32, #tpu.memory_space<vmem>>, vector<8x1xf32>
    %467 = vector.broadcast %466 : vector<8x1xf32> to vector<8x1088xf32>
    %468 = arith.addf %465, %467 : vector<8x1088xf32>
    %c0_185 = arith.constant 0 : index
    %c0_186 = arith.constant 0 : index
    %c0_187 = arith.constant 0 : index
    %469 = vector.load %arg7[%c0_185, %c0_186, %c0_187] : memref<1x8x1088xf32, #tpu.memory_space<vmem>>, vector<1x8x1088xf32>
    %470 = vector.shape_cast %469 : vector<1x8x1088xf32> to vector<8x1088xf32>
    %471 = vector.shape_cast %468 : vector<8x1088xf32> to vector<1x8x1088xf32>
    tpu.vector_store %arg7[%c0_185, %c0_186, %c0_187], %471 {strides = array<i32>} : memref<1x8x1088xf32, #tpu.memory_space<vmem>>, vector<1x8x1088xf32>,
    return
  }
  func.func @transform_0(%arg0: i32) -> (i32, i32, i32) {
    %c0_i32 = arith.constant 0 : i32
    %c0_i32_0 = arith.constant 0 : i32
    %c0_i32_1 = arith.constant 0 : i32
    return %arg0, %c0_i32, %c0_i32_0 : i32, i32, i32
  }
  func.func @transform_1(%arg0: i32) -> (i32, i32, i32, i32) {
    %c0_i32 = arith.constant 0 : i32
    %c0_i32_0 = arith.constant 0 : i32
    %c0_i32_1 = arith.constant 0 : i32
    %c0_i32_2 = arith.constant 0 : i32
    return %arg0, %c0_i32, %c0_i32_0, %c0_i32_1 : i32, i32, i32, i32
  }
  func.func @transform_2(%arg0: i32) -> (i32, i32) {
    %c0_i32 = arith.constant 0 : i32
    %c0_i32_0 = arith.constant 0 : i32
    %c0_i32_1 = arith.constant 0 : i32
    return %c0_i32, %c0_i32_0 : i32, i32
  }
  func.func @transform_3(%arg0: i32) -> (i32, i32) {
    %c0_i32 = arith.constant 0 : i32
    %c0_i32_0 = arith.constant 0 : i32
    %c0_i32_1 = arith.constant 0 : i32
    return %c0_i32, %c0_i32_0 : i32, i32
  }
  func.func @transform_4(%arg0: i32) -> (i32, i32) {
    %c0_i32 = arith.constant 0 : i32
    %c0_i32_0 = arith.constant 0 : i32
    %c0_i32_1 = arith.constant 0 : i32
    return %c0_i32, %c0_i32_0 : i32, i32
  }
  func.func @transform_5(%arg0: i32) -> (i32, i32) {
    %c0_i32 = arith.constant 0 : i32
    %c0_i32_0 = arith.constant 0 : i32
    %c0_i32_1 = arith.constant 0 : i32
    return %c0_i32, %c0_i32_0 : i32, i32
  }
  func.func @transform_6(%arg0: i32) -> (i32, i32, i32) {
    %c0_i32 = arith.constant 0 : i32
    %c0_i32_0 = arith.constant 0 : i32
    %c0_i32_1 = arith.constant 0 : i32
    return %arg0, %c0_i32, %c0_i32_0 : i32, i32, i32
  }
}

</mosaic_0001>

<bundles_post_ra>
// kernel: upconv_pallas.1
= control target key start
LH: loop header
LB: loop body
LE: loop exit
PB: predicated region body
PF: predicated region fallthrough
CT: control target
= control target key end

     0   :  { %s3956_s21 = smov 0   ;;  %s5819_s0 = inlined_call_operand.vmem [shape: bf16[2,64,16], index: 0, kind: input, shape index: {}]   ;;  %s5820_s1 = inlined_call_operand.vmem [shape: bf16[2,4,32,32], index: 1, kind: input, shape index: {}]   ;;  %s5821_s2 = inlined_call_operand.vmem [shape: bf16[16,34], index: 2, kind: input, shape index: {}]   ;;  %s5822_s3 = inlined_call_operand.vmem [shape: bf16[8,72], index: 3, kind: input, shape index: {}]   ;;  %s5823_s4 = inlined_call_operand.vmem [shape: bf16[8,72], index: 4, kind: input, shape index: {}]   ;;  %s5824_s5 = inlined_call_operand.vmem [shape: f32[8,6], index: 5, kind: input, shape index: {}]   ;;  %s5825_s6 = inlined_call_operand.vmem [shape: f32[2,8,1088], index: 6, kind: output, shape index: {}]  }
   0x1 LB: > { %s3604_s22 = sadd.s32 4294967295, %s3872_s21   ;;  %p3608_p0 = scmp.ge.s32.totalorder %s3872_s21, 1  ;;  %s3872_s21 = sphi %s3956_s21, %s16_s21  }
   0x2   : > { %p222_p1 = scmp.lt.s32.totalorder %s3872_s21, 3 }
   0x4   : > { %p223_p2 = pnand %p3608_p0, %p222_p1 }
   0x6   : > { %226 = sbr.rel (%p223_p2) target bundleno = 1450 (0x5aa), region = 44 }
   0xb   : > { %v3861_v0 = vld [vmem:[%s5821_s2] sm:$0xff]   ;;  %p257_p3 = scmp.lt.s32.totalorder %s3604_s22, 1  ;;  %vm309_vm0 = vcmask 130048   ;;  %vm509_vm1 = vcmask 1041409   ;;  %vm512_vm2 = vcmask 1042434   ;;  %vm515_vm3 = vcmask 1043459  }
   0xc   : > { %3662 = vmatprep.subr.bf16.mxu0 %v3861_v0  ;;  %s3874_s9 = smov 1   ;;  %vm520_vm4 = vcmask 7168   ;;  %vm522_vm5 = vcmask 269312   ;;  %vm389_vm6 = vcmask 1040384   ;;  %vm396_vm7 = vcmask 1046528   ;;  %s3875_s10 = smov 42  }
   0xd   : > { %s5919_s22 = smov (!%p257_p3, %s3604_s22), 1  ;;  %3663 = vmatpush3.bf16.msra.mxu0 %v3861_v0  ;;  %vm537_vm8 = vcmask 1041408   ;;  %vm539_vm9 = vcmask 1042432   ;;  %vm541_vm10 = vcmask 1043456   ;;  %s3876_s11 = smov 102   ;;  %vm494_vm11 = vcmask 48128  }
   0xe   : > { %s3643_s25 = sshll.u32 %s5919_s22, 5  ;;  %s3644_s26 = sshll.u32 %s5919_s22, 6  ;;  %vm637_vm12 = vcmask 64512   ;;  %vm547_vm13 = vcmask 556304   ;;  %vm987_vm14 = vcmask 195584   ;;  %vm1168_vm15 = vcmask 261120  }
   0xf   : > { %s261_s29 = scalar_lea.vmem %s5819_s0, %s3643_s25  ;;  %s3977_s8 = scalar_lea.vmem %s5820_s1, %s3644_s26 }
  0x10   : > { %v3862_v1 = vld [vmem:[%s261_s29] sm:$0xff]   ;;  %v3863_v2 = vld [vmem:[%s261_s29 + $0x8] sm:$0xff]   ;;  %v3864_v3 = vld [vmem:[%s261_s29 + $0x10] sm:$0xff]   ;;  %s3877_s12 = smov 110   ;;  %s3878_s13 = smov 34  }
  0x11   : > { %3664 = vmatprep.mubr.msk.bf16.mxu0 %vm309_vm0, %v3862_v1  ;;  %v594_v4 = vld [vmem:[%s3977_s8] sm:$0x2]  ;;  %v595_v5 = vld [vmem:[%s3977_s8 + $0x10] sm:$0x2]  ;;  %v3865_v7 = vld [vmem:[%s261_s29 + $0x18] sm:$0xff]   ;;  %s3879_s14 = smov 118  }
  0x12   : > { %3665 = vmatmul.mubr.msk.bf16.vlgmr.msra.gmra.mxu0 %vm309_vm0, %v3863_v2  ;;  %v596_v6 = vld [vmem:[%s3977_s8 + $0x20] sm:$0x2]  ;;  %v597_v8 = vld [vmem:[%s3977_s8 + $0x30] sm:$0x2]  ;;  %v598_v9 = vunpack.c.l.bf16 %v594_v4  ;;  %v599_v10 = vunpack.c.l.bf16 %v595_v5  ;;  %v768_v11 = vld [vmem:[%s3977_s8] sm:$0x8] }
  0x13   : > { %3668 = vmatprep.mubr.msk.bf16.mxu0 %vm309_vm0, %v3864_v3  ;;  %v769_v12 = vld [vmem:[%s3977_s8 + $0x10] sm:$0x8]  ;;  %v600_v13 = vunpack.c.l.bf16 %v596_v6  ;;  %v601_v14 = vunpack.c.l.bf16 %v597_v8  ;;  %v770_v15 = vld [vmem:[%s3977_s8 + $0x20] sm:$0x8]  ;;  %v772_v17 = vunpack.c.l.bf16 %v768_v11  ;;  %v496_v19 = vld [vmem:[%s3977_s8] sm:$0x1] }
  0x14   : > { %v771_v16 = vld [vmem:[%s3977_s8 + $0x30] sm:$0x8]  ;;  %v773_v18 = vunpack.c.l.bf16 %v769_v12  ;;  %v606_v20 = vrot.slane %v598_v9, 2  ;;  %v607_v21 = vrot.slane %v599_v10, 1  ;;  %v774_v22 = vunpack.c.l.bf16 %v770_v15  ;;  %v497_v24 = vld [vmem:[%s3977_s8 + $0x10] sm:$0x1] }
  0x15   : > { %v775_v23 = vunpack.c.l.bf16 %v771_v16  ;;  %v498_v25 = vld [vmem:[%s3977_s8 + $0x20] sm:$0x1]  ;;  %v610_v26 = vrot.slane %v601_v14, 7  ;;  %v780_v27 = vrot.slane %v772_v17, 6  ;;  %v499_v29 = vld [vmem:[%s3977_s8 + $0x30] sm:$0x1]  ;;  %v500_v30 = vunpack.c.l.bf16 %v496_v19 }
  0x16   : > { %v781_v28 = vrot.slane %v773_v18, 5  ;;  %v608_v31 = vsel %vm509_vm1, %v607_v21, %v606_v20  ;;  %v783_v32 = vrot.slane %v774_v22, 4  ;;  %v501_v34 = vunpack.c.l.bf16 %v497_v24  ;;  %v682_v35 = vld [vmem:[%s3977_s8] sm:$0x4]  ;;  %v683_v36 = vld [vmem:[%s3977_s8 + $0x10] sm:$0x4] }
  0x17   : > { %v785_v33 = vrot.slane %v775_v23, 3  ;;  %v609_v37 = vsel %vm512_vm2, %v600_v13, %v608_v31  ;;  %v502_v39 = vunpack.c.l.bf16 %v498_v25  ;;  %v503_v40 = vunpack.c.l.bf16 %v499_v29  ;;  %v684_v41 = vld [vmem:[%s3977_s8 + $0x20] sm:$0x4]  ;;  %v685_v42 = vld [vmem:[%s3977_s8 + $0x30] sm:$0x4]  ;;  %s3880_s15 = smov 50  }
  0x18   : > { %v782_v38 = vsel %vm509_vm1, %v781_v28, %v780_v27  ;;  %v611_v43 = vsel %vm515_vm3, %v610_v26, %v609_v37  ;;  %v508_v45 = vrot.slane %v501_v34, 7  ;;  %v686_v46 = vunpack.c.l.bf16 %v682_v35  ;;  %v639_v47 = vld [vmem:[%s3977_s8] sm:$0x2]  ;;  %v640_v52 = vld [vmem:[%s3977_s8 + $0x10] sm:$0x2]  ;;  %s3881_s16 = smov 58  }
  0x19   : > { %v784_v44 = vsel %vm512_vm2, %v783_v32, %v782_v38  ;;  %v511_v49 = vrot.slane %v502_v39, 6  ;;  %v514_v50 = vrot.slane %v503_v40, 5  ;;  %v687_v51 = vunpack.c.l.bf16 %v683_v36  ;;  %v641_v57 = vld [vmem:[%s3977_s8 + $0x20] sm:$0x2]  ;;  %v642_v58 = vld [vmem:[%s3977_s8 + $0x30] sm:$0x2] }
  0x1a   : > { %3669 = vmatmul.mubr.msk.bf16.gmra.mxu0 %vm309_vm0, %v3865_v7  ;;  %v786_v48 = vsel %vm515_vm3, %v785_v33, %v784_v44  ;;  %v510_v54 = vsel %vm509_vm1, %v508_v45, %v500_v30  ;;  %v688_v55 = vunpack.c.l.bf16 %v684_v41  ;;  %v689_v56 = vunpack.c.l.bf16 %v685_v42  ;;  %v812_v63 = vld [vmem:[%s3977_s8] sm:$0x8]  ;;  %v813_v0 = vld [vmem:[%s3977_s8 + $0x10] sm:$0x8]  ;;  %v855_v15 = vld [vmem:[%s3977_s8 + $0x4] sm:$0x1] }
  0x1b   : > { %v3774_v53 = vpack.i.bf16 %v786_v48, %v611_v43  ;;  %v513_v59 = vsel %vm512_vm2, %v511_v49, %v510_v54  ;;  %v694_v60 = vrot.slane %v686_v46, 4  ;;  %v695_v61 = vrot.slane %v687_v51, 3  ;;  %v814_v5 = vld [vmem:[%s3977_s8 + $0x20] sm:$0x8]  ;;  %v815_v6 = vld [vmem:[%s3977_s8 + $0x30] sm:$0x8] }
  0x1c   : > { %v643_v62 = vunpack.c.l.bf16 %v639_v47  ;;  %v516_v1 = vsel %vm515_vm3, %v514_v50, %v513_v59  ;;  %v697_v2 = vrot.slane %v688_v55, 2  ;;  %v699_v3 = vrot.slane %v689_v56, 1  ;;  %v856_v16 = vld [vmem:[%s3977_s8 + $0x14] sm:$0x1]  ;;  %v857_v21 = vld [vmem:[%s3977_s8 + $0x24] sm:$0x1] }
  0x1d   : > { %3775 = vrot.lane.b32.xlu0 %v3774_v53, %s3874_s9  ;;  %v644_v4 = vunpack.c.l.bf16 %v640_v52  ;;  %v696_v7 = vsel %vm509_vm1, %v695_v61, %v694_v60  ;;  %v645_v8 = vunpack.c.l.bf16 %v641_v57  ;;  %v646_v9 = vunpack.c.l.bf16 %v642_v58  ;;  %v858_v22 = vld [vmem:[%s3977_s8 + $0x34] sm:$0x1]  ;;  %v943_v27 = vld [vmem:[%s3977_s8 + $0x4] sm:$0x2]  ;;  %v944_v28 = vld [vmem:[%s3977_s8 + $0x14] sm:$0x2] }
  0x1e   : > { %v651_v10 = vrot.slane %v643_v62, 3  ;;  %v698_v11 = vsel %vm512_vm2, %v697_v2, %v696_v7  ;;  %v816_v13 = vunpack.c.l.bf16 %v812_v63  ;;  %v817_v14 = vunpack.c.l.bf16 %v813_v0  ;;  %v945_v33 = vld [vmem:[%s3977_s8 + $0x24] sm:$0x2]  ;;  %v946_v38 = vld [vmem:[%s3977_s8 + $0x34] sm:$0x2]  ;;  %s3882_s17 = smov 126  }
  0x1f   : > { %v652_v12 = vrot.slane %v644_v4, 2  ;;  %v700_v17 = vsel %vm515_vm3, %v699_v3, %v698_v11  ;;  %v654_v18 = vrot.slane %v645_v8, 1  ;;  %v818_v19 = vunpack.c.l.bf16 %v814_v5  ;;  %v549_v43 = vld [vmem:[%s3977_s8] sm:$0x1]  ;;  %v550_v44 = vld [vmem:[%s3977_s8 + $0x10] sm:$0x1] }
  0x20   : > { %v819_v20 = vunpack.c.l.bf16 %v815_v6  ;;  %v3784_v23 = vpack.i.bf16 %v700_v17, %v516_v1  ;;  %v824_v25 = vrot.slane %v816_v13, 7  ;;  %v825_v26 = vrot.slane %v817_v14, 6  ;;  %v551_v49 = vld [vmem:[%s3977_s8 + $0x20] sm:$0x1]  ;;  %v552_v50 = vld [vmem:[%s3977_s8 + $0x30] sm:$0x1] }
  0x21   : > { %v653_v24 = vsel %vm509_vm1, %v652_v12, %v651_v10  ;;  %v827_v30 = vrot.slane %v818_v19, 5  ;;  %v859_v32 = vunpack.c.l.bf16 %v855_v15  ;;  %v860_v36 = vunpack.c.l.bf16 %v856_v16  ;;  %v725_v55 = vld [vmem:[%s3977_s8] sm:$0x4]  ;;  %v726_v60 = vld [vmem:[%s3977_s8 + $0x10] sm:$0x4]  ;;  %s3883_s18 = smov 76  }
  0x22   : > { %v655_v29 = vsel %vm512_vm2, %v654_v18, %v653_v24  ;;  %v829_v31 = vrot.slane %v819_v20, 4  ;;  %3785 = vrot.lane.b32.xlu1 %v3784_v23, %s3874_s9  ;;  %v826_v35 = vsel %vm509_vm1, %v825_v26, %v824_v25  ;;  %v861_v37 = vunpack.c.l.bf16 %v857_v21  ;;  %v727_v1 = vld [vmem:[%s3977_s8 + $0x20] sm:$0x4]  ;;  %v728_v2 = vld [vmem:[%s3977_s8 + $0x30] sm:$0x4]  ;;  %s3884_s19 = smov 108  }
  0x23   : > { %v656_v34 = vsel %vm515_vm3, %v646_v9, %v655_v29  ;;  %v828_v39 = vsel %vm512_vm2, %v827_v30, %v826_v35  ;;  %v862_v40 = vunpack.c.l.bf16 %v858_v22  ;;  %v947_v41 = vunpack.c.l.bf16 %v943_v27  ;;  %v899_v11 = vld [vmem:[%s3977_s8 + $0x4] sm:$0x1]  ;;  %v900_v16 = vld [vmem:[%s3977_s8 + $0x14] sm:$0x1]  ;;  %v989_v23 = vld [vmem:[%s3977_s8 + $0x4] sm:$0x2] }
  0x24   : > { %v948_v42 = vunpack.c.l.bf16 %v944_v28  ;;  %v830_v45 = vsel %vm515_vm3, %v829_v31, %v828_v39  ;;  %v867_v46 = vrot.slane %v860_v36, 7  ;;  %v869_v47 = vrot.slane %v861_v37, 6  ;;  %v901_v17 = vld [vmem:[%s3977_s8 + $0x24] sm:$0x1]  ;;  %v902_v18 = vld [vmem:[%s3977_s8 + $0x34] sm:$0x1] }
  0x25   : > { %v949_v48 = vunpack.c.l.bf16 %v945_v33  ;;  %v3779_v51 = vpack.i.bf16 %v830_v45, %v656_v34  ;;  %v871_v52 = vrot.slane %v862_v40, 5  ;;  %v950_v53 = vunpack.c.l.bf16 %v946_v38  ;;  %v990_v24 = vld [vmem:[%s3977_s8 + $0x14] sm:$0x2]  ;;  %v991_v29 = vld [vmem:[%s3977_s8 + $0x24] sm:$0x2]  ;;  %s3885_s20 = smov 16  }
  0x26   : > { %v955_v54 = vrot.slane %v947_v41, 2  ;;  %v868_v56 = vsel %vm509_vm1, %v867_v46, %v859_v32  ;;  %v956_v57 = vrot.slane %v948_v42, 1  ;;  %v553_v58 = vunpack.c.l.bf16 %v549_v43  ;;  %v992_v34 = vld [vmem:[%s3977_s8 + $0x34] sm:$0x2]  ;;  %v1033_v39 = vld [vmem:[%s3977_s8 + $0x4] sm:$0x4] }
  0x27   : > { %v554_v59 = vunpack.c.l.bf16 %v550_v44  ;;  %3780 = vrot.lane.b32.xlu0 %v3779_v51, %s3874_s9  ;;  %v870_v61 = vsel %vm512_vm2, %v869_v47, %v868_v56  ;;  %v959_v62 = vrot.slane %v950_v53, 7  ;;  %v555_v63 = vunpack.c.l.bf16 %v551_v49  ;;  %v1034_v40 = vld [vmem:[%s3977_s8 + $0x14] sm:$0x4]  ;;  %v1035_v45 = vld [vmem:[%s3977_s8 + $0x24] sm:$0x4]  ;;  %s3886_s23 = smov 74  }
  0x28   : > { %v556_v0 = vunpack.c.l.bf16 %v552_v50  ;;  %v872_v3 = vsel %vm515_vm3, %v871_v52, %v870_v61  ;;  %v957_v4 = vsel %vm509_vm1, %v956_v57, %v955_v54  ;;  %v561_v5 = vrot.slane %v553_v58, 1  ;;  %v1036_v46 = vld [vmem:[%s3977_s8 + $0x34] sm:$0x4]  ;;  %v1123_v51 = vld [vmem:[%s3977_s8 + $0x4] sm:$0x8]  ;;  %s3887_s24 = smov 24  }
  0x29   : > { %v729_v6 = vunpack.c.l.bf16 %v725_v55  ;;  %v958_v7 = vsel %vm512_vm2, %v949_v48, %v957_v4  ;;  %v563_v8 = vrot.slane %v555_v63, 7  ;;  %v730_v10 = vunpack.c.l.bf16 %v726_v60  ;;  %v1124_v52 = vld [vmem:[%s3977_s8 + $0x14] sm:$0x8]  ;;  %v1125_v61 = vld [vmem:[%s3977_s8 + $0x24] sm:$0x8]  ;;  %s3888_s25 = smov 8  }
  0x2a   : > { %v565_v9 = vrot.slane %v556_v0, 6  ;;  %v960_v12 = vsel %vm515_vm3, %v959_v62, %v958_v7  ;;  %v562_v13 = vsel %vm509_vm1, %v554_v59, %v561_v5  ;;  %v731_v14 = vunpack.c.l.bf16 %v727_v1  ;;  %v1126_v62 = vld [vmem:[%s3977_s8 + $0x34] sm:$0x8]  ;;  %s3889_s26 = smov 92   ;;  %s3890_s27 = smov 68  }
  0x2b   : > { %v732_v15 = vunpack.c.l.bf16 %v728_v2  ;;  %v3789_v19 = vpack.i.bf16 %v960_v12, %v872_v3  ;;  %v564_v20 = vsel %vm512_vm2, %v563_v8, %v562_v13  ;;  %v737_v21 = vrot.slane %v729_v6, 5  ;;  %v1078_v3 = vld [vmem:[%s3977_s8 + $0x4] sm:$0x4]  ;;  %v1079_v8 = vld [vmem:[%s3977_s8 + $0x14] sm:$0x4]  ;;  %s3891_s28 = smov 100  }
  0x2c   : > { %v738_v22 = vrot.slane %v730_v10, 4  ;;  %v566_v25 = vsel %vm515_vm3, %v565_v9, %v564_v20  ;;  %v740_v26 = vrot.slane %v731_v14, 3  ;;  %v903_v28 = vunpack.c.l.bf16 %v899_v11  ;;  %v1080_v13 = vld [vmem:[%s3977_s8 + $0x24] sm:$0x4]  ;;  %v1081_v14 = vld [vmem:[%s3977_s8 + $0x34] sm:$0x4] }
  0x2d   : > { %v742_v27 = vrot.slane %v732_v15, 2  ;;  %3790 = vrot.lane.b32.xlu1 %v3789_v19, %s3874_s9  ;;  %v904_v31 = vunpack.c.l.bf16 %v900_v16  ;;  %v905_v32 = vunpack.c.l.bf16 %v901_v17  ;;  %v906_v33 = vunpack.c.l.bf16 %v902_v18  ;;  %v1170_v19 = vld [vmem:[%s3977_s8 + $0x4] sm:$0x8]  ;;  %s3892_s29 = smov 84   ;;  %s3893_s30 = smov 6  }
  0x2e   : > { %v739_v30 = vsel %vm509_vm1, %v738_v22, %v737_v21  ;;  %v911_v36 = vrot.slane %v903_v28, 1  ;;  %v993_v37 = vunpack.c.l.bf16 %v989_v23  ;;  %v994_v38 = vunpack.c.l.bf16 %v990_v24  ;;  %v1171_v24 = vld [vmem:[%s3977_s8 + $0x14] sm:$0x8]  ;;  %s3894_s7 = smov 32  }
  0x2f   : > { %v741_v35 = vsel %vm512_vm2, %v740_v26, %v739_v30  ;;  %v913_v42 = vrot.slane %v905_v32, 7  ;;  %v915_v43 = vrot.slane %v906_v33, 6  ;;  %v995_v44 = vunpack.c.l.bf16 %v991_v29  ;;  %v1172_v29 = vld [vmem:[%s3977_s8 + $0x24] sm:$0x8]  ;;  %v1173_v30 = vld [vmem:[%s3977_s8 + $0x34] sm:$0x8] }
  0x30   : > { %v743_v41 = vsel %vm515_vm3, %v742_v27, %v741_v35  ;;  %v912_v48 = vsel %vm509_vm1, %v904_v31, %v911_v36  ;;  %v996_v49 = vunpack.c.l.bf16 %v992_v34  ;;  %v1001_v50 = vrot.slane %v993_v37, 3  ;;  %v1215_v35 = vld [vmem:[%s3977_s8 + $0x8] sm:$0x1] }
  0x31   : > { %v3794_v47 = vpack.i.bf16 %v743_v41, %v566_v25  ;;  %v914_v53 = vsel %vm512_vm2, %v913_v42, %v912_v48  ;;  %v1002_v54 = vrot.slane %v994_v38, 2  ;;  %v1004_v55 = vrot.slane %v995_v44, 1 }
  0x32   : > { %v1037_v56 = vunpack.c.l.bf16 %v1033_v39  ;;  %v916_v57 = vsel %vm515_vm3, %v915_v43, %v914_v53  ;;  %v1038_v58 = vunpack.c.l.bf16 %v1034_v40  ;;  %v1039_v59 = vunpack.c.l.bf16 %v1035_v45  ;;  %v1216_v40 = vld [vmem:[%s3977_s8 + $0x18] sm:$0x1]  ;;  %v1217_v45 = vld [vmem:[%s3977_s8 + $0x28] sm:$0x1] }
  0x33   : > { %3795 = vrot.lane.b32.xlu0 %v3794_v47, %s3874_s9  ;;  %v1040_v60 = vunpack.c.l.bf16 %v1036_v46  ;;  %v1003_v63 = vsel %vm509_vm1, %v1002_v54, %v1001_v50  ;;  %v1127_v1 = vunpack.c.l.bf16 %v1123_v51  ;;  %v1128_v2 = vunpack.c.l.bf16 %v1124_v52  ;;  %v1218_v46 = vld [vmem:[%s3977_s8 + $0x38] sm:$0x1]  ;;  %v1260_v47 = vld [vmem:[%s3977_s8 + $0x8] sm:$0x1] }
  0x34   : > { %v1045_v0 = vrot.slane %v1037_v56, 4  ;;  %v1005_v4 = vsel %vm512_vm2, %v1004_v55, %v1003_v63  ;;  %v1046_v5 = vrot.slane %v1038_v58, 3  ;;  %v1048_v6 = vrot.slane %v1039_v59, 2  ;;  %v1261_v52 = vld [vmem:[%s3977_s8 + $0x18] sm:$0x1] }
  0x35   : > { %v1050_v7 = vrot.slane %v1040_v60, 1  ;;  %v1006_v9 = vsel %vm515_vm3, %v996_v49, %v1005_v4  ;;  %v1129_v10 = vunpack.c.l.bf16 %v1125_v61  ;;  %v1130_v11 = vunpack.c.l.bf16 %v1126_v62  ;;  %v1262_v53 = vld [vmem:[%s3977_s8 + $0x28] sm:$0x1]  ;;  %v1263_v58 = vld [vmem:[%s3977_s8 + $0x38] sm:$0x1] }
  0x36   : > { %v1135_v12 = vrot.slane %v1127_v1, 6  ;;  %v3799_v15 = vpack.i.bf16 %v1006_v9, %v916_v57  ;;  %v1047_v16 = vsel %vm509_vm1, %v1046_v5, %v1045_v0  ;;  %v1136_v17 = vrot.slane %v1128_v2, 5  ;;  %v1307_v4 = vld [vmem:[%s3977_s8 + $0x18] sm:$0x2]  ;;  %v1308_v9 = vld [vmem:[%s3977_s8 + $0x28] sm:$0x2] }
  0x37   : > { %v1082_v18 = vunpack.c.l.bf16 %v1078_v3  ;;  %v1049_v20 = vsel %vm512_vm2, %v1048_v6, %v1047_v16  ;;  %v1138_v21 = vrot.slane %v1129_v10, 4  ;;  %v1140_v22 = vrot.slane %v1130_v11, 3  ;;  %v1306_v3 = vld [vmem:[%s3977_s8 + $0x8] sm:$0x2]  ;;  %v1309_v10 = vld [vmem:[%s3977_s8 + $0x38] sm:$0x2] }
  0x38   : > { %v1083_v23 = vunpack.c.l.bf16 %v1079_v8  ;;  %3800 = vrot.lane.b32.xlu1 %v3799_v15, %s3874_s9  ;;  %v1051_v25 = vsel %vm515_vm3, %v1050_v7, %v1049_v20  ;;  %v1137_v26 = vsel %vm509_vm1, %v1136_v17, %v1135_v12  ;;  %v1084_v27 = vunpack.c.l.bf16 %v1080_v13  ;;  %v1435_v15 = vld [vmem:[%s3977_s8 + $0x8] sm:$0x4]  ;;  %v1436_v20 = vld [vmem:[%s3977_s8 + $0x18] sm:$0x4] }
  0x39   : > { %v1085_v28 = vunpack.c.l.bf16 %v1081_v14  ;;  %v1139_v31 = vsel %vm512_vm2, %v1138_v21, %v1137_v26  ;;  %v1090_v32 = vrot.slane %v1082_v18, 5  ;;  %v1174_v34 = vunpack.c.l.bf16 %v1170_v19  ;;  %v1437_v21 = vld [vmem:[%s3977_s8 + $0x28] sm:$0x4]  ;;  %v1438_v26 = vld [vmem:[%s3977_s8 + $0x38] sm:$0x4] }
  0x3a   : > { %v1091_v33 = vrot.slane %v1083_v23, 4  ;;  %v1141_v36 = vsel %vm515_vm3, %v1140_v22, %v1139_v31  ;;  %v1093_v37 = vrot.slane %v1084_v27, 3  ;;  %v1175_v39 = vunpack.c.l.bf16 %v1171_v24  ;;  %v1349_v31 = vld [vmem:[%s3977_s8 + $0x8] sm:$0x2] }
  0x3b   : > { %v1095_v38 = vrot.slane %v1085_v28, 2  ;;  %v3804_v41 = vpack.i.bf16 %v1051_v25, %v1141_v36  ;;  %v1176_v43 = vunpack.c.l.bf16 %v1172_v29  ;;  %v1177_v44 = vunpack.c.l.bf16 %v1173_v30  ;;  %v1350_v36 = vld [vmem:[%s3977_s8 + $0x18] sm:$0x2] }
  0x3c   : > { %v1092_v42 = vsel %vm509_vm1, %v1091_v33, %v1090_v32  ;;  %v1182_v49 = vrot.slane %v1174_v34, 7  ;;  %v1183_v50 = vrot.slane %v1175_v39, 6  ;;  %v1219_v51 = vunpack.c.l.bf16 %v1215_v35 }
  0x3d   : > { %v1094_v48 = vsel %vm512_vm2, %v1093_v37, %v1092_v42  ;;  %3805 = vrot.lane.b32.xlu0 %v3804_v41, %s3874_s9  ;;  %v1185_v55 = vrot.slane %v1176_v43, 5  ;;  %v1187_v56 = vrot.slane %v1177_v44, 4  ;;  %v1220_v57 = vunpack.c.l.bf16 %v1216_v40  ;;  %v1351_v37 = vld [vmem:[%s3977_s8 + $0x28] sm:$0x2]  ;;  %v1352_v42 = vld [vmem:[%s3977_s8 + $0x38] sm:$0x2] }
  0x3e   : > { %v1096_v54 = vsel %vm515_vm3, %v1095_v38, %v1094_v48  ;;  %v1184_v59 = vsel %vm509_vm1, %v1183_v50, %v1182_v49  ;;  %v1221_v60 = vunpack.c.l.bf16 %v1217_v45  ;;  %v1222_v61 = vunpack.c.l.bf16 %v1218_v46  ;;  %v1480_v43 = vld [vmem:[%s3977_s8 + $0x8] sm:$0x8]  ;;  %v1481_v48 = vld [vmem:[%s3977_s8 + $0x18] sm:$0x8] }
  0x3f   : > { %v1264_v62 = vunpack.c.l.bf16 %v1260_v47  ;;  %v1186_v63 = vsel %vm512_vm2, %v1185_v55, %v1184_v59  ;;  %v1227_v0 = vrot.slane %v1220_v57, 7  ;;  %v1265_v1 = vunpack.c.l.bf16 %v1261_v52  ;;  %v1523_v59 = vld [vmem:[%s3977_s8 + $0x8] sm:$0x8] }
  0x40   : > { %v1266_v2 = vunpack.c.l.bf16 %v1262_v53  ;;  %v1188_v5 = vsel %vm515_vm3, %v1187_v56, %v1186_v63  ;;  %v1229_v6 = vrot.slane %v1221_v60, 6  ;;  %v1231_v7 = vrot.slane %v1222_v61, 5  ;;  %v1482_v53 = vld [vmem:[%s3977_s8 + $0x28] sm:$0x8] }
  0x41   : > { %v1267_v8 = vunpack.c.l.bf16 %v1263_v58  ;;  %v3809_v11 = vpack.i.bf16 %v1096_v54, %v1188_v5  ;;  %v1228_v12 = vsel %vm509_vm1, %v1227_v0, %v1219_v51  ;;  %v1272_v13 = vrot.slane %v1264_v62, 1  ;;  %v1483_v54 = vld [vmem:[%s3977_s8 + $0x38] sm:$0x8]  ;;  %v1525_v5 = vld [vmem:[%s3977_s8 + $0x28] sm:$0x8] }
  0x42   : > { %v1274_v14 = vrot.slane %v1266_v2, 7  ;;  %v1230_v16 = vsel %vm512_vm2, %v1229_v6, %v1228_v12  ;;  %v1310_v18 = vunpack.c.l.bf16 %v1306_v3  ;;  %v1311_v19 = vunpack.c.l.bf16 %v1307_v4  ;;  %v1524_v0 = vld [vmem:[%s3977_s8 + $0x18] sm:$0x8] }
  0x43   : > { %v1276_v17 = vrot.slane %v1267_v8, 6  ;;  %3810 = vrot.lane.b32.xlu1 %v3809_v11, %s3874_s9  ;;  %v1232_v22 = vsel %vm515_vm3, %v1231_v7, %v1230_v16  ;;  %v1273_v23 = vsel %vm509_vm1, %v1265_v1, %v1272_v13  ;;  %v1312_v24 = vunpack.c.l.bf16 %v1308_v9  ;;  %v1526_v6 = vld [vmem:[%s3977_s8 + $0x38] sm:$0x8]  ;;  %v1610_v11 = vld [vmem:[%s3977_s8 + $0xc] sm:$0x1] }
  0x44   : > { %v1313_v25 = vunpack.c.l.bf16 %v1309_v10  ;;  %v1275_v27 = vsel %vm512_vm2, %v1274_v14, %v1273_v23  ;;  %v1318_v28 = vrot.slane %v1310_v18, 2  ;;  %v1319_v29 = vrot.slane %v1311_v19, 1  ;;  %v1611_v16 = vld [vmem:[%s3977_s8 + $0x1c] sm:$0x1] }
  0x45   : > { %v1439_v30 = vunpack.c.l.bf16 %v1435_v15  ;;  %v1277_v32 = vsel %vm515_vm3, %v1276_v17, %v1275_v27  ;;  %v1440_v34 = vunpack.c.l.bf16 %v1436_v20  ;;  %v1441_v35 = vunpack.c.l.bf16 %v1437_v21  ;;  %v1612_v21 = vld [vmem:[%s3977_s8 + $0x2c] sm:$0x1]  ;;  %v1392_v27 = vld [vmem:[%s3977_s8 + $0x8] sm:$0x4] }
  0x46   : > { %v1322_v33 = vrot.slane %v1313_v25, 7  ;;  %v3814_v38 = vpack.i.bf16 %v1277_v32, %v1232_v22  ;;  %v1320_v39 = vsel %vm509_vm1, %v1319_v29, %v1318_v28  ;;  %v1442_v40 = vunpack.c.l.bf16 %v1438_v26  ;;  %v1613_v22 = vld [vmem:[%s3977_s8 + $0x3c] sm:$0x1]  ;;  %v1393_v28 = vld [vmem:[%s3977_s8 + $0x18] sm:$0x4] }
  0x47   : > { %v1447_v41 = vrot.slane %v1439_v30, 5  ;;  %v1321_v44 = vsel %vm512_vm2, %v1312_v24, %v1320_v39  ;;  %v1448_v45 = vrot.slane %v1440_v34, 4  ;;  %v1450_v46 = vrot.slane %v1441_v35, 3 }
  0x48   : > { %v1353_v47 = vunpack.c.l.bf16 %v1349_v31  ;;  %3815 = vrot.lane.b32.xlu0 %v3814_v38, %s3874_s9  ;;  %v1323_v49 = vsel %vm515_vm3, %v1322_v33, %v1321_v44  ;;  %v1452_v50 = vrot.slane %v1442_v40, 2  ;;  %v1354_v51 = vunpack.c.l.bf16 %v1350_v36  ;;  %v1394_v33 = vld [vmem:[%s3977_s8 + $0x28] sm:$0x4]  ;;  %v1395_v38 = vld [vmem:[%s3977_s8 + $0x38] sm:$0x4] }
  0x49   : > { %v1355_v52 = vunpack.c.l.bf16 %v1351_v37  ;;  %v1449_v55 = vsel %vm509_vm1, %v1448_v45, %v1447_v41  ;;  %v1356_v56 = vunpack.c.l.bf16 %v1352_v42  ;;  %v1484_v58 = vunpack.c.l.bf16 %v1480_v43  ;;  %v1566_v43 = vld [vmem:[%s3977_s8 + $0xc] sm:$0x1]  ;;  %v1567_v44 = vld [vmem:[%s3977_s8 + $0x1c] sm:$0x1] }
  0x4a   : > { %v1361_v57 = vrot.slane %v1353_v47, 3  ;;  %v1451_v60 = vsel %vm512_vm2, %v1450_v46, %v1449_v55  ;;  %v1362_v61 = vrot.slane %v1354_v51, 2  ;;  %v1485_v63 = vunpack.c.l.bf16 %v1481_v48 }
  0x4b   : > { %v1364_v62 = vrot.slane %v1355_v52, 1  ;;  %v1453_v1 = vsel %vm515_vm3, %v1452_v50, %v1451_v60  ;;  %v1486_v2 = vunpack.c.l.bf16 %v1482_v53  ;;  %v1487_v3 = vunpack.c.l.bf16 %v1483_v54  ;;  %v1569_v54 = vld [vmem:[%s3977_s8 + $0x3c] sm:$0x1]  ;;  %v1657_v60 = vld [vmem:[%s3977_s8 + $0x1c] sm:$0x2] }
  0x4c   : > { %v1492_v4 = vrot.slane %v1484_v58, 6  ;;  %v3819_v7 = vpack.i.bf16 %v1323_v49, %v1453_v1  ;;  %v1363_v8 = vsel %vm509_vm1, %v1362_v61, %v1361_v57  ;;  %v1493_v9 = vrot.slane %v1485_v63, 5  ;;  %v1568_v49 = vld [vmem:[%s3977_s8 + $0x2c] sm:$0x1]  ;;  %v1658_v1 = vld [vmem:[%s3977_s8 + $0x2c] sm:$0x2] }
  0x4d   : > { %v1527_v10 = vunpack.c.l.bf16 %v1523_v59  ;;  %v1365_v12 = vsel %vm512_vm2, %v1364_v62, %v1363_v8  ;;  %v1495_v13 = vrot.slane %v1486_v2, 4  ;;  %v1497_v14 = vrot.slane %v1487_v3, 3  ;;  %v1656_v59 = vld [vmem:[%s3977_s8 + $0xc] sm:$0x2]  ;;  %v1659_v2 = vld [vmem:[%s3977_s8 + $0x3c] sm:$0x2] }
  0x4e   : > { %v1528_v15 = vunpack.c.l.bf16 %v1524_v0  ;;  %3820 = vrot.lane.b32.xlu1 %v3819_v7, %s3874_s9  ;;  %v1366_v17 = vsel %vm515_vm3, %v1356_v56, %v1365_v12  ;;  %v1494_v18 = vsel %vm509_vm1, %v1493_v9, %v1492_v4  ;;  %v1529_v19 = vunpack.c.l.bf16 %v1525_v5  ;;  %v1700_v7 = vld [vmem:[%s3977_s8 + $0xc] sm:$0x2]  ;;  %v1701_v12 = vld [vmem:[%s3977_s8 + $0x1c] sm:$0x2] }
  0x4f   : > { %v1530_v20 = vunpack.c.l.bf16 %v1526_v6  ;;  %v1496_v23 = vsel %vm512_vm2, %v1495_v13, %v1494_v18  ;;  %v1535_v24 = vrot.slane %v1527_v10, 7  ;;  %v1614_v26 = vunpack.c.l.bf16 %v1610_v11  ;;  %v1702_v13 = vld [vmem:[%s3977_s8 + $0x2c] sm:$0x2]  ;;  %v1703_v18 = vld [vmem:[%s3977_s8 + $0x3c] sm:$0x2] }
  0x50   : > { %v1536_v25 = vrot.slane %v1528_v15, 6  ;;  %v1498_v29 = vsel %vm515_vm3, %v1497_v14, %v1496_v23  ;;  %v1538_v30 = vrot.slane %v1529_v19, 5  ;;  %v1615_v32 = vunpack.c.l.bf16 %v1611_v16  ;;  %v1744_v23 = vld [vmem:[%s3977_s8 + $0xc] sm:$0x4] }
  0x51   : > { %v1540_v31 = vrot.slane %v1530_v20, 4  ;;  %v3824_v34 = vpack.i.bf16 %v1366_v17, %v1498_v29  ;;  %v1616_v36 = vunpack.c.l.bf16 %v1612_v21  ;;  %v1617_v37 = vunpack.c.l.bf16 %v1613_v22  ;;  %v1746_v29 = vld [vmem:[%s3977_s8 + $0x2c] sm:$0x4] }
  0x52   : > { %v1537_v35 = vsel %vm509_vm1, %v1536_v25, %v1535_v24  ;;  %v1622_v40 = vrot.slane %v1614_v26, 1  ;;  %v1396_v41 = vunpack.c.l.bf16 %v1392_v27  ;;  %v1397_v42 = vunpack.c.l.bf16 %v1393_v28  ;;  %v1745_v24 = vld [vmem:[%s3977_s8 + $0x1c] sm:$0x4] }
  0x53   : > { %v1539_v39 = vsel %vm512_vm2, %v1538_v30, %v1537_v35  ;;  %3825 = vrot.lane.b32.xlu0 %v3824_v34, %s3874_s9  ;;  %v1624_v46 = vrot.slane %v1616_v36, 7  ;;  %v1626_v47 = vrot.slane %v1617_v37, 6  ;;  %v1398_v48 = vunpack.c.l.bf16 %v1394_v33  ;;  %v1747_v30 = vld [vmem:[%s3977_s8 + $0x3c] sm:$0x4]  ;;  %v1789_v35 = vld [vmem:[%s3977_s8 + $0xc] sm:$0x4] }
  0x54   : > { %v1541_v45 = vsel %vm515_vm3, %v1540_v31, %v1539_v39  ;;  %v1623_v50 = vsel %vm509_vm1, %v1615_v32, %v1622_v40  ;;  %v1399_v51 = vunpack.c.l.bf16 %v1395_v38  ;;  %v1404_v52 = vrot.slane %v1396_v41, 4  ;;  %v1790_v36 = vld [vmem:[%s3977_s8 + $0x1c] sm:$0x4] }
  0x55   : > { %v1405_v53 = vrot.slane %v1397_v42, 3  ;;  %v1625_v55 = vsel %vm512_vm2, %v1624_v46, %v1623_v50  ;;  %v1407_v56 = vrot.slane %v1398_v48, 2  ;;  %v1570_v57 = vunpack.c.l.bf16 %v1566_v43  ;;  %v1792_v46 = vld [vmem:[%s3977_s8 + $0x3c] sm:$0x4] }
  0x56   : > { %v1571_v58 = vunpack.c.l.bf16 %v1567_v44  ;;  %v1627_v61 = vsel %vm515_vm3, %v1626_v47, %v1625_v55  ;;  %v1409_v63 = vrot.slane %v1399_v51, 1  ;;  %v1572_v0 = vunpack.c.l.bf16 %v1568_v49  ;;  %v1836_v51 = vld [vmem:[%s3977_s8 + $0xc] sm:$0x8] }
  0x57   : > { %v1406_v62 = vsel %vm509_vm1, %v1405_v53, %v1404_v52  ;;  %v3829_v3 = vpack.i.bf16 %v1627_v61, %v1541_v45  ;;  %v1573_v5 = vunpack.c.l.bf16 %v1569_v54  ;;  %v1660_v10 = vunpack.c.l.bf16 %v1656_v59  ;;  %v1791_v45 = vld [vmem:[%s3977_s8 + $0x2c] sm:$0x4]  ;;  %v1838_v61 = vld [vmem:[%s3977_s8 + $0x2c] sm:$0x8] }
  0x58   : > { %v1408_v4 = vsel %vm512_vm2, %v1407_v56, %v1406_v62  ;;  %v1578_v6 = vrot.slane %v1571_v58, 7  ;;  %v1580_v9 = vrot.slane %v1572_v0, 6  ;;  %v1661_v11 = vunpack.c.l.bf16 %v1657_v60  ;;  %v1837_v56 = vld [vmem:[%s3977_s8 + $0x1c] sm:$0x8] }
  0x59   : > { %v1410_v8 = vsel %vm515_vm3, %v1409_v63, %v1408_v4  ;;  %3830 = vrot.lane.b32.xlu1 %v3829_v3, %s3874_s9  ;;  %v1582_v15 = vrot.slane %v1573_v5, 5  ;;  %v1662_v16 = vunpack.c.l.bf16 %v1658_v1  ;;  %v1663_v17 = vunpack.c.l.bf16 %v1659_v2  ;;  %v1839_v62 = vld [vmem:[%s3977_s8 + $0x3c] sm:$0x8]  ;;  %v1881_v3 = vld [vmem:[%s3977_s8 + $0xc] sm:$0x8] }
  0x5a   : > { %v1579_v14 = vsel %vm509_vm1, %v1578_v6, %v1570_v57  ;;  %v1668_v20 = vrot.slane %v1660_v10, 2  ;;  %v1669_v21 = vrot.slane %v1661_v11, 1  ;;  %v1704_v22 = vunpack.c.l.bf16 %v1700_v7 }
  0x5b   : > { %v1581_v19 = vsel %vm512_vm2, %v1580_v9, %v1579_v14  ;;  %v1672_v26 = vrot.slane %v1663_v17, 7  ;;  %v1705_v27 = vunpack.c.l.bf16 %v1701_v12  ;;  %v1706_v28 = vunpack.c.l.bf16 %v1702_v13  ;;  %v1883_v13 = vld [vmem:[%s3977_s8 + $0x2c] sm:$0x8]  ;;  %v1884_v14 = vld [vmem:[%s3977_s8 + $0x3c] sm:$0x8] }
  0x5c   : > { %v1583_v25 = vsel %vm515_vm3, %v1582_v15, %v1581_v19  ;;  %v1670_v32 = vsel %vm509_vm1, %v1669_v21, %v1668_v20  ;;  %v1707_v33 = vunpack.c.l.bf16 %v1703_v18  ;;  %v1712_v34 = vrot.slane %v1704_v22, 3 }
  0x5d   : > { %v3834_v31 = vpack.i.bf16 %v1583_v25, %v1410_v8  ;;  %v1671_v37 = vsel %vm512_vm2, %v1662_v16, %v1670_v32  ;;  %v1713_v38 = vrot.slane %v1705_v27, 2  ;;  %v1715_v39 = vrot.slane %v1706_v28, 1  ;;  %v1882_v8 = vld [vmem:[%s3977_s8 + $0x1c] sm:$0x8]  ;;  %s3895_s8 = smov 40  }
  0x5e   : > { %v1748_v40 = vunpack.c.l.bf16 %v1744_v23  ;;  %v1673_v41 = vsel %vm515_vm3, %v1672_v26, %v1671_v37  ;;  %v1749_v42 = vunpack.c.l.bf16 %v1745_v24  ;;  %v1750_v43 = vunpack.c.l.bf16 %v1746_v29 }
  0x5f   : > { %3835 = vrot.lane.b32.xlu0 %v3834_v31, %s3874_s9  ;;  %v1751_v44 = vunpack.c.l.bf16 %v1747_v30  ;;  %v1714_v47 = vsel %vm509_vm1, %v1713_v38, %v1712_v34  ;;  %v1793_v49 = vunpack.c.l.bf16 %v1789_v35  ;;  %v1794_v50 = vunpack.c.l.bf16 %v1790_v36 }
  0x60   : > { %v1756_v48 = vrot.slane %v1748_v40, 4  ;;  %v1716_v52 = vsel %vm512_vm2, %v1715_v39, %v1714_v47  ;;  %v1757_v53 = vrot.slane %v1749_v42, 3  ;;  %v1759_v54 = vrot.slane %v1750_v43, 2 }
  0x61   : > { %v1761_v55 = vrot.slane %v1751_v44, 1  ;;  %v1717_v57 = vsel %vm515_vm3, %v1707_v33, %v1716_v52  ;;  %v1795_v58 = vunpack.c.l.bf16 %v1791_v45  ;;  %v1796_v59 = vunpack.c.l.bf16 %v1792_v46 }
  0x62   : > { %v1801_v60 = vrot.slane %v1793_v49, 5  ;;  %v3839_v63 = vpack.i.bf16 %v1717_v57, %v1673_v41  ;;  %v1758_v0 = vsel %vm509_vm1, %v1757_v53, %v1756_v48  ;;  %v1802_v1 = vrot.slane %v1794_v50, 4 }
  0x63   : > { %v1840_v2 = vunpack.c.l.bf16 %v1836_v51  ;;  %v1760_v4 = vsel %vm512_vm2, %v1759_v54, %v1758_v0  ;;  %v1804_v5 = vrot.slane %v1795_v58, 3  ;;  %v1806_v6 = vrot.slane %v1796_v59, 2 }
  0x64   : > { %v1841_v7 = vunpack.c.l.bf16 %v1837_v56  ;;  %3840 = vrot.lane.b32.xlu1 %v3839_v63, %s3874_s9  ;;  %v1762_v9 = vsel %vm515_vm3, %v1761_v55, %v1760_v4  ;;  %v1803_v10 = vsel %vm509_vm1, %v1802_v1, %v1801_v60  ;;  %v1842_v11 = vunpack.c.l.bf16 %v1838_v61 }
  0x65   : > { %v1843_v12 = vunpack.c.l.bf16 %v1839_v62  ;;  %v1805_v15 = vsel %vm512_vm2, %v1804_v5, %v1803_v10  ;;  %v1848_v16 = vrot.slane %v1840_v2, 6  ;;  %v1885_v18 = vunpack.c.l.bf16 %v1881_v3 }
  0x66   : > { %v1849_v17 = vrot.slane %v1841_v7, 5  ;;  %v1807_v19 = vsel %vm515_vm3, %v1806_v6, %v1805_v15  ;;  %v1851_v20 = vrot.slane %v1842_v11, 4  ;;  %v1886_v22 = vunpack.c.l.bf16 %v1882_v8 }
  0x67   : > { %v1853_v21 = vrot.slane %v1843_v12, 3  ;;  %v3844_v23 = vpack.i.bf16 %v1762_v9, %v1807_v19  ;;  %v1887_v25 = vunpack.c.l.bf16 %v1883_v13  ;;  %v1888_v26 = vunpack.c.l.bf16 %v1884_v14 }
  0x68   : > { %v1850_v24 = vsel %vm509_vm1, %v1849_v17, %v1848_v16  ;;  %v1893_v28 = vrot.slane %v1885_v18, 7  ;;  %v1894_v29 = vrot.slane %v1886_v22, 6 }
  0x69   : > { %v1852_v27 = vsel %vm512_vm2, %v1851_v20, %v1850_v24  ;;  %3845 = vrot.lane.b32.xlu0 %v3844_v23, %s3874_s9  ;;  %v1896_v30 = vrot.slane %v1887_v25, 5  ;;  %v1898_v31 = vrot.slane %v1888_v26, 4 }
  0x6a   : > { %v1854_v32 = vsel %vm515_vm3, %v1853_v21, %v1852_v27  ;;  %v1895_v33 = vsel %vm509_vm1, %v1894_v29, %v1893_v28  ;;  %vm1478_vm1 = vcmask 113664  }
  0x6b   : > { %v1897_v34 = vsel %vm512_vm2, %v1896_v30, %v1895_v33  ;;  %vm853_vm2 = vcmask 408704  }
  0x6c   : > { %v1899_v35 = vsel %vm515_vm3, %v1898_v31, %v1897_v34  ;;  %vm897_vm3 = vcmask 687504  }
  0x6d   : > { %v3849_v36 = vpack.i.bf16 %v1899_v35, %v1854_v32 }
  0x6f   : > { %3850 = vrot.lane.b32.xlu1 %v3849_v36, %s3874_s9  ;;  %s3896_s9 = smov 66  }
  0x8f   : > { %v3776_v37 = vpop.permute.xlu0 %3775 }
  0x90   : > { %v3778_v42 = vunpack.i.h.bf16 %v3776_v37  ;;  %v3777_v43 = vunpack.i.l.bf16 %v3776_v37 }
  0x92   : > { %v790_v50 = vsel %vm520_vm4, 0.0, %v3778_v42  ;;  %v615_v51 = vsel %vm520_vm4, 0.0, %v3777_v43 }
  0x93   : > { %v4230_v62 = vsel %vm522_vm5, %v615_v51, 0.0  ;;  %v4236_v1 = vsel %vm522_vm5, %v790_v50, 0.0 }
  0x94   : > { %v3786_v38 = vpop.permute.xlu1 %3785 }
  0x95   : > { %v3788_v44 = vunpack.i.h.bf16 %v3786_v38  ;;  %v3787_v45 = vunpack.i.l.bf16 %v3786_v38 }
  0x97   : > { %v704_v52 = vsel %vm520_vm4, 0.0, %v3788_v44  ;;  %v521_v53 = vsel %vm520_vm4, 0.0, %v3787_v45 }
  0x98   : > { %v4233_v0 = vsel %vm522_vm5, %v704_v52, 0.0  ;;  %v4239_v2 = vsel %vm522_vm5, %v521_v53, 0.0 }
  0x99   : > { %v3781_v39 = vpop.permute.xlu0 %3780 }
  0x9a   : > { %v3783_v46 = vunpack.i.h.bf16 %v3781_v39  ;;  %v3782_v47 = vunpack.i.l.bf16 %v3781_v39 }
  0x9c   : > { %v834_v54 = vsel %vm520_vm4, 0.0, %v3783_v46  ;;  %v660_v58 = vsel %vm520_vm4, 0.0, %v3782_v47 }
  0x9d   : > { %v4242_v3 = vsel %vm522_vm5, %v834_v54, 0.0  ;;  %v4248_v8 = vsel %vm522_vm5, %v660_v58, 0.0 }
  0x9f   : > { %v3791_v40 = vpop.permute.xlu1 %3790 }
  0xa0   : > { %v3793_v55 = vunpack.i.h.bf16 %v3791_v40  ;;  %v3792_v56 = vunpack.i.l.bf16 %v3791_v40 }
  0xa2   : > { %v964_v4 = vsel %vm520_vm4, 0.0, %v3793_v55  ;;  %v876_v5 = vsel %vm520_vm4, 0.0, %v3792_v56 }
  0xa3   : > { %v4258_v18 = vsel %vm522_vm5, %v964_v4, 0.0  ;;  %v4263_v21 = vsel %vm522_vm5, %v876_v5, 0.0 }
  0xa5   : > { %v3796_v41 = vpop.permute.xlu0 %3795 }
  0xa6   : > { %v3798_v57 = vunpack.i.h.bf16 %v3796_v41  ;;  %v3797_v59 = vunpack.i.l.bf16 %v3796_v41 }
  0xa8   : > { %v747_v6 = vsel %vm520_vm4, 0.0, %v3798_v57  ;;  %v570_v9 = vsel %vm520_vm4, 0.0, %v3797_v59 }
  0xa9   : > { %v4266_v22 = vsel %vm522_vm5, %v747_v6, 0.0  ;;  %v4272_v24 = vsel %vm522_vm5, %v570_v9, 0.0 }
  0xaa   : > { %v3801_v48 = vpop.permute.xlu1 %3800 }
  0xab   : > { %v3803_v60 = vunpack.i.h.bf16 %v3801_v48  ;;  %v3802_v61 = vunpack.i.l.bf16 %v3801_v48 }
  0xad   : > { %v1010_v10 = vsel %vm520_vm4, 0.0, %v3803_v60  ;;  %v920_v13 = vsel %vm520_vm4, 0.0, %v3802_v61 }
  0xae   : > { %v4269_v23 = vsel %vm522_vm5, %v1010_v10, 0.0  ;;  %v4277_v29 = vsel %vm522_vm5, %v920_v13, 0.0 }
  0xaf   : > { %v3806_v49 = vpop.permute.xlu0 %3805 }
  0xb0   : > { %v3808_v11 = vunpack.i.h.bf16 %v3806_v49  ;;  %v3807_v12 = vunpack.i.l.bf16 %v3806_v49 }
  0xb2   : > { %v1055_v25 = vsel %vm520_vm4, 0.0, %v3808_v11  ;;  %v1145_v26 = vsel %vm520_vm4, 0.0, %v3807_v12 }
  0xb3   : > { %v4282_v40 = vsel %vm522_vm5, %v1055_v25, 0.0  ;;  %v4285_v41 = vsel %vm522_vm5, %v1145_v26, 0.0 }
  0xb5   : > { %v3811_v63 = vpop.permute.xlu1 %3810 }
  0xb6   : > { %v3813_v27 = vunpack.i.h.bf16 %v3811_v63  ;;  %v3812_v30 = vunpack.i.l.bf16 %v3811_v63 }
  0xb8   : > { %v1100_v43 = vsel %vm520_vm4, 0.0, %v3813_v27  ;;  %v1192_v47 = vsel %vm520_vm4, 0.0, %v3812_v30 }
  0xb9   : > { %v4302_v59 = vsel %vm522_vm5, %v1100_v43, 0.0  ;;  %v4311_v63 = vsel %vm522_vm5, %v1192_v47, 0.0 }
  0xba   : > { %v3816_v7 = vpop.permute.xlu0 %3815 }
  0xbb   : > { %v3818_v31 = vunpack.i.h.bf16 %v3816_v7  ;;  %v3817_v32 = vunpack.i.l.bf16 %v3816_v7 }
  0xbd   : > { %v1281_v48 = vsel %vm520_vm4, 0.0, %v3818_v31  ;;  %v1236_v49 = vsel %vm520_vm4, 0.0, %v3817_v32 }
  0xbe   : > { %v4308_v61 = vsel %vm522_vm5, %v1281_v48, 0.0  ;;  %v4314_v4 = vsel %vm522_vm5, %v1236_v49, 0.0 }
  0xc0   : > { %v3821_v28 = vpop.permute.xlu1 %3820 }
  0xc1   : > { %v3822_v33 = vunpack.i.l.bf16 %v3821_v28  ;;  %v3823_v35 = vunpack.i.h.bf16 %v3821_v28 }
  0xc3   : > { %v1457_v50 = vsel %vm520_vm4, 0.0, %v3822_v33  ;;  %v1327_v51 = vsel %vm520_vm4, 0.0, %v3823_v35 }
  0xc4   : > { %v4305_v60 = vsel %vm522_vm5, %v1457_v50, 0.0  ;;  %v4319_v7 = vsel %vm522_vm5, %v1327_v51, 0.0 }
  0xc5   : > { %v3826_v34 = vpop.permute.xlu0 %3825 }
  0xc6   : > { %v3828_v36 = vunpack.i.h.bf16 %v3826_v34  ;;  %v3827_v39 = vunpack.i.l.bf16 %v3826_v34 }
  0xc8   : > { %v1370_v52 = vsel %vm520_vm4, 0.0, %v3828_v36  ;;  %v1502_v56 = vsel %vm520_vm4, 0.0, %v3827_v39 }
  0xc9   : > { %v4322_v9 = vsel %vm522_vm5, %v1370_v52, 0.0  ;;  %v4329_v12 = vsel %vm522_vm5, %v1502_v56, 0.0 }
  0xcb   : > { %v3831_v53 = vpop.permute.xlu1 %3830 }
  0xcc   : > { %v3833_v57 = vunpack.i.h.bf16 %v3831_v53  ;;  %v3832_v58 = vunpack.i.l.bf16 %v3831_v53 }
  0xce   : > { %v1631_v5 = vsel %vm520_vm4, 0.0, %v3833_v57  ;;  %v1545_v6 = vsel %vm520_vm4, 0.0, %v3832_v58 }
  0xcf   : > { %v4326_v11 = vsel %vm522_vm5, %v1631_v5, 0.0  ;;  %v4332_v13 = vsel %vm522_vm5, %v1545_v6, 0.0 }
  0xd1   : > { %v3836_v26 = vpop.permute.xlu0 %3835 }
  0xd2   : > { %v3666_v25 = vpop.f32.mrf.mxu0  ;;  %v3838_v33 = vunpack.i.h.bf16 %v3836_v26  ;;  %v3837_v39 = vunpack.i.l.bf16 %v3836_v26 }
  0xd3   : > { %v415_v32 = vrot.slane %v3666_v25, 7  ;;  %v421_v50 = vrot.slane %v3666_v25, 1  ;;  %v427_v51 = vmul.f32 0.75, %v3666_v25 }
  0xd4   : > { %v356_v36 = vpop.f32.mrf.mxu0  ;;  %v1414_v5 = vsel %vm520_vm4, 0.0, %v3837_v39  ;;  %v1587_v43 = vsel %vm520_vm4, 0.0, %v3838_v33 }
  0xd5   : > { %v420_v49 = vsel %vm389_vm6, %v3666_v25, %v415_v32  ;;  %v390_v52 = vrot.slane %v356_v36, 7  ;;  %v397_v56 = vrot.slane %v356_v36, 1  ;;  %v403_v57 = vmul.f32 0.75, %v356_v36 }
  0xd6   : > { %v429_v53 = vmul.f32 0.25, %v420_v49  ;;  %v3667_v58 = vpop.f32.mrf.mxu0  ;;  %v4350_v25 = vsel %vm522_vm5, %v1414_v5, 0.0  ;;  %v4356_v33 = vsel %vm522_vm5, %v1587_v43, 0.0 }
  0xd7   : > { %v395_v6 = vsel %vm389_vm6, %v356_v36, %v390_v52  ;;  %v416_v26 = vrot.slane %v3667_v58, 7  ;;  %v422_v31 = vrot.slane %v3667_v58, 1  ;;  %v428_v35 = vmul.f32 0.75, %v3667_v58 }
  0xd8   : > { %v4347_v47 = vadd.f32 %v429_v53, %v427_v51  ;;  %v405_v48 = vmul.f32 0.25, %v395_v6  ;;  %v359_v30 = vpop.f32.mrf.mxu0 }
  0xd9   : > { %v417_v49 = vsel %vm389_vm6, %v415_v32, %v416_v26  ;;  %v423_v34 = vsel %vm396_vm7, %v421_v50, %v422_v31  ;;  %v426_v39 = vsel %vm396_vm7, %v422_v31, %v3667_v58  ;;  %v391_v46 = vrot.slane %v359_v30, 7 }
  0xda   : > { %v430_v36 = vmul.f32 0.25, %v417_v49  ;;  %v433_v28 = vmul.f32 0.25, %v423_v34  ;;  %v434_v45 = vmul.f32 0.25, %v426_v39  ;;  %v3670_v10 = vpop.f32.mrf.mxu0  ;;  %v4358_v53 = vadd.f32 %v405_v48, %v403_v57 }
  0xdb   : > { %v392_v6 = vsel %vm389_vm6, %v390_v52, %v391_v46  ;;  %v398_v5 = vrot.slane %v359_v30, 1  ;;  %v463_v20 = vrot.slane %v3670_v10, 7  ;;  %v404_v50 = vmul.f32 0.75, %v359_v30 }
  0xdc   : > { %v4361_v44 = vadd.f32 %v430_v36, %v428_v35  ;;  %v4363_v32 = vadd.f32 %v433_v28, %v427_v51  ;;  %v406_v31 = vmul.f32 0.25, %v392_v6  ;;  %v372_v58 = vpop.f32.mrf.mxu0  ;;  %v4365_v26 = vadd.f32 %v434_v45, %v428_v35  ;;  %v3841_v6 = vpop.permute.xlu1 %3840 }
  0xdd   : > { %v399_v34 = vsel %vm396_vm7, %v397_v56, %v398_v5  ;;  %v402_v43 = vsel %vm396_vm7, %v398_v5, %v359_v30  ;;  %v468_v48 = vsel %vm389_vm6, %v3670_v10, %v463_v20  ;;  %v469_v39 = vrot.slane %v3670_v10, 1 }
  0xde   : > { %v4370_v49 = vadd.f32 %v406_v31, %v404_v50  ;;  %v409_v46 = vmul.f32 0.25, %v399_v34  ;;  %v410_v52 = vmul.f32 0.25, %v402_v43  ;;  %v3671_v36 = vpop.f32.mrf.mxu0  ;;  %v475_v19 = vmul.f32 0.75, %v3670_v10 }
  0xdf   : > { %v477_v28 = vmul.f32 0.25, %v468_v48  ;;  %v439_v51 = vrot.slane %v372_v58, 7  ;;  %v445_v27 = vrot.slane %v372_v58, 1  ;;  %v451_v45 = vmul.f32 0.75, %v372_v58 }
  0xe0   : > { %v4372_v42 = vadd.f32 %v409_v46, %v403_v57  ;;  %v464_v35 = vrot.slane %v3671_v36, 7  ;;  %v470_v56 = vrot.slane %v3671_v36, 1  ;;  %v375_v55 = vpop.f32.mrf.mxu0  ;;  %v4374_v30 = vadd.f32 %v410_v52, %v404_v50 }
  0xe1   : > { %v444_v5 = vsel %vm389_vm6, %v372_v58, %v439_v51  ;;  %v476_v31 = vmul.f32 0.75, %v3671_v36  ;;  %v440_v34 = vrot.slane %v375_v55, 7  ;;  %v4381_v50 = vadd.f32 %v477_v28, %v475_v19 }
  0xe2   : > { %v453_v43 = vmul.f32 0.25, %v444_v5  ;;  %v465_v54 = vsel %vm389_vm6, %v463_v20, %v464_v35  ;;  %v471_v10 = vsel %vm396_vm7, %v469_v39, %v470_v56  ;;  %v474_v48 = vsel %vm396_vm7, %v470_v56, %v3671_v36  ;;  %v3846_v5 = vpop.permute.xlu0 %3845 }
  0xe3   : > { %v478_v57 = vmul.f32 0.25, %v465_v54  ;;  %v481_v46 = vmul.f32 0.25, %v471_v10  ;;  %v482_v38 = vmul.f32 0.25, %v474_v48  ;;  %v441_v37 = vsel %vm389_vm6, %v439_v51, %v440_v34  ;;  %v4389_v54 = vpop.permute.xlu1 %3850 }
  0xe4   : > { %v4383_v52 = vadd.f32 %v453_v43, %v451_v45  ;;  %v446_v58 = vrot.slane %v375_v55, 1  ;;  %v454_v17 = vmul.f32 0.25, %v441_v37  ;;  %v452_v36 = vmul.f32 0.75, %v375_v55 }
  0xe5   : > { %v4385_v20 = vadd.f32 %v478_v57, %v476_v31  ;;  %v4387_v39 = vadd.f32 %v481_v46, %v475_v19  ;;  %v3843_v35 = vunpack.i.h.bf16 %v3841_v6  ;;  %v4391_v56 = vadd.f32 %v482_v38, %v476_v31 }
  0xe6   : > { %v447_v51 = vsel %vm396_vm7, %v445_v27, %v446_v58  ;;  %v450_v28 = vsel %vm396_vm7, %v446_v58, %v375_v55  ;;  %v3842_v34 = vunpack.i.l.bf16 %v3841_v6  ;;  %v4395_v43 = vadd.f32 %v454_v17, %v452_v36 }
  0xe7   : > { %v457_v37 = vmul.f32 0.25, %v447_v51  ;;  %v458_v10 = vmul.f32 0.25, %v450_v28  ;;  %v3848_v48 = vunpack.i.h.bf16 %v3846_v5  ;;  %v4398_v57 = vsel %vm520_vm4, 0.0, %v3843_v35 }
  0xe8   : > { %v4401_v19 = vsel %vm520_vm4, 0.0, %v3842_v34  ;;  %v3847_v46 = vunpack.i.l.bf16 %v3846_v5  ;;  %v3853_v38 = vunpack.i.h.bf16 %v4389_v54  ;;  %v706_v17 = vrot.slane %v4358_v53, 2 }
  0xe9   : > { %v4404_v31 = vadd.f32 %v457_v37, %v451_v45  ;;  %v4406_v27 = vadd.f32 %v458_v10, %v452_v36  ;;  %v4411_v6 = vsel %vm520_vm4, 0.0, %v3848_v48  ;;  %v708_v5 = vrot.slane %v4347_v47, 1 }
  0xea   : > { %5836 = vst [vmem:[#allocation4_spill] sm:$0xff] %v4411_v6  ;;  %v4414_v58 = vsel %vm520_vm4, 0.0, %v3847_v46  ;;  %v4417_v35 = vsel %vm520_vm4, 0.0, %v3853_v38  ;;  %v710_v45 = vrot.slane %v4381_v50, 7  ;;  %v618_v36 = vrot.slane %v4358_v53, 1 }
  0xeb   : > { %5837 = vst [vmem:[#allocation5_spill] sm:$0xff] %v4414_v58  ;;  %5838 = vst [vmem:[#allocation6_spill] sm:$0xff] %v4417_v35  ;;  %v620_v51 = vrot.slane %v4383_v52, 7  ;;  %v622_v28 = vrot.slane %v4381_v50, 6  ;;  %v715_v34 = vsel %vm389_vm6, %v706_v17, %v708_v5  ;;  %v792_v37 = vrot.slane %v4358_v53, 3 }
  0xec   : > { %v794_v10 = vrot.slane %v4347_v47, 2  ;;  %v796_v48 = vrot.slane %v4383_v52, 1  ;;  %v716_v46 = vsel %vm537_vm8, %v715_v34, %v4383_v52  ;;  %v627_v38 = vsel %vm389_vm6, %v618_v36, %v4347_v47 }
  0xed   : > { %v525_v55 = vrot.slane %v4347_v47, 7  ;;  %v528_v16 = vrot.slane %v4383_v52, 6  ;;  %v717_v15 = vsel %vm539_vm9, %v716_v46, %v710_v45  ;;  %v628_v17 = vsel %vm537_vm8, %v627_v38, %v620_v51 }
  0xee   : > { %v801_v5 = vsel %vm389_vm6, %v792_v37, %v794_v10  ;;  %v531_v14 = vrot.slane %v4381_v50, 5  ;;  %v5839_v35 = vrot.slane %v4233_v0, 4  ;;  %v629_v34 = vsel %vm539_vm9, %v628_v17, %v622_v28 }
  0xef   : > { %v802_v36 = vsel %vm537_vm8, %v801_v5, %v796_v48  ;;  %v536_v6 = vsel %vm389_vm6, %v4358_v53, %v525_v55  ;;  %v5840_v45 = vrot.slane %v4230_v62, 4  ;;  %v970_v62 = vrot.slane %v4383_v52, 3 }
  0xf0   : > { %v718_v58 = vsel %vm541_vm10, %v717_v15, %v5839_v35  ;;  %v803_v37 = vsel %vm539_vm9, %v802_v36, %v4381_v50  ;;  %v538_v0 = vsel %vm537_vm8, %v536_v6, %v528_v16  ;;  %v966_v15 = vrot.slane %v4358_v53, 5 }
  0xf1   : > { %720 = vrot.lane.b32.xlu1 %v718_v58, %s3875_s10  ;;  %v630_v51 = vsel %vm541_vm10, %v629_v34, %v5840_v45  ;;  %v5841_v35 = vrot.slane %v4236_v1, 4  ;;  %v540_v55 = vsel %vm539_vm9, %v538_v0, %v531_v14  ;;  %v968_v58 = vrot.slane %v4347_v47, 4  ;;  %s3897_s10 = smov 116  }
  0xf2   : > { %632 = vrot.lane.b32.xlu0 %v630_v51, %s3876_s11  ;;  %v5842_v10 = vrot.slane %v4239_v2, 4  ;;  %v972_v16 = vrot.slane %v4381_v50, 2  ;;  %v878_v6 = vrot.slane %v4358_v53, 4  ;;  %v880_v46 = vrot.slane %v4347_v47, 3  ;;  %s3898_s11 = smov 14  }
  0xf3   : > { %v804_v28 = vsel %vm541_vm10, %v803_v37, %v5841_v35  ;;  %v977_v1 = vsel %vm389_vm6, %v966_v15, %v968_v58  ;;  %v882_v38 = vrot.slane %v4383_v52, 2  ;;  %v884_v14 = vrot.slane %v4381_v50, 1 }
  0xf4   : > { %v542_v48 = vsel %vm541_vm10, %v540_v55, %v5842_v10  ;;  %v1057_v17 = vrot.slane %v4358_v53, 6  ;;  %v978_v2 = vsel %vm537_vm8, %v977_v1, %v970_v62  ;;  %v889_v5 = vsel %vm389_vm6, %v878_v6, %v880_v46 }
  0xf5   : > { %806 = vrot.lane.b32.xlu1 %v804_v28, %s3877_s12  ;;  %v1059_v34 = vrot.slane %v4347_v47, 5  ;;  %v1061_v36 = vrot.slane %v4383_v52, 4  ;;  %v979_v45 = vsel %vm539_vm9, %v978_v2, %v972_v16  ;;  %v890_v51 = vsel %vm537_vm8, %v889_v5, %v882_v38  ;;  %s3899_s12 = smov 82  }
  0xf6   : > { %544 = vrot.lane.b32.xlu0 %v542_v48, %s3878_s13  ;;  %v1063_v37 = vrot.slane %v4381_v50, 3  ;;  %v1147_v0 = vrot.slane %v4358_v53, 7  ;;  %v5843_v15 = vrot.slane %v4258_v18, 4  ;;  %v891_v28 = vsel %vm539_vm9, %v890_v51, %v884_v14  ;;  %s3900_s13 = smov 48  }
  0xf7   : > { %v1068_v55 = vsel %vm389_vm6, %v1057_v17, %v1059_v34  ;;  %v1149_v58 = vrot.slane %v4347_v47, 6  ;;  %v5844_v62 = vrot.slane %v4263_v21, 4  ;;  %v1151_v16 = vrot.slane %v4383_v52, 5 }
  0xf8   : > { %v980_v35 = vsel %vm541_vm10, %v979_v45, %v5843_v15  ;;  %v1069_v48 = vsel %vm537_vm8, %v1068_v55, %v1061_v36  ;;  %v1153_v53 = vrot.slane %v4381_v50, 4  ;;  %v749_v46 = vrot.slane %v4372_v42, 2 }
  0xf9   : > { %v892_v10 = vsel %vm541_vm10, %v891_v28, %v5844_v62  ;;  %982 = vrot.lane.b32.xlu1 %v980_v35, %s3879_s14  ;;  %v1070_v18 = vsel %vm539_vm9, %v1069_v48, %v1063_v37  ;;  %v1158_v6 = vsel %vm389_vm6, %v1147_v0, %v1149_v58  ;;  %v751_v47 = vrot.slane %v4363_v32, 1  ;;  %s3901_s14 = smov 56  }
  0xfa   : > { %894 = vrot.lane.b32.xlu0 %v892_v10, %s3880_s15  ;;  %v5845_v21 = vrot.slane %v4282_v40, 4  ;;  %v1159_v52 = vsel %vm537_vm8, %v1158_v6, %v1151_v16  ;;  %v753_v50 = vrot.slane %v4387_v39, 7  ;;  %v1459_v38 = vrot.slane %v4374_v30, 2  ;;  %s3902_s15 = smov 22  }
  0xfb   : > { %v1160_v14 = vsel %vm539_vm9, %v1159_v52, %v1153_v53  ;;  %v758_v17 = vsel %vm389_vm6, %v749_v46, %v751_v47  ;;  %v1461_v2 = vrot.slane %v4365_v26, 1  ;;  %v1463_v5 = vrot.slane %v4391_v56, 7 }
  0xfc   : > { %v1071_v1 = vsel %vm541_vm10, %v1070_v18, %v5845_v21  ;;  %v5846_v34 = vrot.slane %v4285_v41, 4  ;;  %v759_v36 = vsel %vm537_vm8, %v758_v17, %v4404_v31  ;;  %v836_v45 = vrot.slane %v4372_v42, 3 }
  0xfd   : > { %v838_v51 = vrot.slane %v4363_v32, 2  ;;  %1073 = vrot.lane.b32.xlu1 %v1071_v1, %s3881_s16  ;;  %v760_v37 = vsel %vm539_vm9, %v759_v36, %v753_v50  ;;  %v1468_v0 = vsel %vm389_vm6, %v1459_v38, %v1461_v2  ;;  %v840_v15 = vrot.slane %v4404_v31, 1 }
  0xfe   : > { %v1161_v40 = vsel %vm541_vm10, %v1160_v14, %v5846_v34  ;;  %v1416_v41 = vrot.slane %v4370_v49, 2  ;;  %v5847_v35 = vunpack.i.l.bf16 %v4389_v54  ;;  %v1469_v55 = vsel %vm537_vm8, %v1468_v0, %v4406_v27 }
  0xff   : > { %1163 = vrot.lane.b32.xlu0 %v1161_v40, %s3882_s17  ;;  %v845_v58 = vsel %vm389_vm6, %v836_v45, %v838_v51  ;;  %v1418_v62 = vrot.slane %v4361_v44, 1  ;;  %v5848_v10 = vrot.slane %v4266_v22, 4  ;;  %v1470_v16 = vsel %vm539_vm9, %v1469_v55, %v1463_v5 }
 0x100   : > { %v4517_v28 = vsel %vm520_vm4, 0.0, %v5847_v35  ;;  %v846_v54 = vsel %vm537_vm8, %v845_v58, %v840_v15  ;;  %v1420_v53 = vrot.slane %v4385_v20, 7  ;;  %v1423_v6 = vrot.slane %v4350_v25, 4 }
 0x101   : > { %v761_v48 = vsel %vm541_vm10, %v760_v37, %v5848_v10  ;;  %v847_v18 = vsel %vm539_vm9, %v846_v54, %v4387_v39  ;;  %v1425_v46 = vsel %vm389_vm6, %v1416_v41, %v1418_v62  ;;  %v1012_v47 = vrot.slane %v4372_v42, 5 }
 0x102   : > { %763 = vrot.lane.b32.xlu1 %v761_v48, %s3883_s18  ;;  %v5849_v22 = vrot.slane %v4305_v60, 4  ;;  %v1426_v1 = vsel %vm537_vm8, %v1425_v46, %v4395_v43  ;;  %v1014_v52 = vrot.slane %v4363_v32, 4  ;;  %v1016_v50 = vrot.slane %v4404_v31, 3  ;;  %s3903_s18 = smov 90  }
 0x103   : > { %v5850_v25 = vrot.slane %v4242_v3, 4  ;;  %v1427_v14 = vsel %vm539_vm9, %v1426_v1, %v1420_v53  ;;  %v663_v17 = vrot.slane %v4372_v42, 1  ;;  %v665_v60 = vrot.slane %v4404_v31, 7 }
 0x104   : > { %v1471_v21 = vsel %vm541_vm10, %v1470_v16, %v5849_v22  ;;  %v1018_v2 = vrot.slane %v4387_v39, 2  ;;  %v1023_v5 = vsel %vm389_vm6, %v1012_v47, %v1014_v52  ;;  %v667_v34 = vrot.slane %v4387_v39, 6 }
 0x105   : > { %1473 = vrot.lane.b32.xlu0 %v1471_v21, %s3884_s19  ;;  %v848_v38 = vsel %vm541_vm10, %v847_v18, %v5850_v25  ;;  %v1102_v40 = vrot.slane %v4372_v42, 6  ;;  %v1024_v36 = vsel %vm537_vm8, %v1023_v5, %v1016_v50  ;;  %v672_v3 = vsel %vm389_vm6, %v663_v17, %v4363_v32  ;;  %s3904_s19 = smov 124  }
 0x106   : > { %v1104_v45 = vrot.slane %v4363_v32, 5  ;;  %v1106_v51 = vrot.slane %v4404_v31, 4  ;;  %850 = vrot.lane.b32.xlu1 %v848_v38, %s3885_s20  ;;  %v1428_v37 = vsel %vm541_vm10, %v1427_v14, %v1423_v6  ;;  %v1025_v0 = vsel %vm539_vm9, %v1024_v36, %v1018_v2  ;;  %s3906_s20 = smov 64  }
 0x107   : > { %v673_v15 = vsel %vm537_vm8, %v672_v3, %v665_v60  ;;  %v573_v41 = vrot.slane %v4363_v32, 7  ;;  %v1108_v55 = vrot.slane %v4387_v39, 3  ;;  %v576_v62 = vrot.slane %v4404_v31, 6 }
 0x108   : > { %v674_v35 = vsel %vm539_vm9, %v673_v15, %v667_v34  ;;  %v1113_v58 = vsel %vm389_vm6, %v1102_v40, %v1104_v45  ;;  %v5851_v10 = vrot.slane %v4269_v23, 4  ;;  %v579_v54 = vrot.slane %v4387_v39, 5 }
 0x109   : > { %1430 = vrot.lane.b32.xlu0 %v1428_v37, %s3886_s23  ;;  %v1114_v16 = vsel %vm537_vm8, %v1113_v58, %v1106_v51  ;;  %v584_v53 = vsel %vm389_vm6, %v4372_v42, %v573_v41  ;;  %v1284_v46 = vrot.slane %v4365_v26, 7  ;;  %v1287_v47 = vrot.slane %v4406_v27, 6  ;;  %s3907_s23 = smov 30  }
 0x10a   : > { %v1026_v48 = vsel %vm541_vm10, %v1025_v0, %v5851_v10  ;;  %v1115_v18 = vsel %vm539_vm9, %v1114_v16, %v1108_v55  ;;  %v585_v6 = vsel %vm537_vm8, %v584_v53, %v576_v62  ;;  %v5852_v23 = vrot.slane %v4248_v8, 4 }
 0x10b   : > { %1028 = vrot.lane.b32.xlu1 %v1026_v48, %s3887_s24  ;;  %v5853_v21 = vrot.slane %v4302_v59, 4  ;;  %v586_v52 = vsel %vm539_vm9, %v585_v6, %v579_v54  ;;  %v922_v50 = vrot.slane %v4372_v42, 4  ;;  %v1290_v25 = vrot.slane %v4391_v56, 5  ;;  %s3908_s24 = smov 60  }
 0x10c   : > { %v675_v22 = vsel %vm541_vm10, %v674_v35, %v5852_v23  ;;  %v1295_v38 = vsel %vm389_vm6, %v4374_v30, %v1284_v46  ;;  %v924_v14 = vrot.slane %v4363_v32, 3  ;;  %v926_v8 = vrot.slane %v4404_v31, 2 }
 0x10d   : > { %v1116_v1 = vsel %vm541_vm10, %v1115_v18, %v5853_v21  ;;  %677 = vrot.lane.b32.xlu0 %v675_v22, %s3888_s25  ;;  %v5854_v17 = vrot.slane %v4272_v24, 4  ;;  %v1296_v60 = vsel %vm537_vm8, %v1295_v38, %v1287_v47  ;;  %v1330_v2 = vrot.slane %v4370_v49, 1  ;;  %s3909_s25 = smov 93  }
 0x10e   : > { %v1332_v5 = vrot.slane %v4395_v43, 7  ;;  %v1297_v34 = vsel %vm539_vm9, %v1296_v60, %v1290_v25  ;;  %v928_v40 = vrot.slane %v4387_v39, 1  ;;  %v933_v36 = vsel %vm389_vm6, %v922_v50, %v924_v14 }
 0x10f   : > { %v587_v59 = vsel %vm541_vm10, %v586_v52, %v5854_v17  ;;  %v1194_v3 = vrot.slane %v4372_v42, 7  ;;  %1118 = vrot.lane.b32.xlu1 %v1116_v1, %s3889_s26  ;;  %v934_v24 = vsel %vm537_vm8, %v933_v36, %v926_v8  ;;  %v1334_v45 = vrot.slane %v4385_v20, 6 }
 0x110   : > { %v1339_v51 = vsel %vm389_vm6, %v1330_v2, %v4361_v44  ;;  %v1196_v37 = vrot.slane %v4363_v32, 6  ;;  %v5855_v0 = vrot.slane %v4308_v61, 4  ;;  %v935_v42 = vsel %vm539_vm9, %v934_v24, %v928_v40 }
 0x111   : > { %589 = vrot.lane.b32.xlu0 %v587_v59, %s3890_s27  ;;  %v1340_v41 = vsel %vm537_vm8, %v1339_v51, %v1332_v5  ;;  %v1198_v35 = vrot.slane %v4404_v31, 5  ;;  %v1200_v58 = vrot.slane %v4387_v39, 4  ;;  %v1373_v32 = vrot.slane %v4374_v30, 1  ;;  %s3910_s27 = smov 59  }
 0x112   : > { %v1298_v15 = vsel %vm541_vm10, %v1297_v34, %v5855_v0  ;;  %v1341_v55 = vsel %vm539_vm9, %v1340_v41, %v1334_v45  ;;  %v1205_v62 = vsel %vm389_vm6, %v1194_v3, %v1196_v37  ;;  %v5856_v10 = vrot.slane %v4277_v29, 4 }
 0x113   : > { %v1206_v48 = vsel %vm537_vm8, %v1205_v62, %v1198_v35  ;;  %v1375_v16 = vrot.slane %v4406_v27, 7  ;;  %v1377_v54 = vrot.slane %v4391_v56, 6  ;;  %1300 = vrot.lane.b32.xlu1 %v1298_v15, %s3891_s28  ;;  %v1382_v39 = vsel %vm389_vm6, %v1373_v32, %v4365_v26  ;;  %s3911_s28 = smov 94  }
 0x114   : > { %v936_v61 = vsel %vm541_vm10, %v935_v42, %v5856_v10  ;;  %v1207_v31 = vsel %vm539_vm9, %v1206_v48, %v1200_v58  ;;  %v1239_v53 = vrot.slane %v4361_v44, 7  ;;  %v1242_v18 = vrot.slane %v4395_v43, 6 }
 0x115   : > { %938 = vrot.lane.b32.xlu0 %v936_v61, %s3892_s29  ;;  %v5857_v29 = vrot.slane %v4319_v7, 4  ;;  %v1383_v46 = vsel %vm537_vm8, %v1382_v39, %v1375_v16  ;;  %v1245_v47 = vrot.slane %v4385_v20, 5  ;;  %v1633_v23 = vrot.slane %v4374_v30, 4  ;;  %s3912_s29 = smov 127  }
 0x116   : > { %v1384_v22 = vsel %vm539_vm9, %v1383_v46, %v1377_v54  ;;  %v1250_v21 = vsel %vm389_vm6, %v4370_v49, %v1239_v53  ;;  %v1635_v1 = vrot.slane %v4365_v26, 3  ;;  %v1637_v52 = vrot.slane %v4406_v27, 2 }
 0x117   : > { %v1342_v6 = vsel %vm541_vm10, %v1341_v55, %v5857_v29  ;;  %v5858_v50 = vrot.slane %v4311_v63, 4  ;;  %v1251_v25 = vsel %vm537_vm8, %v1250_v21, %v1242_v18  ;;  %v1639_v38 = vrot.slane %v4391_v56, 1 }
 0x118   : > { %v1504_v14 = vrot.slane %v4370_v49, 3  ;;  %1344 = vrot.lane.b32.xlu1 %v1342_v6, %s3893_s30  ;;  %v1252_v8 = vsel %vm539_vm9, %v1251_v25, %v1245_v47  ;;  %v1644_v17 = vsel %vm389_vm6, %v1633_v23, %v1635_v1  ;;  %v1506_v59 = vrot.slane %v4361_v44, 2 }
 0x119   : > { %v1208_v7 = vsel %vm541_vm10, %v1207_v31, %v5858_v50  ;;  %v1508_v60 = vrot.slane %v4395_v43, 1  ;;  %v5859_v63 = vrot.slane %v4322_v9, 4  ;;  %v1645_v5 = vsel %vm537_vm8, %v1644_v17, %v1637_v52 }
 0x11a   : > { %1210 = vrot.lane.b32.xlu0 %v1208_v7, %s3894_s7  ;;  %v1589_v34 = vrot.slane %v4370_v49, 4  ;;  %v1591_v40 = vrot.slane %v4361_v44, 3  ;;  %v5860_v36 = vrot.slane %v4314_v4, 4  ;;  %v1646_v24 = vsel %vm539_vm9, %v1645_v5, %v1639_v38 }
 0x11b   : > { %v1385_v2 = vsel %vm541_vm10, %v1384_v22, %v5859_v63  ;;  %v1513_v45 = vsel %vm389_vm6, %v1504_v14, %v1506_v59  ;;  %v1593_v51 = vrot.slane %v4395_v43, 2  ;;  %v1595_v37 = vrot.slane %v4385_v20, 1 }
 0x11c   : > { %v1253_v3 = vsel %vm541_vm10, %v1252_v8, %v5860_v36  ;;  %v1514_v9 = vsel %vm537_vm8, %v1513_v45, %v1508_v60  ;;  %v1598_v0 = vrot.slane %v4356_v33, 4  ;;  %v1600_v15 = vsel %vm389_vm6, %v1589_v34, %v1591_v40  ;;  %1387 = vrot.lane.b32.xlu1 %v1385_v2, %s3895_s8  ;;  %v5865_v2 = vld [vmem:[#allocation5_spill] sm:$0xff] }
 0x11d   : > { %v1515_v4 = vsel %vm539_vm9, %v1514_v9, %v4385_v20  ;;  %v1601_v42 = vsel %vm537_vm8, %v1600_v15, %v1593_v51  ;;  %v1547_v41 = vrot.slane %v4374_v30, 3  ;;  %v1549_v35 = vrot.slane %v4365_v26, 2  ;;  %v5866_v15 = vld [vmem:[#allocation6_spill] sm:$0xff] }
 0x11e   : > { %1255 = vrot.lane.b32.xlu0 %v1253_v3, %s3896_s9  ;;  %v5861_v55 = vrot.slane %v4326_v11, 4  ;;  %v5862_v33 = vrot.slane %v4329_v12, 4  ;;  %v1602_v32 = vsel %vm539_vm9, %v1601_v42, %v1595_v37  ;;  %v1551_v10 = vrot.slane %v4406_v27, 1 }
 0x11f   : > { %v1556_v61 = vsel %vm389_vm6, %v1547_v41, %v1549_v35  ;;  %v1722_v48 = vsel %vm522_vm5, %v4398_v57, 0.0  ;;  %v1723_v16 = vrot.slane %v4374_v30, 5  ;;  %v1725_v54 = vrot.slane %v4365_v26, 4 }
 0x120   : > { %v1647_v58 = vsel %vm541_vm10, %v1646_v24, %v5861_v55  ;;  %v1516_v62 = vsel %vm541_vm10, %v1515_v4, %v5862_v33  ;;  %v1603_v11 = vsel %vm541_vm10, %v1602_v32, %v1598_v0  ;;  %v1557_v31 = vsel %vm537_vm8, %v1556_v61, %v1551_v10 }
 0x121   : > { %v1727_v12 = vrot.slane %v4406_v27, 3  ;;  %v1729_v39 = vrot.slane %v4391_v56, 2  ;;  %1649 = vrot.lane.b32.xlu1 %v1647_v58, %s3897_s10  ;;  %v1558_v53 = vsel %vm539_vm9, %v1557_v31, %v4391_v56  ;;  %v1734_v18 = vsel %vm389_vm6, %v1723_v16, %v1725_v54  ;;  %s3917_s10 = smov 35  }
 0x122   : > { %v1678_v57 = vsel %vm522_vm5, %v4401_v19, 0.0  ;;  %v1679_v29 = vrot.slane %v4370_v49, 5  ;;  %1518 = vrot.lane.b32.xlu0 %v1516_v62, %s3898_s11  ;;  %v1732_v6 = vrot.slane %v1722_v48, 4  ;;  %v1681_v47 = vrot.slane %v4361_v44, 4  ;;  %v5864_v19 = vld [vmem:[#allocation4_spill] sm:$0xff] }
 0x123   : > { %v1735_v46 = vsel %vm537_vm8, %v1734_v18, %v1727_v12  ;;  %v1683_v23 = vrot.slane %v4395_v43, 3  ;;  %v5863_v22 = vrot.slane %v4332_v13, 4  ;;  %v1685_v52 = vrot.slane %v4385_v20, 2 }
 0x124   : > { %v1736_v1 = vsel %vm539_vm9, %v1735_v46, %v1729_v39  ;;  %v1767_v50 = vsel %vm522_vm5, %v5864_v19, 0.0  ;;  %v1688_v7 = vrot.slane %v1678_v57, 4  ;;  %v1690_v25 = vsel %vm389_vm6, %v1679_v29, %v1681_v47 }
 0x125   : > { %v1559_v21 = vsel %vm541_vm10, %v1558_v53, %v5863_v22  ;;  %v1768_v38 = vrot.slane %v4370_v49, 6  ;;  %v1770_v14 = vrot.slane %v4361_v44, 5  ;;  %1605 = vrot.lane.b32.xlu1 %v1603_v11, %s3899_s12  ;;  %v1691_v13 = vsel %vm537_vm8, %v1690_v25, %v1683_v23  ;;  %s3700_s12 = smul.u32 72, %s5919_s22 }
 0x126   : > { %v1772_v8 = vrot.slane %v4395_v43, 4  ;;  %v1774_v17 = vrot.slane %v4385_v20, 3  ;;  %v1777_v59 = vrot.slane %v1767_v50, 4  ;;  %1561 = vrot.lane.b32.xlu0 %v1559_v21, %s3900_s13  ;;  %v1692_v60 = vsel %vm539_vm9, %v1691_v13, %v1685_v52 }
 0x127   : > { %v1779_v63 = vsel %vm389_vm6, %v1768_v38, %v1770_v14  ;;  %v1812_v5 = vsel %vm522_vm5, %v5865_v2, 0.0  ;;  %v1813_v34 = vrot.slane %v4374_v30, 6  ;;  %v1737_v40 = vsel %vm541_vm10, %v1736_v1, %v1732_v6 }
 0x128   : > { %v1780_v36 = vsel %vm537_vm8, %v1779_v63, %v1772_v8  ;;  %v1815_v3 = vrot.slane %v4365_v26, 5  ;;  %v1817_v24 = vrot.slane %v4406_v27, 4  ;;  %v1693_v45 = vsel %vm541_vm10, %v1692_v60, %v1688_v7 }
 0x129   : > { %v1781_v51 = vsel %vm539_vm9, %v1780_v36, %v1774_v17  ;;  %v1819_v9 = vrot.slane %v4391_v56, 3  ;;  %v1822_v37 = vrot.slane %v1812_v5, 4  ;;  %1739 = vrot.lane.b32.xlu1 %v1737_v40, %s3901_s14  ;;  %v1904_v4 = vsel %vm522_vm5, %v5866_v15, 0.0 }
 0x12a   : > { %v1824_v0 = vsel %vm389_vm6, %v1813_v34, %v1815_v3  ;;  %v1905_v42 = vrot.slane %v4374_v30, 7  ;;  %v1907_v41 = vrot.slane %v4365_v26, 6  ;;  %1695 = vrot.lane.b32.xlu0 %v1693_v45, %s3902_s15  ;;  %v1782_v35 = vsel %vm541_vm10, %v1781_v51, %v1777_v59  ;;  %s5805_s15 = scalar_lea.vmem %s5825_s6, %s3700_s12 }
 0x12b   : > { %v1825_v55 = vsel %vm537_vm8, %v1824_v0, %v1817_v24  ;;  %v1909_v58 = vrot.slane %v4406_v27, 5  ;;  %v1911_v33 = vrot.slane %v4391_v56, 4  ;;  %v1859_v10 = vsel %vm522_vm5, %v4517_v28, 0.0 }
 0x12c   : > { %v1826_v62 = vsel %vm539_vm9, %v1825_v55, %v1819_v9  ;;  %v1916_v32 = vsel %vm389_vm6, %v1905_v42, %v1907_v41  ;;  %v1860_v30 = vrot.slane %v4370_v49, 7  ;;  %v1914_v26 = vrot.slane %v1904_v4, 4 }
 0x12d   : > { %v1917_v61 = vsel %vm537_vm8, %v1916_v32, %v1909_v58  ;;  %v1862_v48 = vrot.slane %v4361_v44, 6  ;;  %v1864_v16 = vrot.slane %v4395_v43, 5  ;;  %1784 = vrot.lane.b32.xlu1 %v1782_v35, %s3903_s18  ;;  %v1827_v56 = vsel %vm541_vm10, %v1826_v62, %v1822_v37 }
 0x12e   : > { %v1918_v27 = vsel %vm539_vm9, %v1917_v61, %v1911_v33  ;;  %v1869_v54 = vrot.slane %v1859_v10, 4  ;;  %1829 = vrot.lane.b32.xlu0 %v1827_v56, %s3904_s19  ;;  %v1866_v28 = vrot.slane %v4385_v20, 4  ;;  %v5826_v11 = vmov 0.0  }
 0x12f   : > { %v1871_v49 = vsel %vm389_vm6, %v1860_v30, %v1862_v48  ;;  %486 = vst [vmem:[#allocation2 + $0x8] sm:$0xff] %v5826_v11  ;;  %485 = vst [vmem:[#allocation2] sm:$0xff] %v5826_v11  ;;  %v1919_v20 = vsel %vm541_vm10, %v1918_v27, %v1914_v26  ;;  %vm680_vm4 = vcmask 343104   ;;  %vm1076_vm5 = vcmask 753104  }
 0x130   : > { %487 = vst [vmem:[#allocation2 + $0x10] sm:$0xff] %v5826_v11  ;;  %488 = vst [vmem:[#allocation2 + $0x18] sm:$0xff] %v5826_v11  ;;  %v1872_v44 = vsel %vm537_vm8, %v1871_v49, %v1864_v16  ;;  %vm723_vm6 = vcmask 621904   ;;  %vm766_vm7 = vcmask 900704   ;;  %vm809_vm8 = vcmask 1048432  }
 0x131   : > { %489 = vst [vmem:[#allocation2 + $0x20] sm:$0xff] %v5826_v11  ;;  %490 = vst [vmem:[#allocation2 + $0x28] sm:$0xff] %v5826_v11  ;;  %v1873_v43 = vsel %vm539_vm9, %v1872_v44, %v1866_v28  ;;  %1921 = vrot.lane.b32.xlu1 %v1919_v20, %s3906_s20  ;;  %vm1121_vm9 = vcmask 1031904   ;;  %v5828_v20 = vmov 0  }
 0x132   : > { %491 = vst [vmem:[#allocation2 + $0x30] sm:$0xff] %v5826_v11  ;;  %492 = vst [vmem:[#allocation2 + $0x38] sm:$0xff] %v5826_v11  ;;  %v1874_v31 = vsel %vm541_vm10, %v1873_v43, %v1869_v54  ;;  %2568 = vmatprep.mubr.bf16.mxu1 %v5828_v20  ;;  %2609 = vmatprep.mubr.bf16.mxu0 %v5828_v20 }
 0x133   : > { %493 = vst [vmem:[#allocation2 + $0x40] sm:$0xff] %v5826_v11  ;;  %2784 = vst [vmem:[#allocation3] sm:$0xff] %v5826_v11  ;;  %1876 = vrot.lane.b32.xlu0 %v1874_v31, %s3907_s23  ;;  %3854 = vset.pattern.permute.xlu1 %v5828_v20 }
 0x134   : > { %2792 = vst [vmem:[#allocation3 + $0x40] sm:$0xff] %v5826_v11  ;;  %495 = vst.msk [vmem:[#allocation2 + $0x48] sm:$0xff] %vm494_vm11, %v5826_v11 }
 0x135   : > { %2793 = vst.msk [vmem:[#allocation3 + $0x48] sm:$0xff] %vm494_vm11, %v5826_v11 }
 0x163   : > { %v721_v12 = vpop.permute.xlu1 %720 }
 0x164   : > { %v633_v39 = vpop.permute.xlu0 %632 }
 0x165   : > { %638 = vst.msk [vmem:[#allocation2 + $0x8] sm:$0xff] %vm637_vm12, %v633_v39  ;;  %vm1166_vm12 = vcmask 1048560  }
 0x167   : > { %v807_v53 = vpop.permute.xlu1 %806 }
 0x168   : > { %811 = vst.msk [vmem:[#allocation2 + $0x10] sm:$0xff] %vm309_vm0, %v807_v53  ;;  %v545_v18 = vpop.permute.xlu0 %544  ;;  %vm1031_vm0 = vcmask 474304  }
 0x169   : > { %548 = vst.msk [vmem:[#allocation2] sm:$0xff] %vm547_vm13, %v545_v18  ;;  %vm592_vm13 = vcmask 835104  }
 0x16b   : > { %v983_v57 = vpop.permute.xlu1 %982 }
 0x16c   : > { %988 = vst.msk [vmem:[#allocation2 + $0x18] sm:$0xff] %vm987_vm14, %v983_v57  ;;  %v895_v29 = vpop.permute.xlu0 %894  ;;  %vm635_vm14 = vcmask 1048368  }
 0x16f   : > { %v1074_v6 = vpop.permute.xlu1 %1073 }
 0x171   : > { %v1164_v46 = vpop.permute.xlu0 %1163 }
 0x172   : > { %1169 = vst.msk [vmem:[#allocation2 + $0x20] sm:$0xff] %vm1168_vm15, %v1164_v46  ;;  %vm941_vm15 = vcmask 966304  }
 0x174   : > { %v764_v47 = vpop.permute.xlu1 %763 }
 0x177   : > { %v1474_v23 = vpop.permute.xlu0 %1473 }
 0x178   : > { %1479 = vst.msk [vmem:[#allocation2 + $0x30] sm:$0xff] %vm1478_vm1, %v1474_v23  ;;  %v851_v22 = vpop.permute.xlu1 %850  ;;  %vm985_vm1 = vcmask 1048496  }
 0x179   : > { %854 = vst.msk [vmem:[#allocation2 + $0x10] sm:$0xff] %vm853_vm2, %v851_v22  ;;  %vm1347_vm2 = vcmask 326704  }
 0x17a   : > { %898 = vst.msk [vmem:[#allocation2 + $0x10] sm:$0xff] %vm897_vm3, %v895_v29  ;;  %vm1213_vm3 = vcmask 539904  }
 0x17b   : > { %v1431_v21 = vpop.permute.xlu0 %1430 }
 0x17d   : > { %v1029_v1 = vpop.permute.xlu1 %1028 }
 0x17e   : > { %1032 = vst.msk [vmem:[#allocation2 + $0x18] sm:$0xff] %vm1031_vm0, %v1029_v1  ;;  %vm1390_vm0 = vcmask 605504  }
 0x17f   : > { %v678_v52 = vpop.permute.xlu0 %677  ;;  %1077 = vst.msk [vmem:[#allocation2 + $0x18] sm:$0xff] %vm1076_vm5, %v1074_v6  ;;  %vm1258_vm5 = vcmask 818704   ;;  %v2098_v6 = vld [vmem:[#allocation2 + $0x48] sm:$0xff] }
 0x180   : > { %681 = vst.msk [vmem:[#allocation2 + $0x8] sm:$0xff] %vm680_vm4, %v678_v52  ;;  %vm1433_vm4 = vcmask 884304  }
 0x181   : > { %724 = vst.msk [vmem:[#allocation2 + $0x8] sm:$0xff] %vm723_vm6, %v721_v12  ;;  %v1119_v19 = vpop.permute.xlu1 %1118  ;;  %vm1476_vm6 = vcmask 1048416  }
 0x182   : > { %767 = vst.msk [vmem:[#allocation2 + $0x8] sm:$0xff] %vm766_vm7, %v764_v47  ;;  %vm1303_vm7 = vcmask 1048352  }
 0x183   : > { %810 = vst.msk [vmem:[#allocation2 + $0x8] sm:$0xff] %vm809_vm8, %v807_v53  ;;  %v590_v50 = vpop.permute.xlu0 %589  ;;  %vm1521_vm8 = vcmask 392304  }
 0x184   : > { %1122 = vst.msk [vmem:[#allocation2 + $0x18] sm:$0xff] %vm1121_vm9, %v1119_v19  ;;  %vm1564_vm9 = vcmask 671104  }
 0x185   : > { %1167 = vst.msk [vmem:[#allocation2 + $0x18] sm:$0xff] %vm1166_vm12, %v1164_v46  ;;  %v1301_v7 = vpop.permute.xlu1 %1300  ;;  %vm1608_vm12 = vcmask 949904  }
 0x186   : > { %593 = vst.msk [vmem:[#allocation2] sm:$0xff] %vm592_vm13, %v590_v50  ;;  %vm1652_vm13 = vcmask 1048480  }
 0x187   : > { %636 = vst.msk [vmem:[#allocation2] sm:$0xff] %vm635_vm14, %v633_v39  ;;  %v939_v25 = vpop.permute.xlu0 %938  ;;  %vm1698_vm14 = vcmask 457904  }
 0x188   : > { %1305 = vst.msk [vmem:[#allocation2 + $0x28] sm:$0xff] %vm494_vm11, %v1301_v7  ;;  %vm1654_vm11 = vcmask 179200  }
 0x189   : > { %942 = vst.msk [vmem:[#allocation2 + $0x10] sm:$0xff] %vm941_vm15, %v939_v25  ;;  %vm1742_vm15 = vcmask 736704  }
 0x18a   : > { %986 = vst.msk [vmem:[#allocation2 + $0x10] sm:$0xff] %vm985_vm1, %v983_v57  ;;  %v1345_v38 = vpop.permute.xlu1 %1344  ;;  %vm1787_vm1 = vcmask 1015504   ;;  %v2090_v41 = vld [vmem:[#allocation2 + $0x8] sm:$0xff] }
 0x18b   : > { %1348 = vst.msk [vmem:[#allocation2 + $0x28] sm:$0xff] %vm1347_vm2, %v1345_v38  ;;  %vm1832_vm2 = vcmask 1048544   ;;  %v4802_v35 = vpack.c.bf16 %v2090_v41, %v2090_v41 }
 0x18c   : > { %v1211_v14 = vpop.permute.xlu0 %1210  ;;  %v2092_v55 = vld [vmem:[#allocation2 + $0x18] sm:$0xff] }
 0x18d   : > { %1214 = vst.msk [vmem:[#allocation2 + $0x20] sm:$0xff] %vm1213_vm3, %v1211_v14  ;;  %vm1834_vm3 = vcmask 244736   ;;  %v4808_v58 = vpack.c.bf16 %v2092_v55, %v2092_v55  ;;  %v2119_v56 = vrot.slane %v4802_v35, 4 }
 0x18e   : > { %v2089_v13 = vld [vmem:[#allocation2] sm:$0xff]  ;;  %v1388_v17 = vpop.permute.xlu1 %1387 }
 0x18f   : > { %v4761_v8 = vpack.c.bf16 %v2089_v13, %v2089_v13  ;;  %1391 = vst.msk [vmem:[#allocation2 + $0x28] sm:$0xff] %vm1390_vm0, %v1388_v17  ;;  %vm1879_vm0 = vcmask 523504   ;;  %v2121_v27 = vrot.slane %v4808_v58, 4 }
 0x190   : > { %v1256_v59 = vpop.permute.xlu0 %1255  ;;  %1434 = vst.msk [vmem:[#allocation2 + $0x28] sm:$0xff] %vm1433_vm4, %v1431_v21  ;;  %vm1924_vm4 = vcmask 802304  }
 0x191   : > { %2263 = vrot.lane.b32.xlu1 %v4761_v8, %s3908_s24  ;;  %2324 = vrot.lane.b32.xlu0 %v4761_v8, %s3881_s16  ;;  %1259 = vst.msk [vmem:[#allocation2 + $0x20] sm:$0xff] %vm1258_vm5, %v1256_v59  ;;  %v2091_v37 = vld [vmem:[#allocation2 + $0x10] sm:$0xff]  ;;  %v2118_v42 = vrot.slane %v4761_v8, 4  ;;  %vm2344_vm5 = vcmask 474112  }
 0x192   : > { %1477 = vst.msk [vmem:[#allocation2 + $0x28] sm:$0xff] %vm1476_vm6, %v1474_v23  ;;  %v4781_v0 = vpack.c.bf16 %v2091_v37, %v2091_v37  ;;  %v2108_v23 = vpack.c.bf16 %v2098_v6, %v2098_v6  ;;  %vm2283_vm6 = vcmask 490496  }
 0x193   : > { %1304 = vst.msk [vmem:[#allocation2 + $0x20] sm:$0xff] %vm1303_vm7, %v1301_v7  ;;  %v1650_v60 = vpop.permute.xlu1 %1649  ;;  %vm2314_vm7 = vcmask 482304  }
 0x194   : > { %1655 = vst.msk [vmem:[#allocation2 + $0x38] sm:$0xff] %vm1654_vm11, %v1650_v60  ;;  %v1519_v63 = vpop.permute.xlu0 %1518  ;;  %v2120_v48 = vrot.slane %v4781_v0, 4  ;;  %v2293_v1 = vrot.slane %v2108_v23, 4  ;;  %vm2226_vm11 = vcmask 760832  }
 0x195   : > { %2208 = vrot.lane.b32.xlu1 %v4761_v8, %s3909_s25  ;;  %1522 = vst.msk [vmem:[#allocation2 + $0x30] sm:$0xff] %vm1521_vm8, %v1519_v63  ;;  %vm2253_vm8 = vcmask 752640  }
 0x197   : > { %v1606_v2 = vpop.permute.xlu1 %1605 }
 0x198   : > { %v1562_v5 = vpop.permute.xlu0 %1561 }
 0x199   : > { %2154 = vrot.lane.b32.xlu1 %v4761_v8, %s3882_s17  ;;  %1565 = vst.msk [vmem:[#allocation2 + $0x30] sm:$0xff] %vm1564_vm9, %v1562_v5  ;;  %v2094_v62 = vld [vmem:[#allocation2 + $0x28] sm:$0xff]  ;;  %vm5834_vm9 = vcmask 1031168  }
 0x19a   : > { %v2093_v34 = vld [vmem:[#allocation2 + $0x20] sm:$0xff]  ;;  %1609 = vst.msk [vmem:[#allocation2 + $0x30] sm:$0xff] %vm1608_vm12, %v1606_v2  ;;  %v4823_v32 = vpack.c.bf16 %v2094_v62, %v2094_v62  ;;  %vm5835_vm12 = vcmask 769024  }
 0x19b   : > { %v4771_v40 = vpack.c.bf16 %v2093_v34, %v2093_v34  ;;  %1653 = vst.msk [vmem:[#allocation2 + $0x30] sm:$0xff] %vm1652_vm13, %v1650_v60  ;;  %v1740_v36 = vpop.permute.xlu1 %1739  ;;  %v2499_v34 = vld [vmem:[%s5824_s5] sm:$0xff]  ;;  %vm5833_vm13 = vcmask 1039360  }
 0x19c   : > { %v1696_v3 = vpop.permute.xlu0 %1695  ;;  %v2123_v54 = vrot.slane %v4823_v32, 4 }
 0x19d   : > { %2332 = vrot.lane.b32.xlu0 %v4771_v40, %s3881_s16  ;;  %1699 = vst.msk [vmem:[#allocation2 + $0x38] sm:$0xff] %vm1698_vm14, %v1696_v3  ;;  %v2122_v33 = vrot.slane %v4771_v40, 4  ;;  %vm5832_vm14 = vcmask 588800  }
 0x19e   : > { %1743 = vst.msk [vmem:[#allocation2 + $0x38] sm:$0xff] %vm1742_vm15, %v1740_v36  ;;  %vm5831_vm15 = vmmov 0  }
 0x19f   : > { %v1785_v24 = vpop.permute.xlu1 %1784 }
 0x1a0   : > { %1788 = vst.msk [vmem:[#allocation2 + $0x38] sm:$0xff] %vm1787_vm1, %v1785_v24  ;;  %v1830_v45 = vpop.permute.xlu0 %1829  ;;  %v3914_v24 = vmov 1  }
 0x1a1   : > { %2271 = vrot.lane.b32.xlu0 %v4771_v40, %s3908_s24  ;;  %1833 = vst.msk [vmem:[#allocation2 + $0x38] sm:$0xff] %vm1832_vm2, %v1830_v45 }
 0x1a2   : > { %1835 = vst.msk [vmem:[#allocation2 + $0x40] sm:$0xff] %vm1834_vm3, %v1830_v45  ;;  %v2095_v26 = vld [vmem:[#allocation2 + $0x30] sm:$0xff]  ;;  %3855 = vset.pattern.permute.xlu0 %v3914_v24 }
 0x1a3   : > { %v1922_v9 = vpop.permute.xlu1 %1921  ;;  %v4842_v61 = vpack.c.bf16 %v2095_v26, %v2095_v26 }
 0x1a5   : > { %2216 = vrot.lane.b32.xlu0 %v4771_v40, %s3909_s25  ;;  %v1877_v51 = vpop.permute.xlu0 %1876  ;;  %v2124_v29 = vrot.slane %v4842_v61, 4 }
 0x1a6   : > { %1880 = vst.msk [vmem:[#allocation2 + $0x40] sm:$0xff] %vm1879_vm0, %v1877_v51 }
 0x1a7   : > { %1925 = vst.msk [vmem:[#allocation2 + $0x40] sm:$0xff] %vm1924_vm4, %v1922_v9  ;;  %v3915_v9 = vmov 2  }
 0x1a8   : > { %v2096_v10 = vld [vmem:[#allocation2 + $0x38] sm:$0xff] }
 0x1a9   : > { %2162 = vrot.lane.b32.xlu0 %v4771_v40, %s3882_s17  ;;  %v4829_v30 = vpack.c.bf16 %v2096_v10, %v2096_v10 }
 0x1ab   : > { %v2125_v49 = vrot.slane %v4829_v30, 4 }
 0x1ad   : > { %2328 = vrot.lane.b32.xlu0 %v4781_v0, %s3881_s16 }
 0x1ae   : > { %v2097_v15 = vld [vmem:[#allocation2 + $0x40] sm:$0xff] }
 0x1af   : > { %v4785_v4 = vpack.c.bf16 %v2097_v15, %v2097_v15 }
 0x1b1   : > { %5867 = vst [vmem:[#allocation4_spill] sm:$0xff] %v4785_v4  ;;  %2267 = vrot.lane.b32.xlu0 %v4781_v0, %s3908_s24  ;;  %2340 = vrot.lane.b32.xlu1 %v4785_v4, %s3881_s16  ;;  %v2126_v16 = vrot.slane %v4785_v4, 4 }
 0x1b5   : > { %2294 = vrot.lane.b32.xlu0 %v2118_v42, %s3910_s27  ;;  %2279 = vrot.lane.b32.xlu1 %v4785_v4, %s3908_s24 }
 0x1b9   : > { %2212 = vrot.lane.b32.xlu0 %v4781_v0, %s3909_s25  ;;  %2224 = vrot.lane.b32.xlu1 %v4785_v4, %s3909_s25 }
 0x1bd   : > { %2235 = vrot.lane.b32.xlu0 %v2118_v42, %s3889_s26  ;;  %2170 = vrot.lane.b32.xlu1 %v4785_v4, %s3882_s17 }
 0x1c1   : > { %2158 = vrot.lane.b32.xlu0 %v4781_v0, %s3882_s17  ;;  %2326 = vrot.lane.b32.xlu1 %v4802_v35, %s3881_s16 }
 0x1c5   : > { %2181 = vrot.lane.b32.xlu0 %v2118_v42, %s3911_s28  ;;  %2330 = vrot.lane.b32.xlu1 %v4808_v58, %s3881_s16 }
 0x1c9   : > { %2302 = vrot.lane.b32.xlu0 %v2122_v33, %s3910_s27  ;;  %2265 = vrot.lane.b32.xlu1 %v4802_v35, %s3908_s24 }
 0x1cd   : > { %2243 = vrot.lane.b32.xlu0 %v2122_v33, %s3889_s26  ;;  %2269 = vrot.lane.b32.xlu1 %v4808_v58, %s3908_s24 }
 0x1d1   : > { %2189 = vrot.lane.b32.xlu0 %v2122_v33, %s3911_s28  ;;  %2210 = vrot.lane.b32.xlu1 %v4802_v35, %s3909_s25 }
 0x1d5   : > { %2334 = vrot.lane.b32.xlu0 %v4823_v32, %s3881_s16  ;;  %2214 = vrot.lane.b32.xlu1 %v4808_v58, %s3909_s25 }
 0x1d9   : > { %2338 = vrot.lane.b32.xlu0 %v4829_v30, %s3881_s16  ;;  %2156 = vrot.lane.b32.xlu1 %v4802_v35, %s3882_s17 }
 0x1dd   : > { %2273 = vrot.lane.b32.xlu0 %v4823_v32, %s3908_s24  ;;  %2160 = vrot.lane.b32.xlu1 %v4808_v58, %s3882_s17 }
 0x1e1   : > { %2277 = vrot.lane.b32.xlu0 %v4829_v30, %s3908_s24  ;;  %2127 = vrot.lane.b32.xlu1 %v2118_v42, %s3912_s29 }
 0x1e5   : > { %2218 = vrot.lane.b32.xlu0 %v4823_v32, %s3909_s25  ;;  %2336 = vrot.lane.b32.xlu1 %v4842_v61, %s3881_s16 }
 0x1e9   : > { %2222 = vrot.lane.b32.xlu0 %v4829_v30, %s3909_s25  ;;  %2275 = vrot.lane.b32.xlu1 %v4842_v61, %s3908_s24 }
 0x1ed   : > { %2164 = vrot.lane.b32.xlu0 %v4823_v32, %s3882_s17  ;;  %2220 = vrot.lane.b32.xlu1 %v4842_v61, %s3909_s25 }
 0x1f1   : > { %2168 = vrot.lane.b32.xlu0 %v4829_v30, %s3882_s17  ;;  %2166 = vrot.lane.b32.xlu1 %v4842_v61, %s3882_s17 }
 0x1f5   : > { %2298 = vrot.lane.b32.xlu0 %v2120_v48, %s3910_s27  ;;  %2135 = vrot.lane.b32.xlu1 %v2122_v33, %s3912_s29 }
 0x1f9   : > { %2239 = vrot.lane.b32.xlu0 %v2120_v48, %s3889_s26  ;;  %2310 = vrot.lane.b32.xlu1 %v2126_v16, %s3910_s27 }
 0x1fd   : > { %2185 = vrot.lane.b32.xlu0 %v2120_v48, %s3911_s28  ;;  %2251 = vrot.lane.b32.xlu1 %v2126_v16, %s3889_s26 }
 0x201   : > { %2131 = vrot.lane.b32.xlu0 %v2120_v48, %s3912_s29  ;;  %2296 = vrot.lane.b32.xlu1 %v2119_v56, %s3910_s27 }
 0x203   : > { %v2325_v28 = vpop.permute.xlu0 %2324  ;;  %v4886_v43 = vpop.permute.xlu1 %2263 }
 0x205   : > { %2133 = vrot.lane.b32.xlu0 %v2121_v27, %s3912_s29  ;;  %2300 = vrot.lane.b32.xlu1 %v2121_v27, %s3910_s27 }
 0x207   : > { %v4895_v39 = vpop.permute.xlu1 %2208 }
 0x209   : > { %2304 = vrot.lane.b32.xlu0 %v2123_v54, %s3910_s27  ;;  %2237 = vrot.lane.b32.xlu1 %v2119_v56, %s3889_s26 }
 0x20b   : > { %v4903_v18 = vpop.permute.xlu1 %2154 }
 0x20d   : > { %2308 = vrot.lane.b32.xlu0 %v2125_v49, %s3910_s27  ;;  %2241 = vrot.lane.b32.xlu1 %v2121_v27, %s3889_s26 }
 0x20f   : > { %v4880_v44 = vpop.permute.xlu0 %2332 }
 0x211   : > { %2245 = vrot.lane.b32.xlu0 %v2123_v54, %s3889_s26  ;;  %2183 = vrot.lane.b32.xlu1 %v2119_v56, %s3911_s28 }
 0x213   : > { %v4888_v31 = vpop.permute.xlu0 %2271 }
 0x215   : > { %2249 = vrot.lane.b32.xlu0 %v2125_v49, %s3889_s26  ;;  %2187 = vrot.lane.b32.xlu1 %v2121_v27, %s3911_s28 }
 0x217   : > { %v4893_v12 = vpop.permute.xlu0 %2216 }
 0x219   : > { %2191 = vrot.lane.b32.xlu0 %v2123_v54, %s3911_s28  ;;  %2129 = vrot.lane.b32.xlu1 %v2119_v56, %s3912_s29 }
 0x21b   : > { %v4899_v53 = vpop.permute.xlu0 %2162 }
 0x21d   : > { %2195 = vrot.lane.b32.xlu0 %v2125_v49, %s3911_s28  ;;  %2197 = vrot.lane.b32.xlu1 %v2126_v16, %s3911_s28 }
 0x21f   : > { %v2329_v57 = vpop.permute.xlu0 %2328 }
 0x221   : > { %2137 = vrot.lane.b32.xlu0 %v2123_v54, %s3912_s29  ;;  %2306 = vrot.lane.b32.xlu1 %v2124_v29, %s3910_s27 }
 0x223   : > { %v4908_v46 = vpop.permute.xlu1 %2340  ;;  %v4910_v47 = vpop.permute.xlu0 %2267 }
 0x225   : > { %2141 = vrot.lane.b32.xlu0 %v2125_v49, %s3912_s29  ;;  %2247 = vrot.lane.b32.xlu1 %v2124_v29, %s3889_s26 }
 0x227   : > { %v4914_v22 = vpop.permute.xlu1 %2279  ;;  %v4916_v21 = vpop.permute.xlu0 %2294 }
 0x229   : > { %2342 = vrot.lane.b32.xlu0 %v2108_v23, %s3881_s16  ;;  %2193 = vrot.lane.b32.xlu1 %v2124_v29, %s3911_s28 }
 0x22b   : > { %v4920_v52 = vpop.permute.xlu1 %2224  ;;  %v4922_v19 = vpop.permute.xlu0 %2212 }
 0x22d   : > { %2312 = vrot.lane.b32.xlu0 %v2293_v1, %s3910_s27  ;;  %2139 = vrot.lane.b32.xlu1 %v2124_v29, %s3912_s29 }
 0x22f   : > { %v4926_v50 = vpop.permute.xlu1 %2170  ;;  %v4928_v7 = vpop.permute.xlu0 %2235 }
 0x231   : > { %2143 = vrot.lane.b32.xlu1 %v2126_v16, %s3912_s29  ;;  %2750 = vperm.xlu0 %3855, %v2499_v34  }
 0x233   : > { %v2327_v25 = vpop.permute.xlu1 %2326  ;;  %v4931_v38 = vpop.permute.xlu0 %2158 }
 0x234   : > { %v2346_v14 = vsel %vm2344_vm5, %v2327_v25, %v2329_v57  ;;  %v2345_v13 = vsel %vm2344_vm5, %v2325_v28, %v2327_v25 }
 0x235   : > { %2281 = vrot.lane.b32.xlu1 %v2108_v23, %s3908_s24  ;;  %3623 = vmatprep.subr.msk.bf16.mxu1 %vm541_vm10, %v2346_v14  ;;  %v2510_v17 = vsel %vm541_vm10, %v2345_v13, 0 }
 0x236   : > { %2543 = vmatpush1.bf16.msra.mxu1 %v2510_v17 }
 0x237   : > { %v2331_v59 = vpop.permute.xlu1 %2330  ;;  %v4938_v60 = vpop.permute.xlu0 %2181 }
 0x238   : > { %v2347_v63 = vsel %vm2344_vm5, %v2329_v57, %v2331_v59  ;;  %v2348_v2 = vsel %vm2344_vm5, %v2331_v59, %v4880_v44 }
 0x239   : > { %3625 = vmatprep.subr.msk.bf16.mxu0 %vm541_vm10, %v2348_v2  ;;  %v2516_v5 = vsel %vm541_vm10, %v2347_v63, 0  ;;  %2502 = vperm.xlu1 %3854, %v2499_v34  }
 0x23a   : > { %2584 = vmatpush1.bf16.msra.mxu0 %v2516_v5 }
 0x23b   : > { %v2266_v36 = vpop.permute.xlu1 %2265  ;;  %v4948_v3 = vpop.permute.xlu0 %2302 }
 0x23c   : > { %v2284_v63 = vsel %vm2283_vm6, %v4886_v43, %v2266_v36  ;;  %v2285_v2 = vsel %vm2283_vm6, %v2266_v36, %v4910_v47 }
 0x23d   : > { %3856 = vset.pattern.permute.xlu1 %v3915_v9 }
 0x23e   : > { %2763 = vperm.xlu1 %3856, %v2499_v34  }
 0x23f   : > { %v2270_v45 = vpop.permute.xlu1 %2269  ;;  %v4950_v51 = vpop.permute.xlu0 %2243 }
 0x240   : > { %v2286_v4 = vsel %vm2283_vm6, %v4910_v47, %v2270_v45  ;;  %v2287_v43 = vsel %vm2283_vm6, %v2270_v45, %v4888_v31 }
 0x243   : > { %v2211_v37 = vpop.permute.xlu1 %2210  ;;  %v4952_v15 = vpop.permute.xlu0 %2189 }
 0x244   : > { %v2227_v47 = vsel %vm2226_vm11, %v4895_v39, %v2211_v37  ;;  %v2228_v45 = vsel %vm2226_vm11, %v2211_v37, %v4922_v19 }
 0x247   : > { %v2215_v42 = vpop.permute.xlu1 %2214  ;;  %v4954_v41 = vpop.permute.xlu0 %2334 }
 0x248   : > { %v2229_v39 = vsel %vm2226_vm11, %v4922_v19, %v2215_v42  ;;  %v2230_v37 = vsel %vm2226_vm11, %v2215_v42, %v4893_v12 }
 0x24b   : > { %v4956_v55 = vpop.permute.xlu1 %2156  ;;  %v4958_v33 = vpop.permute.xlu0 %2338 }
 0x24c   : > { %v2173_v19 = vsel %vm5834_vm9, %v4903_v18, %v4956_v55  ;;  %v2174_v42 = vsel %vm5834_vm9, %v4956_v55, %v4931_v38 }
 0x24f   : > { %v4960_v62 = vpop.permute.xlu1 %2160  ;;  %v4962_v10 = vpop.permute.xlu0 %2273 }
 0x250   : > { %v2175_v18 = vsel %vm5834_vm9, %v4931_v38, %v4960_v62 }
 0x253   : > { %v4964_v26 = vpop.permute.xlu1 %2127  ;;  %v4966_v48 = vpop.permute.xlu0 %2277 }
 0x257   : > { %v4968_v16 = vpop.permute.xlu1 %2336  ;;  %v4970_v56 = vpop.permute.xlu0 %2218 }
 0x25b   : > { %v4972_v27 = vpop.permute.xlu1 %2275  ;;  %v4974_v54 = vpop.permute.xlu0 %2222 }
 0x25f   : > { %v4976_v28 = vpop.permute.xlu1 %2220  ;;  %v4978_v49 = vpop.permute.xlu0 %2164 }
 0x263   : > { %v4980_v57 = vpop.permute.xlu1 %2166  ;;  %v4982_v29 = vpop.permute.xlu0 %2168 }
 0x267   : > { %v4984_v6 = vpop.permute.xlu1 %2135  ;;  %v2299_v23 = vpop.permute.xlu0 %2298 }
 0x26b   : > { %v4986_v1 = vpop.permute.xlu1 %2310  ;;  %v2240_v25 = vpop.permute.xlu0 %2239 }
 0x26f   : > { %v4988_v14 = vpop.permute.xlu1 %2251  ;;  %v4990_v13 = vpop.permute.xlu0 %2185 }
 0x273   : > { %v2297_v17 = vpop.permute.xlu1 %2296  ;;  %v4992_v59 = vpop.permute.xlu0 %2131 }
 0x274   : > { %v2315_v5 = vsel %vm2314_vm7, %v4916_v21, %v2297_v17  ;;  %v2316_v34 = vsel %vm2314_vm7, %v2297_v17, %v2299_v23 }
 0x275   : > { %v2468_v24 = vsel %vm541_vm10, %v2285_v2, %v2316_v34  ;;  %v2464_v9 = vsel %vm541_vm10, %v2284_v63, %v2315_v5 }
 0x276   : > { %2544 = vmatprep.subr.bf16.mxu1 %v2468_v24 }
 0x277   : > { %v2301_v11 = vpop.permute.xlu1 %2300  ;;  %2545 = vmatpush1.bf16.msra.mxu1 %v2464_v9  ;;  %v2134_v20 = vpop.permute.xlu0 %2133 }
 0x278   : > { %v2317_v36 = vsel %vm2314_vm7, %v2299_v23, %v2301_v11  ;;  %v2318_v21 = vsel %vm2314_vm7, %v2301_v11, %v4948_v3  ;;  %v2149_v55 = vsel %vm5833_vm13, %v2134_v20, %v4984_v6 }
 0x279   : > { %v2476_v17 = vsel %vm541_vm10, %v2287_v43, %v2318_v21  ;;  %v2472_v63 = vsel %vm541_vm10, %v2286_v4, %v2317_v36 }
 0x27a   : > { %2585 = vmatprep.subr.bf16.mxu0 %v2476_v17 }
 0x27b   : > { %v2238_v2 = vpop.permute.xlu1 %2237  ;;  %2586 = vmatpush1.bf16.msra.mxu0 %v2472_v63  ;;  %v5012_v5 = vpop.permute.xlu0 %2304 }
 0x27c   : > { %v2254_v11 = vsel %vm2253_vm8, %v4928_v7, %v2238_v2  ;;  %v2255_v23 = vsel %vm2253_vm8, %v2238_v2, %v2240_v25 }
 0x27d   : > { %v2432_v34 = vsel %vm541_vm10, %v2228_v45, %v2255_v23  ;;  %v2428_v4 = vsel %vm541_vm10, %v2227_v47, %v2254_v11 }
 0x27e   : > { %2546 = vmatprep.subr.bf16.mxu1 %v2432_v34 }
 0x27f   : > { %v2242_v24 = vpop.permute.xlu1 %2241  ;;  %2547 = vmatpush1.bf16.msra.mxu1 %v2428_v4  ;;  %v5023_v9 = vpop.permute.xlu0 %2308 }
 0x280   : > { %v2256_v43 = vsel %vm2253_vm8, %v2240_v25, %v2242_v24  ;;  %v2257_v7 = vsel %vm2253_vm8, %v2242_v24, %v4950_v51 }
 0x281   : > { %v2440_v36 = vsel %vm541_vm10, %v2230_v37, %v2257_v7  ;;  %v2436_v21 = vsel %vm541_vm10, %v2229_v39, %v2256_v43  ;;  %v2148_v39 = vsel %vm5833_vm13, %v4992_v59, %v2134_v20  ;;  %v2368_v43 = vsel %vm541_vm10, %v4808_v58, %v2149_v55 }
 0x282   : > { %2587 = vmatprep.subr.bf16.mxu0 %v2440_v36  ;;  %v2364_v58 = vsel %vm541_vm10, %v4781_v0, %v2148_v39  ;;  %v5097_v0 = vld [vmem:[%s5822_s3] sm:$0xf] }
 0x283   : > { %v2184_v17 = vpop.permute.xlu1 %2183  ;;  %2588 = vmatpush1.bf16.msra.mxu0 %v2436_v21  ;;  %v5034_v63 = vpop.permute.xlu0 %2245  ;;  %v2349_v21 = vsel %vm2344_vm5, %v4880_v44, %v4954_v41  ;;  %v2352_v44 = vsel %vm2344_vm5, %v4958_v33, %v4908_v46 }
 0x284   : > { %v2200_v25 = vsel %vm5835_vm12, %v4938_v60, %v2184_v17  ;;  %v2201_v2 = vsel %vm5835_vm12, %v2184_v17, %v4990_v13  ;;  %v2176_v60 = vsel %vm5834_vm9, %v4960_v62, %v4899_v53  ;;  %v2322_v17 = vsel %vm2314_vm7, %v5023_v9, %v4986_v1 }
 0x285   : > { %v2396_v47 = vsel %vm541_vm10, %v2174_v42, %v2201_v2  ;;  %v2392_v45 = vsel %vm541_vm10, %v2173_v19, %v2200_v25  ;;  %v2290_v42 = vsel %vm2283_vm6, %v4972_v27, %v4966_v48  ;;  %v2319_v25 = vsel %vm2314_vm7, %v4948_v3, %v5012_v5 }
 0x286   : > { %2548 = vmatprep.subr.bf16.mxu1 %v2396_v47  ;;  %v2288_v3 = vsel %vm2283_vm6, %v4888_v31, %v4962_v10  ;;  %v2258_v31 = vsel %vm2253_vm8, %v4950_v51, %v5034_v63  ;;  %v2231_v51 = vsel %vm2226_vm11, %v4893_v12, %v4970_v56 }
 0x287   : > { %v2188_v11 = vpop.permute.xlu1 %2187  ;;  %2549 = vmatpush1.bf16.msra.mxu1 %v2392_v45  ;;  %v5051_v23 = vpop.permute.xlu0 %2249 }
 0x288   : > { %v2202_v34 = vsel %vm5835_vm12, %v4990_v13, %v2188_v11  ;;  %v2203_v4 = vsel %vm5835_vm12, %v2188_v11, %v4952_v15 }
 0x289   : > { %v2404_v24 = vsel %vm541_vm10, %v2176_v60, %v2203_v4  ;;  %v2400_v38 = vsel %vm541_vm10, %v2175_v18, %v2202_v34  ;;  %v2261_v18 = vsel %vm2253_vm8, %v5051_v23, %v4988_v14  ;;  %v2232_v34 = vsel %vm2226_vm11, %v4970_v56, %v4976_v28 }
 0x28a   : > { %2589 = vmatprep.subr.bf16.mxu0 %v2404_v24  ;;  %v2233_v24 = vsel %vm2226_vm11, %v4976_v28, %v4974_v54  ;;  %v2444_v28 = vsel %vm541_vm10, %v2231_v51, %v2258_v31  ;;  %v2178_v56 = vsel %vm5834_vm9, %v4978_v49, %v4980_v57 }
 0x28b   : > { %v2130_v37 = vpop.permute.xlu1 %2129  ;;  %2590 = vmatpush1.bf16.msra.mxu0 %v2400_v38  ;;  %v5066_v62 = vpop.permute.xlu0 %2191 }
 0x28c   : > { %v2146_v13 = vsel %vm5833_vm13, %v4964_v26, %v2130_v37  ;;  %v2147_v7 = vsel %vm5833_vm13, %v2130_v37, %v4992_v59  ;;  %2591 = vmatprep.subr.bf16.mxu0 %v2368_v43  ;;  %v2351_v26 = vsel %vm2344_vm5, %v4968_v16, %v4958_v33  ;;  %v2289_v33 = vsel %vm2283_vm6, %v4962_v10, %v4972_v27 }
 0x28d   : > { %v2360_v36 = vsel %vm541_vm10, %v4802_v35, %v2147_v7  ;;  %v2356_v20 = vsel %vm541_vm10, %v4761_v8, %v2146_v13  ;;  %v2350_v8 = vsel %vm2344_vm5, %v4954_v41, %v4968_v16  ;;  %v2291_v41 = vsel %vm2283_vm6, %v4966_v48, %v4914_v22 }
 0x28e   : > { %2550 = vmatprep.subr.bf16.mxu1 %v2360_v36  ;;  %v2522_v16 = vsel %vm541_vm10, %v2349_v21, 0  ;;  %v2528_v19 = vsel %vm541_vm10, %v2351_v26, 0  ;;  %v2492_v45 = vsel %vm541_vm10, %v2291_v41, %v2322_v17  ;;  %v5868_v27 = vmov 0  }
 0x28f   : > { %v5086_v59 = vpop.permute.xlu1 %2197  ;;  %2551 = vmatpush1.bf16.msra.mxu1 %v2356_v20  ;;  %2592 = vmatpush1.bf16.msra.mxu0 %v2364_v58  ;;  %v2196_v35 = vpop.permute.xlu0 %2195  ;;  %v2179_v36 = vsel %vm5834_vm9, %v4980_v57, %v4982_v29 }
 0x290   : > { %3627 = vmatprep.subr.msk.bf16.mxu1 %vm541_vm10, %v2350_v8  ;;  %3629 = vmatprep.subr.msk.bf16.mxu0 %vm541_vm10, %v2352_v44  ;;  %v2207_v38 = vsel %vm5835_vm12, %v2196_v35, %v5086_v59 }
 0x292   : > { %3624 = vmatmul.mubr.msk.bf16.vlgmr.msra.gmra.mxu1 %vm5832_vm14, %v5097_v0  ;;  %3626 = vmatmul.mubr.msk.bf16.vlgmr.msra.gmra.mxu0 %vm5832_vm14, %v5097_v0 }
 0x293   : > { %v2307_v2 = vpop.permute.xlu1 %2306  ;;  %2625 = vmatpush1.bf16.msra.mxu1 %v2522_v16  ;;  %2666 = vmatpush1.bf16.msra.mxu0 %v2528_v19  ;;  %v2138_v47 = vpop.permute.xlu0 %2137 }
 0x294   : > { %v2320_v11 = vsel %vm2314_vm7, %v5012_v5, %v2307_v2  ;;  %v2321_v48 = vsel %vm2314_vm7, %v2307_v2, %v5023_v9  ;;  %2667 = vmatprep.subr.bf16.mxu0 %v2492_v45  ;;  %2650 = vmatprep.mubr.bf16.mxu1 %v5868_v27  ;;  %v2234_v5 = vsel %vm2226_vm11, %v4974_v54, %v4920_v52 }
 0x295   : > { %v2484_v60 = vsel %vm541_vm10, %v2289_v33, %v2320_v11  ;;  %v2488_v55 = vsel %vm541_vm10, %v2290_v42, %v2321_v48  ;;  %2691 = vmatprep.mubr.bf16.mxu0 %v5868_v27  ;;  %v2480_v9 = vsel %vm541_vm10, %v2288_v3, %v2319_v25  ;;  %v2456_v4 = vsel %vm541_vm10, %v2234_v5, %v2261_v18 }
 0x296   : > { %2626 = vmatprep.subr.bf16.mxu1 %v2484_v60  ;;  %v2180_v54 = vsel %vm5834_vm9, %v4982_v29, %v4926_v50  ;;  %v2150_v57 = vsel %vm5833_vm13, %v4984_v6, %v2138_v47  ;;  %v5869_v33 = vmov 0.0  }
 0x297   : > { %v2248_v10 = vpop.permute.xlu1 %2247  ;;  %2627 = vmatpush1.bf16.msra.mxu1 %v2480_v9  ;;  %2668 = vmatpush1.bf16.msra.mxu0 %v2488_v55  ;;  %v2142_v43 = vpop.permute.xlu0 %2141  ;;  %v2420_v12 = vsel %vm541_vm10, %v2180_v54, %v2207_v38 }
 0x298   : > { %v2259_v39 = vsel %vm2253_vm8, %v5034_v63, %v2248_v10  ;;  %v2260_v37 = vsel %vm2253_vm8, %v2248_v10, %v5051_v23  ;;  %2669 = vmatprep.subr.bf16.mxu0 %v2456_v4  ;;  %v2204_v63 = vsel %vm5835_vm12, %v4952_v15, %v5066_v62  ;;  %v2177_v15 = vsel %vm5834_vm9, %v4899_v53, %v4978_v49 }
 0x299   : > { %v2448_v13 = vsel %vm541_vm10, %v2232_v34, %v2259_v39  ;;  %v2452_v7 = vsel %vm541_vm10, %v2233_v24, %v2260_v37  ;;  %v2408_v8 = vsel %vm541_vm10, %v2177_v15, %v2204_v63  ;;  %v2372_v53 = vsel %vm541_vm10, %v4771_v40, %v2150_v57 }
 0x29a   : > { %2628 = vmatprep.subr.bf16.mxu1 %v2448_v13 }
 0x29b   : > { %v2194_v23 = vpop.permute.xlu1 %2193  ;;  %2629 = vmatpush1.bf16.msra.mxu1 %v2444_v28  ;;  %2670 = vmatpush1.bf16.msra.mxu0 %v2452_v7  ;;  %v2343_v29 = vpop.permute.xlu0 %2342 }
 0x29c   : > { %v2205_v20 = vsel %vm5835_vm12, %v5066_v62, %v2194_v23  ;;  %v2206_v21 = vsel %vm5835_vm12, %v2194_v23, %v2196_v35  ;;  %2671 = vmatprep.subr.bf16.mxu0 %v2420_v12  ;;  %v2353_v49 = vsel %vm2344_vm5, %v4908_v46, %v2343_v29 }
 0x29d   : > { %v2412_v58 = vsel %vm541_vm10, %v2178_v56, %v2205_v20  ;;  %v2416_v26 = vsel %vm541_vm10, %v2179_v36, %v2206_v21 }
 0x29e   : > { %2630 = vmatprep.subr.bf16.mxu1 %v2412_v58 }
 0x29f   : > { %v2140_v44 = vpop.permute.xlu1 %2139  ;;  %2631 = vmatpush1.bf16.msra.mxu1 %v2408_v8  ;;  %2672 = vmatpush1.bf16.msra.mxu0 %v2416_v26  ;;  %v2313_v16 = vpop.permute.xlu0 %2312 }
 0x2a0   : > { %v2151_v62 = vsel %vm5833_vm13, %v2138_v47, %v2140_v44  ;;  %v2152_v17 = vsel %vm5833_vm13, %v2140_v44, %v2142_v43  ;;  %v2323_v42 = vsel %vm2314_vm7, %v4986_v1, %v2313_v16  ;;  %v5870_v1 = vld [vmem:[#allocation4_spill] sm:$0xff] }
 0x2a1   : > { %v2376_v35 = vsel %vm541_vm10, %v4823_v32, %v2151_v62  ;;  %v2534_v32 = vsel %vm541_vm10, %v2353_v49, 0  ;;  %v2380_v40 = vsel %vm541_vm10, %v4842_v61, %v2152_v17  ;;  %v2460_v61 = vsel %vm541_vm10, %v4920_v52, %v4988_v14  ;;  %v2859_v52 = vld [vmem:[#allocation3 + $0x48] sm:$0xff] }
 0x2a2   : > { %2632 = vmatprep.subr.bf16.mxu1 %v2376_v35  ;;  %v2869_v14 = vpack.c.bf16 %v2859_v52, %v2859_v52 }
 0x2a3   : > { %v2144_v41 = vpop.permute.xlu1 %2143  ;;  %2633 = vmatpush1.bf16.msra.mxu1 %v2372_v53 }
 0x2a4   : > { %v2153_v6 = vsel %vm5833_vm13, %v2142_v43, %v2144_v41  ;;  %3672 = vmatprep.subr.bf16.mxu1 %v5869_v33  ;;  %v2388_v2 = vsel %vm541_vm10, %v5870_v1, %v2144_v41  ;;  %3096 = vrot.lane.b32.xlu0 %v2869_v14, %s3881_s16  ;;  %v3048_v47 = vrot.slane %v2869_v14, 4 }
 0x2a5   : > { %v2384_v19 = vsel %vm541_vm10, %v4829_v30, %v2153_v6  ;;  %3037 = vrot.lane.b32.xlu1 %v2869_v14, %s3908_s24 }
 0x2a6   : > { %3628 = vmatmul.mubr.msk.bf16.vlgmr.msra.gmra.mxu1 %vm5832_vm14, %v5097_v0  ;;  %2673 = vmatprep.subr.bf16.mxu0 %v2384_v19 }
 0x2a7   : > { %v2282_v46 = vpop.permute.xlu1 %2281  ;;  %2674 = vmatpush1.bf16.msra.mxu0 %v2380_v40  ;;  %3673 = vmatpush3.bf16.msra.mxu1 %v2534_v32 }
 0x2a8   : > { %v2292_v25 = vsel %vm2283_vm6, %v4914_v22, %v2282_v46  ;;  %3674 = vmatprep.subr.bf16.mxu1 %v5869_v33  ;;  %3682 = vmatprep.mubr.msk.bf16.mxu1 %vm5831_vm15, %v5869_v33  ;;  %v2424_v22 = vsel %vm541_vm10, %v4926_v50, %v5086_v59  ;;  %v1926_v50 = vlaneseq }
 0x2a9   : > { %v2496_v30 = vsel %vm541_vm10, %v2292_v25, %v2323_v42  ;;  %3067 = vrot.lane.b32.xlu0 %v3048_v47, %s3910_s27 }
 0x2aa   : > { %3630 = vmatmul.mubr.msk.bf16.vlgmr.msra.gmra.mxu0 %vm5832_vm14, %v5097_v0  ;;  %v5232_v59 = vand.u32 127, %v1926_v50 }
 0x2ab   : > { %3675 = vmatpush3.bf16.msra.mxu1 %v2496_v30  ;;  %3320 = vmatprep.mubr.bf16.mxu0 %v5868_v27 }
 0x2ac   : > { %3676 = vmatprep.subr.bf16.mxu1 %v5869_v33  ;;  %v1928_v45 = vadd.s32 128, %v5232_v59  ;;  %v5236_v18 = vmul.u32.u64.low 4042322161, %v5232_v59  ;;  %v5237_v11 = vmul.u32.u64.high 4042322161, %v5232_v59, %v5236_v18  ;;  %v1930_v60 = vadd.s32 384, %v5232_v59  ;;  %v5293_v49 = vpop.permute.xlu0 %2750 }
 0x2ad   : > { %v5256_v43 = vadd.s32 512, %v5232_v59  ;;  %v5259_v54 = vadd.s32 640, %v5232_v59  ;;  %v5268_v12 = vadd.s32 768, %v5232_v59  ;;  %v5279_v15 = vadd.s32 896, %v5232_v59 }
 0x2ae   : > { %v5240_v48 = vmul.u32.u64.low 4042322161, %v1928_v45  ;;  %v5241_v3 = vmul.u32.u64.high 4042322161, %v1928_v45, %v5240_v48  ;;  %v5247_v9 = vmul.u32.u64.low 4042322161, %v1930_v60  ;;  %v5248_v34 = vmul.u32.u64.high 4042322161, %v1930_v60, %v5247_v9 }
 0x2af   : > { %3677 = vmatpush3.bf16.msra.mxu1 %v2460_v61  ;;  %v1942_v31 = vshrl.u32 %v5237_v11, 5  ;;  %v5264_v63 = vmul.u32.u64.low 4042322161, %v5256_v43  ;;  %v5265_v23 = vmul.u32.u64.high 4042322161, %v5256_v43, %v5264_v63 }
 0x2b0   : > { %3678 = vmatprep.subr.bf16.mxu1 %v5869_v33  ;;  %v1953_v10 = vshrl.u32 %v5241_v3, 5  ;;  %v1975_v39 = vshrl.u32 %v5248_v34, 5  ;;  %v5282_v26 = vmul.u32.u64.low 4042322161, %v5259_v54  ;;  %v5283_v8 = vmul.u32.u64.high 4042322161, %v5259_v54, %v5282_v26 }
 0x2b1   : > { %v1943_v4 = vmul.u32 34, %v1942_v31  ;;  %v5288_v44 = vmul.u32.u64.low 4042322161, %v5268_v12  ;;  %v5289_v62 = vmul.u32.u64.high 4042322161, %v5268_v12, %v5288_v44  ;;  %v1986_v47 = vshrl.u32 %v5265_v23, 5 }
 0x2b2   : > { %v1954_v38 = vmul.u32 34, %v1953_v10  ;;  %v1976_v7 = vmul.u32 34, %v1975_v39  ;;  %v1997_v31 = vshrl.u32 %v5283_v8, 5  ;;  %v5360_v23 = vadd.s32 1024, %v5232_v59 }
 0x2b3   : > { %3679 = vmatpush3.bf16.msra.mxu1 %v2424_v22  ;;  %v1944_v37 = vsub.s32 %v5232_v59, %v1943_v4  ;;  %v5307_v32 = vmul.u32.u64.low 4042322161, %v5279_v15  ;;  %v5308_v40 = vmul.u32.u64.high 4042322161, %v5279_v15, %v5307_v32  ;;  %v2008_v4 = vshrl.u32 %v5289_v62, 5 }
 0x2b4   : > { %3680 = vmatprep.subr.bf16.mxu1 %v5869_v33  ;;  %v1955_v13 = vsub.s32 %v1928_v45, %v1954_v38  ;;  %v5270_v36 = vpop.permute.xlu1 %2502  ;;  %v5276_v21 = vsub.s32 %v1930_v60, %v1976_v7 }
 0x2b5   : > { %vm2035_vm1 = vcmp.ne.s32.totalorder %v1944_v37, 0  ;;  %vm2044_vm2 = vcmp.lt.s32.totalorder %v1944_v37, 0  ;;  %v2062_v56 = vadd.s32 34, %v1944_v37  ;;  %v2009_v63 = vmul.u32 34, %v2008_v4 }
 0x2b6   : > { %vm5272_vm3 = vmand %vm2044_vm2, %vm2035_vm1  ;;  %vm2036_vm0 = vcmp.ne.s32.totalorder %v1955_v13, 0  ;;  %vm2045_vm4 = vcmp.lt.s32.totalorder %v1955_v13, 0  ;;  %v2063_v58 = vadd.s32 34, %v1955_v13  ;;  %vm2047_vm13 = vcmp.lt.s32.totalorder %v5276_v21, 0 }
 0x2b7   : > { %3681 = vmatpush3.bf16.msra.mxu1 %v2388_v2  ;;  %v2071_v17 = vsel %vm5272_vm3, %v2062_v56, %v1944_v37  ;;  %vm5299_vm2 = vmand %vm2045_vm4, %vm2036_vm0  ;;  %v2065_v14 = vadd.s32 34, %v5276_v21  ;;  %v1987_v37 = vmul.u32 34, %v1986_v47  ;;  %v2010_v8 = vsub.s32 %v5268_v12, %v2009_v63 }
 0x2b8   : > { %v2072_v2 = vsel %vm5299_vm2, %v2063_v58, %v1955_v13  ;;  %vm5336_vm0 = vcmp.lt.s32.totalorder %v2071_v17, 32 }
 0x2b9   : > { %v5312_v61 = vpop.permute.xlu1 %2763  ;;  %v1988_v20 = vsub.s32 %v5256_v43, %v1987_v37  ;;  %v2068_v17 = vadd.s32 34, %v2010_v8 }
 0x2ba   : > { %3683 = vmatmul.mubr.msk.bf16.vlgmr.msra.gmra.mxu1 %vm5832_vm14, %v5097_v0  ;;  %v1929_v0 = vadd.s32 256, %v5232_v59  ;;  %vm2038_vm14 = vcmp.ne.s32.totalorder %v5276_v21, 0 }
 0x2bb   : > { %3361 = vmatprep.mubr.bf16.mxu1 %v5868_v27  ;;  %vm2048_vm2 = vcmp.lt.s32.totalorder %v1988_v20, 0  ;;  %v2066_v44 = vadd.s32 34, %v1988_v20 }
 0x2bc   : > { %v5244_v55 = vmul.u32.u64.low 4042322161, %v1929_v0  ;;  %v5245_v5 = vmul.u32.u64.high 4042322161, %v1929_v0, %v5244_v55 }
 0x2be   : > { %v1964_v24 = vshrl.u32 %v5245_v5, 5 }
 0x2c0   : > { %v1965_v51 = vmul.u32 34, %v1964_v24 }
 0x2c2   : > { %v5261_v28 = vsub.s32 %v1929_v0, %v1965_v51  ;;  %v2019_v51 = vshrl.u32 %v5308_v40, 5 }
 0x2c4   : > { %vm2037_vm15 = vcmp.ne.s32.totalorder %v5261_v28, 0  ;;  %vm2046_vm1 = vcmp.lt.s32.totalorder %v5261_v28, 0  ;;  %v2064_v6 = vadd.s32 34, %v5261_v28 }
 0x2c5   : > { %vm5318_vm3 = vmand %vm2046_vm1, %vm2037_vm15  ;;  %vm2039_vm1 = vcmp.ne.s32.totalorder %v1988_v20, 0 }
 0x2c6   : > { %vm5332_vm15 = vmand %vm2047_vm13, %vm2038_vm14  ;;  %v2073_v60 = vsel %vm5318_vm3, %v2064_v6, %v5261_v28  ;;  %vm2081_vm13 = vcmp.lt.s32.totalorder %v2072_v2, 32  ;;  %v1998_v28 = vmul.u32 34, %v1997_v31 }
 0x2c7   : > { %v2074_v10 = vsel %vm5332_vm15, %v2065_v14, %v5276_v21  ;;  %vm2082_vm14 = vcmp.lt.s32.totalorder %v2073_v60, 32  ;;  %v2020_v21 = vmul.u32 34, %v2019_v51 }
 0x2c8   : > { %vm2083_vm4 = vcmp.lt.s32.totalorder %v2074_v10, 32  ;;  %v1999_v26 = vsub.s32 %v5259_v54, %v1998_v28 }
 0x2c9   : > { %v2021_v59 = vsub.s32 %v5279_v15, %v2020_v21 }
 0x2ca   : > { %vm2040_vm3 = vcmp.ne.s32.totalorder %v1999_v26, 0  ;;  %vm2049_vm15 = vcmp.lt.s32.totalorder %v1999_v26, 0  ;;  %v2067_v12 = vadd.s32 34, %v1999_v26 }
 0x2cb   : > { %vm2042_vm9 = vcmp.ne.s32.totalorder %v2021_v59, 0  ;;  %vm2051_vm12 = vcmp.lt.s32.totalorder %v2021_v59, 0  ;;  %v2069_v40 = vadd.s32 34, %v2021_v59 }
 0x352   : > { %v2570_v57 = vpop.f32.mrf.mxu1  ;;  %v2611_v29 = vpop.f32.mrf.mxu0 }
 0x353   : > { %v2571_v35 = vadd.f32 %v2570_v57, %v5270_v36  ;;  %v2612_v53 = vadd.f32 %v2611_v29, %v5270_v36  ;;  %v5368_v57 = vmul.u32.u64.low 4042322161, %v5360_v23  ;;  %v5369_v29 = vmul.u32.u64.high 4042322161, %v5360_v23, %v5368_v57 }
 0x354   : > { %v2572_v16 = vpop.f32.mrf.mxu1  ;;  %v2613_v19 = vpop.f32.mrf.mxu0 }
 0x355   : > { %v2740_v46 = vmax.f32 %v2571_v35, 0.0  ;;  %v2742_v42 = vmax.f32 %v2612_v53, 0.0  ;;  %v2573_v25 = vadd.f32 %v2572_v16, %v5270_v36  ;;  %v2614_v30 = vadd.f32 %v2613_v19, %v5270_v36 }
 0x356   : > { %v2574_v1 = vpop.f32.mrf.mxu1  ;;  %v2615_v52 = vpop.f32.mrf.mxu0 }
 0x357   : > { %v2741_v50 = vmax.f32 %v2573_v25, 0.0  ;;  %v2743_v45 = vmax.f32 %v2614_v30, 0.0  ;;  %v2753_v18 = vmul.f32 %v5293_v49, %v2740_v46  ;;  %v2755_v11 = vmul.f32 %v5293_v49, %v2742_v42 }
 0x358   : > { %v2575_v48 = vpop.f32.mrf.mxu1  ;;  %v2616_v55 = vpop.f32.mrf.mxu0  ;;  %v2030_v46 = vshrl.u32 %v5369_v29, 5 }
 0x359   : > { %v2766_v5 = vadd.f32 %v5312_v61, %v2753_v18  ;;  %v2754_v9 = vmul.f32 %v5293_v49, %v2741_v50  ;;  %v2756_v34 = vmul.f32 %v5293_v49, %v2743_v45  ;;  %v2768_v39 = vadd.f32 %v5312_v61, %v2755_v11 }
 0x35a   : > { %v2031_v0 = vmul.u32 34, %v2030_v46 }
 0x35b   : > { %v2775_v24 = vsel %vm5336_vm0, %v2766_v5, 0.0  ;;  %v2767_v38 = vadd.f32 %v5312_v61, %v2754_v9  ;;  %v2769_v7 = vadd.f32 %v5312_v61, %v2756_v34  ;;  %v2777_v56 = vsel %vm2082_vm14, %v2768_v39, 0.0  ;;  %vm5372_vm0 = vmand %vm2048_vm2, %vm2039_vm1 }
 0x35c   : > { %2803 = vrot.lane.b32.xlu1 %v2775_v24, %s3917_s10  ;;  %vm2050_vm14 = vcmp.lt.s32.totalorder %v2010_v8, 0  ;;  %v2075_v6 = vsel %vm5372_vm0, %v2066_v44, %v1988_v20  ;;  %vm5393_vm2 = vmand %vm2051_vm12, %vm2042_vm9 }
 0x35d   : > { %v2776_v13 = vsel %vm2081_vm13, %v2767_v38, 0.0  ;;  %v2778_v58 = vsel %vm2083_vm4, %v2769_v7, 0.0  ;;  %vm2041_vm13 = vcmp.ne.s32.totalorder %v2010_v8, 0  ;;  %vm5377_vm4 = vmand %vm2049_vm15, %vm2040_vm3  ;;  %vm2084_vm3 = vcmp.lt.s32.totalorder %v2075_v6, 32 }
 0x35e   : > { %2805 = vrot.lane.b32.xlu0 %v2776_v13, %s3917_s10  ;;  %vm5384_vm1 = vmand %vm2050_vm14, %vm2041_vm13  ;;  %v2076_v22 = vsel %vm5377_vm4, %v2067_v12, %v1999_v26  ;;  %v2078_v11 = vsel %vm5393_vm2, %v2069_v40, %v2021_v59  ;;  %v2032_v38 = vsub.s32 %v5360_v23, %v2031_v0  ;;  %v5418_v26 = vpop.permute.xlu0 %3096  ;;  %vm2821_vm2 = vcmask 285696  }
 0x35f   : > { %v2077_v52 = vsel %vm5384_vm1, %v2068_v17, %v2010_v8  ;;  %vm2085_vm15 = vcmp.lt.s32.totalorder %v2076_v22, 32  ;;  %vm2087_vm12 = vcmp.lt.s32.totalorder %v2078_v11, 32  ;;  %v5420_v8 = vpop.permute.xlu1 %3037  ;;  %vm2839_vm1 = vcmask 1047832  }
 0x360   : > { %2807 = vrot.lane.b32.xlu1 %v2777_v56, %s3917_s10  ;;  %vm2086_vm9 = vcmp.lt.s32.totalorder %v2077_v52, 32  ;;  %vm2043_vm0 = vcmp.ne.s32.totalorder %v2032_v38, 0  ;;  %vm2052_vm13 = vcmp.lt.s32.totalorder %v2032_v38, 0  ;;  %v2070_v37 = vadd.s32 34, %v2032_v38 }
 0x361   : > { %vm2061_vm14 = vmand %vm2052_vm13, %vm2043_vm0  ;;  %vm5893_vm13 = vcmask 1039360  }
 0x362   : > { %2809 = vrot.lane.b32.xlu0 %v2778_v58, %s3917_s10  ;;  %v2079_v63 = vsel %vm2061_vm14, %v2070_v37, %v2032_v38  ;;  %v5422_v57 = vpop.permute.xlu0 %3067  ;;  %vm5894_vm14 = vmmov %vm5893_vm13 }
 0x363   : > { %vm2088_vm4 = vcmp.lt.s32.totalorder %v2079_v63, 32  ;;  %v3919_v63 = vmov 4  }
 0x364   : > { %3858 = vset.pattern.permute.xlu0 %v3919_v63 }
 0x366   : > { %v2652_v43 = vpop.f32.mrf.mxu1 }
 0x367   : > { %v2653_v54 = vadd.f32 %v2652_v43, %v5270_v36 }
 0x368   : > { %v2654_v35 = vpop.f32.mrf.mxu1 }
 0x369   : > { %v2744_v15 = vmax.f32 %v2653_v54, 0.0  ;;  %v2655_v41 = vadd.f32 %v2654_v35, %v5270_v36 }
 0x36a   : > { %v2693_v19 = vpop.f32.mrf.mxu0  ;;  %v2656_v32 = vpop.f32.mrf.mxu1 }
 0x36b   : > { %v2757_v42 = vmul.f32 %v5293_v49, %v2744_v15  ;;  %v2745_v25 = vmax.f32 %v2655_v41, 0.0  ;;  %v2694_v30 = vadd.f32 %v2693_v19, %v5270_v36 }
 0x36c   : > { %v2695_v2 = vpop.f32.mrf.mxu0  ;;  %v2657_v14 = vpop.f32.mrf.mxu1 }
 0x36d   : > { %v2770_v47 = vadd.f32 %v5312_v61, %v2757_v42  ;;  %v2758_v50 = vmul.f32 %v5293_v49, %v2745_v25  ;;  %v2746_v45 = vmax.f32 %v2694_v30, 0.0  ;;  %v2696_v18 = vadd.f32 %v2695_v2, %v5270_v36 }
 0x36e   : > { %v2697_v48 = vpop.f32.mrf.mxu0 }
 0x36f   : > { %v2771_v3 = vadd.f32 %v5312_v61, %v2758_v50  ;;  %v2759_v60 = vmul.f32 %v5293_v49, %v2746_v45  ;;  %v2747_v55 = vmax.f32 %v2696_v18, 0.0  ;;  %v2779_v5 = vsel %vm2084_vm3, %v2770_v47, 0.0 }
 0x370   : > { %2811 = vrot.lane.b32.xlu1 %v2779_v5, %s3917_s10  ;;  %v2698_v9 = vpop.f32.mrf.mxu0  ;;  %vm2848_vm3 = vcmask 809984  }
 0x371   : > { %v2772_v34 = vadd.f32 %v5312_v61, %v2759_v60  ;;  %v2760_v31 = vmul.f32 %v5293_v49, %v2747_v55  ;;  %v2780_v10 = vsel %vm2085_vm15, %v2771_v3, 0.0  ;;  %vm5889_vm15 = vcmask 769024  }
 0x372   : > { %2813 = vrot.lane.b32.xlu0 %v2780_v10, %s3917_s10 }
 0x373   : > { %v2773_v4 = vadd.f32 %v5312_v61, %v2760_v31  ;;  %v2781_v24 = vsel %vm2086_vm9, %v2772_v34, 0.0  ;;  %vm5890_vm9 = vcmask 1031168  }
 0x374   : > { %2815 = vrot.lane.b32.xlu1 %v2781_v24, %s3917_s10  ;;  %vm5892_vm0 = vmmov %vm5890_vm9 }
 0x375   : > { %v2782_v39 = vsel %vm2087_vm12, %v2773_v4, 0.0  ;;  %vm5891_vm12 = vmmov %vm5889_vm15 }
 0x376   : > { %2817 = vrot.lane.b32.xlu0 %v2782_v39, %s3917_s10 }
 0x37a   : > { %v2734_v51 = vpop.f32.mrf.mxu1 }
 0x37b   : > { %v2735_v13 = vadd.f32 %v2734_v51, %v5270_v36 }
 0x37c   : > { %v3684_v7 = vpop.f32.mrf.mxu1 }
 0x37d   : > { %v2748_v28 = vmax.f32 %v2735_v13, 0.0 }
 0x37e   : > { %v2737_v56 = vpop.f32.mrf.mxu1 }
 0x37f   : > { %v2761_v20 = vmul.f32 %v5293_v49, %v2748_v28  ;;  %v3918_v28 = vmov 3  }
 0x380   : > { %v3685_v23 = vpop.f32.mrf.mxu1  ;;  %3857 = vset.pattern.permute.xlu1 %v3918_v28 }
 0x381   : > { %v2774_v21 = vadd.f32 %v5312_v61, %v2761_v20  ;;  %v3252_v23 = vld [vmem:[%s5824_s5] sm:$0xff] }
 0x383   : > { %v2783_v58 = vsel %vm2088_vm4, %v2774_v21, 0.0  ;;  %vm5895_vm4 = vcmask 588800  }
 0x384   : > { %2819 = vrot.lane.b32.xlu1 %v2783_v58, %s3917_s10 }
 0x3ce   : > { %v2804_v36 = vpop.permute.xlu1 %2803 }
 0x3cf   : > { %2840 = vst.msk [vmem:[#allocation3] sm:$0xff] %vm2839_vm1, %v2804_v36  ;;  %vm5896_vm1 = vmmov %vm5891_vm12 }
 0x3d0   : > { %v2806_v29 = vpop.permute.xlu0 %2805 }
 0x3d1   : > { %v2822_v49 = vsel %vm2821_vm2, %v2804_v36, %v2806_v29 }
 0x3d2   : > { %v2808_v59 = vpop.permute.xlu1 %2807  ;;  %v5447_v19 = vpack.c.bf16 %v2822_v49, %v2822_v49  ;;  %v3920_v49 = vmov 5  }
 0x3d3   : > { %v2823_v44 = vsel %vm2821_vm2, %v2806_v29, %v2808_v59 }
 0x3d4   : > { %v2810_v61 = vpop.permute.xlu0 %2809  ;;  %v5445_v16 = vpack.c.bf16 %v2823_v44, %v2823_v44  ;;  %v2880_v25 = vrot.slane %v5447_v19, 4 }
 0x3d5   : > { %v2824_v43 = vsel %vm2821_vm2, %v2808_v59, %v2810_v61 }
 0x3d6   : > { %v2850_v62 = vld [vmem:[#allocation3] sm:$0xff]  ;;  %v5468_v30 = vpack.c.bf16 %v2824_v43, %v2824_v43  ;;  %v2881_v1 = vrot.slane %v5445_v16, 4 }
 0x3d7   : > { %v5427_v54 = vpack.c.bf16 %v2850_v62, %v2850_v62 }
 0x3d8   : > { %v2882_v2 = vrot.slane %v5468_v30, 4 }
 0x3d9   : > { %3019 = vrot.lane.b32.xlu1 %v5427_v54, %s3908_s24  ;;  %3078 = vrot.lane.b32.xlu0 %v5427_v54, %s3881_s16  ;;  %v2879_v12 = vrot.slane %v5427_v54, 4 }
 0x3dd   : > { %2966 = vrot.lane.b32.xlu1 %v5427_v54, %s3909_s25  ;;  %3049 = vrot.lane.b32.xlu0 %v2879_v12, %s3910_s27 }
 0x3e1   : > { %2914 = vrot.lane.b32.xlu1 %v5427_v54, %s3882_s17  ;;  %2992 = vrot.lane.b32.xlu0 %v2879_v12, %s3889_s26 }
 0x3e2   : > { %v2812_v35 = vpop.permute.xlu1 %2811 }
 0x3e3   : > { %v2825_v53 = vsel %vm2821_vm2, %v2810_v61, %v2812_v35 }
 0x3e4   : > { %v2814_v17 = vpop.permute.xlu0 %2813  ;;  %v5482_v22 = vpack.c.bf16 %v2825_v53, %v2825_v53 }
 0x3e5   : > { %v2826_v15 = vsel %vm2821_vm2, %v2812_v35, %v2814_v17  ;;  %2888 = vrot.lane.b32.xlu1 %v2879_v12, %s3912_s29  ;;  %2940 = vrot.lane.b32.xlu0 %v2879_v12, %s3911_s28 }
 0x3e6   : > { %v2816_v41 = vpop.permute.xlu1 %2815  ;;  %v2883_v14 = vrot.slane %v5482_v22, 4  ;;  %v5511_v47 = vpack.c.bf16 %v2826_v15, %v2826_v15 }
 0x3e7   : > { %v2827_v6 = vsel %vm2821_vm2, %v2814_v17, %v2816_v41 }
 0x3e8   : > { %v2818_v32 = vpop.permute.xlu0 %2817  ;;  %v5498_v52 = vpack.c.bf16 %v2827_v6, %v2827_v6  ;;  %v2884_v45 = vrot.slane %v5511_v47, 4 }
 0x3e9   : > { %v2828_v40 = vsel %vm2821_vm2, %v2816_v41, %v2818_v32  ;;  %3082 = vrot.lane.b32.xlu0 %v5445_v16, %s3881_s16  ;;  %3080 = vrot.lane.b32.xlu1 %v5447_v19, %s3881_s16 }
 0x3ea   : > { %v5527_v50 = vpack.c.bf16 %v2828_v40, %v2828_v40  ;;  %v2885_v18 = vrot.slane %v5498_v52, 4 }
 0x3ec   : > { %v2886_v5 = vrot.slane %v5527_v50, 4 }
 0x3ed   : > { %3023 = vrot.lane.b32.xlu0 %v5445_v16, %s3908_s24  ;;  %3021 = vrot.lane.b32.xlu1 %v5447_v19, %s3908_s24 }
 0x3f1   : > { %2970 = vrot.lane.b32.xlu0 %v5445_v16, %s3909_s25  ;;  %2968 = vrot.lane.b32.xlu1 %v5447_v19, %s3909_s25 }
 0x3f5   : > { %2918 = vrot.lane.b32.xlu0 %v5445_v16, %s3882_s17  ;;  %2916 = vrot.lane.b32.xlu1 %v5447_v19, %s3882_s17 }
 0x3f6   : > { %v2820_v46 = vpop.permute.xlu1 %2819 }
 0x3f7   : > { %v2829_v42 = vsel %vm2821_vm2, %v2818_v32, %v2820_v46  ;;  %vm5897_vm2 = vmmov %vm5892_vm0 }
 0x3f8   : > { %2849 = vst.msk [vmem:[#allocation3 + $0x40] sm:$0xff] %vm2848_vm3, %v2829_v42  ;;  %vm5898_vm3 = vmmov %vm5896_vm1 }
 0x3f9   : > { %3051 = vrot.lane.b32.xlu1 %v2880_v25, %s3910_s27  ;;  %3084 = vrot.lane.b32.xlu0 %v5468_v30, %s3881_s16 }
 0x3fd   : > { %2994 = vrot.lane.b32.xlu1 %v2880_v25, %s3889_s26  ;;  %3025 = vrot.lane.b32.xlu0 %v5468_v30, %s3908_s24 }
 0x3ff   : > { %v2858_v11 = vld [vmem:[#allocation3 + $0x40] sm:$0xff] }
 0x400   : > { %v5546_v3 = vpack.c.bf16 %v2858_v11, %v2858_v11 }
 0x401   : > { %2942 = vrot.lane.b32.xlu1 %v2880_v25, %s3911_s28  ;;  %2972 = vrot.lane.b32.xlu0 %v5468_v30, %s3909_s25 }
 0x402   : > { %v2887_v4 = vrot.slane %v5546_v3, 4 }
 0x405   : > { %2890 = vrot.lane.b32.xlu1 %v2880_v25, %s3912_s29  ;;  %2920 = vrot.lane.b32.xlu0 %v5468_v30, %s3882_s17 }
 0x409   : > { %3086 = vrot.lane.b32.xlu1 %v5482_v22, %s3881_s16  ;;  %3053 = vrot.lane.b32.xlu0 %v2881_v1, %s3910_s27 }
 0x40d   : > { %3027 = vrot.lane.b32.xlu1 %v5482_v22, %s3908_s24  ;;  %2996 = vrot.lane.b32.xlu0 %v2881_v1, %s3889_s26 }
 0x411   : > { %2974 = vrot.lane.b32.xlu1 %v5482_v22, %s3909_s25  ;;  %2944 = vrot.lane.b32.xlu0 %v2881_v1, %s3911_s28 }
 0x415   : > { %2922 = vrot.lane.b32.xlu1 %v5482_v22, %s3882_s17  ;;  %2892 = vrot.lane.b32.xlu0 %v2881_v1, %s3912_s29 }
 0x419   : > { %3055 = vrot.lane.b32.xlu0 %v2882_v2, %s3910_s27  ;;  %3090 = vrot.lane.b32.xlu1 %v5498_v52, %s3881_s16 }
 0x41d   : > { %2998 = vrot.lane.b32.xlu0 %v2882_v2, %s3889_s26  ;;  %3057 = vrot.lane.b32.xlu1 %v2883_v14, %s3910_s27 }
 0x421   : > { %2946 = vrot.lane.b32.xlu0 %v2882_v2, %s3911_s28  ;;  %3031 = vrot.lane.b32.xlu1 %v5498_v52, %s3908_s24 }
 0x425   : > { %2894 = vrot.lane.b32.xlu0 %v2882_v2, %s3912_s29  ;;  %3000 = vrot.lane.b32.xlu1 %v2883_v14, %s3889_s26 }
 0x429   : > { %2978 = vrot.lane.b32.xlu1 %v5498_v52, %s3909_s25  ;;  %3088 = vrot.lane.b32.xlu0 %v5511_v47, %s3881_s16 }
 0x42d   : > { %2948 = vrot.lane.b32.xlu1 %v2883_v14, %s3911_s28  ;;  %3029 = vrot.lane.b32.xlu0 %v5511_v47, %s3908_s24 }
 0x431   : > { %2926 = vrot.lane.b32.xlu1 %v5498_v52, %s3882_s17  ;;  %2976 = vrot.lane.b32.xlu0 %v5511_v47, %s3909_s25 }
 0x435   : > { %2896 = vrot.lane.b32.xlu1 %v2883_v14, %s3912_s29  ;;  %2924 = vrot.lane.b32.xlu0 %v5511_v47, %s3882_s17 }
 0x439   : > { %3033 = vrot.lane.b32.xlu1 %v5527_v50, %s3908_s24  ;;  %3092 = vrot.lane.b32.xlu0 %v5527_v50, %s3881_s16 }
 0x43d   : > { %2980 = vrot.lane.b32.xlu1 %v5527_v50, %s3909_s25  ;;  %3059 = vrot.lane.b32.xlu0 %v2884_v45, %s3910_s27 }
 0x441   : > { %3061 = vrot.lane.b32.xlu1 %v2885_v18, %s3910_s27  ;;  %3002 = vrot.lane.b32.xlu0 %v2884_v45, %s3889_s26 }
 0x445   : > { %3004 = vrot.lane.b32.xlu1 %v2885_v18, %s3889_s26  ;;  %2950 = vrot.lane.b32.xlu0 %v2884_v45, %s3911_s28 }
 0x449   : > { %2952 = vrot.lane.b32.xlu1 %v2885_v18, %s3911_s28  ;;  %2898 = vrot.lane.b32.xlu0 %v2884_v45, %s3912_s29 }
 0x44b   : > { %v5544_v0 = vpop.permute.xlu1 %3019  ;;  %v3079_v48 = vpop.permute.xlu0 %3078 }
 0x44d   : > { %2900 = vrot.lane.b32.xlu1 %v2885_v18, %s3912_s29  ;;  %3035 = vrot.lane.b32.xlu0 %v5546_v3, %s3908_s24 }
 0x44f   : > { %v5551_v60 = vpop.permute.xlu1 %2966  ;;  %v3050_v55 = vpop.permute.xlu0 %3049 }
 0x451   : > { %2982 = vrot.lane.b32.xlu0 %v5546_v3, %s3909_s25  ;;  %3063 = vrot.lane.b32.xlu1 %v2886_v5, %s3910_s27 }
 0x453   : > { %v5557_v9 = vpop.permute.xlu1 %2914  ;;  %v2993_v34 = vpop.permute.xlu0 %2992 }
 0x455   : > { %2930 = vrot.lane.b32.xlu0 %v5546_v3, %s3882_s17  ;;  %3094 = vrot.lane.b32.xlu1 %v5546_v3, %s3881_s16 }
 0x457   : > { %v5563_v31 = vpop.permute.xlu1 %2888  ;;  %v5565_v10 = vpop.permute.xlu0 %2940 }
 0x459   : > { %3065 = vrot.lane.b32.xlu0 %v2887_v4, %s3910_s27  ;;  %3006 = vrot.lane.b32.xlu1 %v2886_v5, %s3889_s26 }
 0x45b   : > { %v3081_v24 = vpop.permute.xlu1 %3080  ;;  %v3083_v38 = vpop.permute.xlu0 %3082 }
 0x45c   : > { %v3098_v39 = vsel %vm2344_vm5, %v3079_v48, %v3081_v24  ;;  %v3099_v37 = vsel %vm2344_vm5, %v3081_v24, %v3083_v38 }
 0x45d   : > { %v3262_v51 = vsel %vm541_vm10, %v3098_v39, 0  ;;  %3008 = vrot.lane.b32.xlu0 %v2887_v4, %s3889_s26  ;;  %2928 = vrot.lane.b32.xlu1 %v5527_v50, %s3882_s17 }
 0x45e   : > { %3632 = vmatprep.subr.msk.bf16.mxu0 %vm541_vm10, %v3099_v37 }
 0x45f   : > { %3295 = vmatpush1.bf16.msra.mxu0 %v3262_v51  ;;  %v3022_v13 = vpop.permute.xlu1 %3021  ;;  %v5577_v7 = vpop.permute.xlu0 %3023 }
 0x460   : > { %v3040_v41 = vsel %vm2283_vm6, %v3022_v13, %v5577_v7  ;;  %v3039_v40 = vsel %vm2283_vm6, %v5544_v0, %v3022_v13 }
 0x461   : > { %2956 = vrot.lane.b32.xlu0 %v2887_v4, %s3911_s28  ;;  %2954 = vrot.lane.b32.xlu1 %v2886_v5, %s3911_s28 }
 0x463   : > { %v2969_v56 = vpop.permute.xlu1 %2968  ;;  %v5581_v20 = vpop.permute.xlu0 %2970 }
 0x464   : > { %v2985_v45 = vsel %vm2226_vm11, %v2969_v56, %v5581_v20  ;;  %v2984_v11 = vsel %vm2226_vm11, %v5551_v60, %v2969_v56 }
 0x465   : > { %2904 = vrot.lane.b32.xlu0 %v2887_v4, %s3912_s29  ;;  %2902 = vrot.lane.b32.xlu1 %v2886_v5, %s3912_s29 }
 0x467   : > { %v2917_v21 = vpop.permute.xlu1 %2916  ;;  %v5588_v58 = vpop.permute.xlu0 %2918 }
 0x468   : > { %v2933_v4 = vsel %vm5890_vm9, %v2917_v21, %v5588_v58  ;;  %v2932_v60 = vsel %vm5892_vm0, %v5557_v9, %v2917_v21  ;;  %vm5900_vm9 = vmmov %vm5893_vm13 }
 0x469   : > { %3255 = vperm.xlu1 %3857, %v3252_v23   ;;  %3502 = vperm.xlu0 %3858, %v3252_v23  }
 0x46b   : > { %v3052_v36 = vpop.permute.xlu1 %3051  ;;  %v3085_v29 = vpop.permute.xlu0 %3084 }
 0x46c   : > { %v3100_v35 = vsel %vm2344_vm5, %v3083_v38, %v3085_v29  ;;  %v3069_v53 = vsel %vm2314_vm7, %v3050_v55, %v3052_v36 }
 0x46d   : > { %3859 = vset.pattern.permute.xlu1 %v3920_v49  ;;  %3860 = vset.pattern.permute.xlu0 %v3920_v49  ;;  %v3268_v46 = vsel %vm541_vm10, %v3100_v35, 0  ;;  %v3217_v25 = vsel %vm541_vm10, %v3039_v40, %v3069_v53 }
 0x46e   : > { %3515 = vperm.xlu1 %3859, %v3252_v23  }
 0x46f   : > { %v2995_v59 = vpop.permute.xlu1 %2994  ;;  %v3026_v44 = vpop.permute.xlu0 %3025 }
 0x470   : > { %v3010_v1 = vsel %vm2253_vm8, %v2993_v34, %v2995_v59 }
 0x471   : > { %v3181_v48 = vsel %vm541_vm10, %v2984_v11, %v3010_v1 }
 0x473   : > { %v2943_v61 = vpop.permute.xlu1 %2942  ;;  %v5590_v43 = vpop.permute.xlu0 %2972 }
 0x474   : > { %v2958_v55 = vsel %vm5889_vm15, %v5565_v10, %v2943_v61  ;;  %vm5899_vm15 = vmmov %vm5892_vm0 }
 0x475   : > { %v3145_v39 = vsel %vm541_vm10, %v2932_v60, %v2958_v55  ;;  %vm5902_vm0 = vmmov %vm5895_vm4 }
 0x477   : > { %v2891_v62 = vpop.permute.xlu1 %2890  ;;  %v5592_v12 = vpop.permute.xlu0 %2920 }
 0x478   : > { %v2906_v10 = vsel %vm5893_vm13, %v5563_v31, %v2891_v62  ;;  %v5644_v31 = vld [vmem:[%s5823_s4] sm:$0xf]  ;;  %vm5903_vm13 = vmmov %vm5896_vm1 }
 0x479   : > { %v3109_v9 = vsel %vm541_vm10, %v5427_v54, %v2906_v10 }
 0x47b   : > { %v5596_v17 = vpop.permute.xlu1 %3086  ;;  %v3054_v15 = vpop.permute.xlu0 %3053 }
 0x47c   : > { %v3101_v6 = vsel %vm2344_vm5, %v3085_v29, %v5596_v17  ;;  %v3070_v32 = vsel %vm2314_vm7, %v3052_v36, %v3054_v15  ;;  %v3041_v29 = vsel %vm2283_vm6, %v5577_v7, %v3026_v44  ;;  %v2986_v7 = vsel %vm2226_vm11, %v5581_v20, %v5590_v43 }
 0x47d   : > { %3634 = vmatprep.subr.msk.bf16.mxu1 %vm541_vm10, %v3101_v6  ;;  %v3221_v42 = vsel %vm541_vm10, %v3040_v41, %v3070_v32 }
 0x47e   : > { %3296 = vmatprep.subr.bf16.mxu0 %v3221_v42  ;;  %3336 = vmatpush1.bf16.msra.mxu1 %v3268_v46 }
 0x47f   : > { %v5610_v2 = vpop.permute.xlu1 %3027  ;;  %3297 = vmatpush1.bf16.msra.mxu0 %v3217_v25  ;;  %v2997_v14 = vpop.permute.xlu0 %2996 }
 0x480   : > { %v3011_v18 = vsel %vm2253_vm8, %v2995_v59, %v2997_v14  ;;  %v3042_v54 = vsel %vm2283_vm6, %v3026_v44, %v5610_v2 }
 0x481   : > { %v3185_v0 = vsel %vm541_vm10, %v2985_v45, %v3011_v18 }
 0x482   : > { %3298 = vmatprep.subr.bf16.mxu0 %v3185_v0 }
 0x483   : > { %v5621_v5 = vpop.permute.xlu1 %2974  ;;  %3299 = vmatpush1.bf16.msra.mxu0 %v3181_v48  ;;  %v2945_v34 = vpop.permute.xlu0 %2944 }
 0x484   : > { %v2959_v24 = vsel %vm5891_vm12, %v2943_v61, %v2945_v34  ;;  %v2987_v41 = vsel %vm2226_vm11, %v5590_v43, %v5621_v5  ;;  %vm5901_vm12 = vmmov %vm5900_vm9 }
 0x485   : > { %v3149_v38 = vsel %vm541_vm10, %v2933_v4, %v2959_v24 }
 0x486   : > { %3300 = vmatprep.subr.bf16.mxu0 %v3149_v38 }
 0x487   : > { %v5632_v37 = vpop.permute.xlu1 %2922  ;;  %3301 = vmatpush1.bf16.msra.mxu0 %v3145_v39  ;;  %v2893_v51 = vpop.permute.xlu0 %2892 }
 0x488   : > { %v2907_v13 = vsel %vm5894_vm14, %v2891_v62, %v2893_v51  ;;  %v2935_v45 = vsel %vm5897_vm2, %v5592_v12, %v5632_v37  ;;  %vm5904_vm14 = vmmov %vm5897_vm2 }
 0x489   : > { %v3113_v28 = vsel %vm541_vm10, %v5447_v19, %v2907_v13 }
 0x48a   : > { %3302 = vmatprep.subr.bf16.mxu0 %v3113_v28 }
 0x48b   : > { %v5639_v63 = vpop.permute.xlu1 %3090  ;;  %3303 = vmatpush1.bf16.msra.mxu0 %v3109_v9  ;;  %v3056_v56 = vpop.permute.xlu0 %3055 }
 0x48c   : > { %v3071_v23 = vsel %vm2314_vm7, %v3054_v15, %v3056_v56 }
 0x48d   : > { %v3225_v59 = vsel %vm541_vm10, %v3041_v29, %v3071_v23 }
 0x48e   : > { %3633 = vmatmul.mubr.msk.bf16.vlgmr.msra.gmra.mxu0 %vm5895_vm4, %v5644_v31  ;;  %vm5905_vm4 = vmmov %vm5896_vm1 }
 0x48f   : > { %v3058_v21 = vpop.permute.xlu1 %3057  ;;  %v2999_v19 = vpop.permute.xlu0 %2998  ;;  %3402 = vmatprep.mubr.bf16.mxu0 %v5868_v27 }
 0x490   : > { %v3072_v36 = vsel %vm2314_vm7, %v3056_v56, %v3058_v21  ;;  %v3012_v35 = vsel %vm2253_vm8, %v2997_v14, %v2999_v19 }
 0x491   : > { %v3229_v49 = vsel %vm541_vm10, %v3042_v54, %v3072_v36  ;;  %v3189_v32 = vsel %vm541_vm10, %v2986_v7, %v3012_v35 }
 0x492   : > { %3337 = vmatprep.subr.bf16.mxu1 %v3229_v49 }
 0x493   : > { %v5657_v61 = vpop.permute.xlu1 %3031  ;;  %3338 = vmatpush1.bf16.msra.mxu1 %v3225_v59  ;;  %v2947_v62 = vpop.permute.xlu0 %2946 }
 0x494   : > { %v2960_v20 = vsel %vm5896_vm1, %v2945_v34, %v2947_v62  ;;  %vm5906_vm1 = vmmov %vm5897_vm2 }
 0x495   : > { %vm5907_vm2 = vmmov %vm5900_vm9 }
 0x497   : > { %v3001_v53 = vpop.permute.xlu1 %3000  ;;  %v2895_v15 = vpop.permute.xlu0 %2894 }
 0x498   : > { %v3013_v6 = vsel %vm2253_vm8, %v2999_v19, %v3001_v53  ;;  %v2908_v34 = vsel %vm5900_vm9, %v2893_v51, %v2895_v15  ;;  %vm5910_vm9 = vmmov 0  }
 0x499   : > { %v3193_v44 = vsel %vm541_vm10, %v2987_v41, %v3013_v6 }
 0x49a   : > { %3339 = vmatprep.subr.bf16.mxu1 %v3193_v44 }
 0x49b   : > { %v5669_v40 = vpop.permute.xlu1 %2978  ;;  %3340 = vmatpush1.bf16.msra.mxu1 %v3189_v32  ;;  %v3089_v46 = vpop.permute.xlu0 %3088 }
 0x49c   : > { %v3102_v42 = vsel %vm2344_vm5, %v5596_v17, %v3089_v46  ;;  %v3103_v25 = vsel %vm2344_vm5, %v3089_v46, %v5639_v63  ;;  %v2934_v17 = vsel %vm5899_vm15, %v5588_v58, %v5592_v12  ;;  %v3117_v58 = vsel %vm541_vm10, %v5445_v16, %v2908_v34  ;;  %vm5909_vm15 = vmmov %vm5902_vm0 }
 0x49d   : > { %v3274_v1 = vsel %vm541_vm10, %v3102_v42, 0  ;;  %3636 = vmatprep.subr.msk.bf16.mxu0 %vm541_vm10, %v3103_v25  ;;  %v3153_v0 = vsel %vm541_vm10, %v2934_v17, %v2960_v20 }
 0x49e   : > { %3377 = vmatpush1.bf16.msra.mxu0 %v3274_v1 }
 0x49f   : > { %v2949_v43 = vpop.permute.xlu1 %2948  ;;  %v3030_v14 = vpop.permute.xlu0 %3029 }
 0x4a0   : > { %v2961_v18 = vsel %vm5898_vm3, %v2947_v62, %v2949_v43  ;;  %v3044_v9 = vsel %vm2283_vm6, %v3030_v14, %v5657_v61  ;;  %v3043_v56 = vsel %vm2283_vm6, %v5610_v2, %v3030_v14  ;;  %vm5908_vm3 = vmmov %vm5907_vm2 }
 0x4a1   : > { %v3157_v11 = vsel %vm541_vm10, %v2935_v45, %v2961_v18 }
 0x4a2   : > { %3341 = vmatprep.subr.bf16.mxu1 %v3157_v11 }
 0x4a3   : > { %v5687_v48 = vpop.permute.xlu1 %2926  ;;  %3342 = vmatpush1.bf16.msra.mxu1 %v3153_v0  ;;  %v2977_v55 = vpop.permute.xlu0 %2976 }
 0x4a4   : > { %v2989_v36 = vsel %vm2226_vm11, %v2977_v55, %v5669_v40  ;;  %v2988_v49 = vsel %vm2226_vm11, %v5621_v5, %v2977_v55 }
 0x4a7   : > { %v2897_v4 = vpop.permute.xlu1 %2896  ;;  %v2925_v24 = vpop.permute.xlu0 %2924 }
 0x4a8   : > { %v2909_v60 = vsel %vm5901_vm12, %v2895_v15, %v2897_v4  ;;  %v2937_v15 = vsel %vm5904_vm14, %v2925_v24, %v5687_v48  ;;  %v2936_v5 = vsel %vm5906_vm1, %v5632_v37, %v2925_v24  ;;  %vm5916_vm12 = vmmov %vm5907_vm2 }
 0x4a9   : > { %v3121_v38 = vsel %vm541_vm10, %v5468_v30, %v2909_v60 }
 0x4aa   : > { %3343 = vmatprep.subr.bf16.mxu1 %v3121_v38 }
 0x4ab   : > { %v5695_v12 = vpop.permute.xlu1 %3033  ;;  %3344 = vmatpush1.bf16.msra.mxu1 %v3117_v58  ;;  %v3093_v39 = vpop.permute.xlu0 %3092 }
 0x4ac   : > { %v3045_v24 = vsel %vm2283_vm6, %v5657_v61, %v5695_v12 }
 0x4ae   : > { %3635 = vmatmul.mubr.msk.bf16.vlgmr.msra.gmra.mxu1 %vm5902_vm0, %v5644_v31 }
 0x4af   : > { %v5699_v10 = vpop.permute.xlu1 %2980  ;;  %v3060_v51 = vpop.permute.xlu0 %3059  ;;  %3443 = vmatprep.mubr.bf16.mxu1 %v5868_v27 }
 0x4b0   : > { %v3073_v13 = vsel %vm2314_vm7, %v3058_v21, %v3060_v51 }
 0x4b1   : > { %v3233_v19 = vsel %vm541_vm10, %v3043_v56, %v3073_v13  ;;  %v2990_v13 = vsel %vm2226_vm11, %v5669_v40, %v5699_v10 }
 0x4b3   : > { %v3062_v28 = vpop.permute.xlu1 %3061  ;;  %v3003_v30 = vpop.permute.xlu0 %3002 }
 0x4b4   : > { %v3074_v16 = vsel %vm2314_vm7, %v3060_v51, %v3062_v28  ;;  %v3014_v54 = vsel %vm2253_vm8, %v3001_v53, %v3003_v30 }
 0x4b5   : > { %v3237_v23 = vsel %vm541_vm10, %v3044_v9, %v3074_v16  ;;  %v3197_v59 = vsel %vm541_vm10, %v2988_v49, %v3014_v54 }
 0x4b6   : > { %3378 = vmatprep.subr.bf16.mxu0 %v3237_v23 }
 0x4b7   : > { %v3005_v27 = vpop.permute.xlu1 %3004  ;;  %3379 = vmatpush1.bf16.msra.mxu0 %v3233_v19  ;;  %v2951_v21 = vpop.permute.xlu0 %2950 }
 0x4b8   : > { %v3015_v29 = vsel %vm2253_vm8, %v3003_v30, %v3005_v27  ;;  %v2962_v62 = vsel %vm5903_vm13, %v2949_v43, %v2951_v21  ;;  %v3104_v43 = vsel %vm2344_vm5, %v5639_v63, %v3093_v39  ;;  %vm5917_vm13 = vmmov %vm5902_vm0 }
 0x4b9   : > { %v3201_v2 = vsel %vm541_vm10, %v2989_v36, %v3015_v29  ;;  %v3161_v7 = vsel %vm541_vm10, %v2936_v5, %v2962_v62  ;;  %v3280_v18 = vsel %vm541_vm10, %v3104_v43, 0 }
 0x4ba   : > { %3380 = vmatprep.subr.bf16.mxu0 %v3201_v2 }
 0x4bb   : > { %v5719_v35 = vpop.permute.xlu1 %2952  ;;  %3381 = vmatpush1.bf16.msra.mxu0 %v3197_v59  ;;  %v2899_v53 = vpop.permute.xlu0 %2898 }
 0x4bc   : > { %v2963_v41 = vsel %vm5905_vm4, %v2951_v21, %v5719_v35  ;;  %v2910_v44 = vsel %vm5907_vm2, %v2897_v4, %v2899_v53 }
 0x4bd   : > { %v3165_v6 = vsel %vm541_vm10, %v2937_v15, %v2963_v41  ;;  %v3125_v37 = vsel %vm541_vm10, %v5482_v22, %v2910_v44 }
 0x4be   : > { %3382 = vmatprep.subr.bf16.mxu0 %v3165_v6 }
 0x4bf   : > { %v5730_v32 = vpop.permute.xlu1 %2900  ;;  %3383 = vmatpush1.bf16.msra.mxu0 %v3161_v7  ;;  %v3036_v46 = vpop.permute.xlu0 %3035 }
 0x4c0   : > { %v2911_v42 = vsel %vm5908_vm3, %v2899_v53, %v5730_v32  ;;  %v3046_v55 = vsel %vm2283_vm6, %v5695_v12, %v3036_v46 }
 0x4c1   : > { %v3129_v25 = vsel %vm541_vm10, %v5511_v47, %v2911_v42 }
 0x4c2   : > { %3384 = vmatprep.subr.bf16.mxu0 %v3129_v25 }
 0x4c3   : > { %v3064_v1 = vpop.permute.xlu1 %3063  ;;  %3385 = vmatpush1.bf16.msra.mxu0 %v3125_v37  ;;  %v2983_v20 = vpop.permute.xlu0 %2982 }
 0x4c4   : > { %3686 = vmatprep.subr.bf16.mxu0 %v5869_v33  ;;  %v3075_v63 = vsel %vm2314_vm7, %v3062_v28, %v3064_v1 }
 0x4c5   : > { %v3241_v58 = vsel %vm541_vm10, %v3045_v24, %v3075_v63 }
 0x4c6   : > { %3637 = vmatmul.mubr.msk.bf16.vlgmr.msra.gmra.mxu0 %vm5909_vm15, %v5644_v31 }
 0x4c7   : > { %v3095_v14 = vpop.permute.xlu1 %3094  ;;  %v2931_v45 = vpop.permute.xlu0 %2930  ;;  %3696 = vmatprep.mubr.msk.bf16.mxu0 %vm5910_vm9, %v5869_v33 }
 0x4c8   : > { %v3105_v47 = vsel %vm2344_vm5, %v3093_v39, %v3095_v14  ;;  %v3106_v22 = vsel %vm2344_vm5, %v3095_v14, %v5418_v26  ;;  %v3047_v26 = vsel %vm2283_vm6, %v3036_v46, %v5420_v8  ;;  %vm5911_vm5 = vmmov %vm5906_vm1 }
 0x4c9   : > { %v3286_v17 = vsel %vm541_vm10, %v3106_v22, 0  ;;  %3638 = vmatprep.subr.msk.bf16.mxu1 %vm541_vm10, %v3105_v47  ;;  %vm5912_vm6 = vmmov %vm5906_vm1 }
 0x4ca   : > { %3418 = vmatpush1.bf16.msra.mxu1 %v3280_v18  ;;  %3687 = vmatpush3.bf16.msra.mxu0 %v3286_v17 }
 0x4cb   : > { %v3007_v11 = vpop.permute.xlu1 %3006  ;;  %v3066_v0 = vpop.permute.xlu0 %3065  ;;  %3688 = vmatprep.subr.bf16.mxu0 %v5869_v33 }
 0x4cc   : > { %v3076_v34 = vsel %vm2314_vm7, %v3064_v1, %v3066_v0  ;;  %v3077_v4 = vsel %vm2314_vm7, %v3066_v0, %v5422_v57  ;;  %v3016_v39 = vsel %vm2253_vm8, %v3005_v27, %v3007_v11  ;;  %v2991_v57 = vsel %vm2226_vm11, %v5699_v10, %v2983_v20  ;;  %vm5913_vm7 = vmmov %vm5905_vm4 }
 0x4cd   : > { %v3245_v60 = vsel %vm541_vm10, %v3046_v55, %v3076_v34  ;;  %v3249_v38 = vsel %vm541_vm10, %v3047_v26, %v3077_v4  ;;  %v3205_v30 = vsel %vm541_vm10, %v2990_v13, %v3016_v39  ;;  %vm5914_vm11 = vmmov %vm5905_vm4 }
 0x4ce   : > { %3419 = vmatprep.subr.bf16.mxu1 %v3245_v60  ;;  %3689 = vmatpush3.bf16.msra.mxu0 %v3249_v38 }
 0x4cf   : > { %v2929_v8 = vpop.permute.xlu1 %2928  ;;  %3420 = vmatpush1.bf16.msra.mxu1 %v3241_v58  ;;  %v3009_v51 = vpop.permute.xlu0 %3008  ;;  %3690 = vmatprep.subr.bf16.mxu0 %v5869_v33 }
 0x4d0   : > { %v3017_v61 = vsel %vm2253_vm8, %v3007_v11, %v3009_v51  ;;  %v3213_v12 = vsel %vm541_vm10, %v2983_v20, %v3009_v51  ;;  %v2938_v9 = vsel %vm5911_vm5, %v5687_v48, %v2929_v8  ;;  %v2939_v23 = vsel %vm5912_vm6, %v2929_v8, %v2931_v45  ;;  %vm5915_vm8 = vmmov %vm5907_vm2 }
 0x4d1   : > { %v3209_v28 = vsel %vm541_vm10, %v2991_v57, %v3017_v61 }
 0x4d2   : > { %3421 = vmatprep.subr.bf16.mxu1 %v3209_v28  ;;  %3691 = vmatpush3.bf16.msra.mxu0 %v3213_v12 }
 0x4d3   : > { %v2955_v16 = vpop.permute.xlu1 %2954  ;;  %3422 = vmatpush1.bf16.msra.mxu1 %v3205_v30  ;;  %v2957_v56 = vpop.permute.xlu0 %2956  ;;  %3692 = vmatprep.subr.bf16.mxu0 %v5869_v33 }
 0x4d4   : > { %v2964_v19 = vsel %vm5913_vm7, %v5719_v35, %v2955_v16  ;;  %v2965_v40 = vsel %vm5914_vm11, %v2955_v16, %v2957_v56  ;;  %v3177_v10 = vsel %vm541_vm10, %v2931_v45, %v2957_v56 }
 0x4d5   : > { %v3173_v54 = vsel %vm541_vm10, %v2939_v23, %v2965_v40  ;;  %v3169_v27 = vsel %vm541_vm10, %v2938_v9, %v2964_v19 }
 0x4d6   : > { %3423 = vmatprep.subr.bf16.mxu1 %v3173_v54  ;;  %3693 = vmatpush3.bf16.msra.mxu0 %v3177_v10 }
 0x4d7   : > { %v2903_v48 = vpop.permute.xlu1 %2902  ;;  %3424 = vmatpush1.bf16.msra.mxu1 %v3169_v27  ;;  %v2905_v21 = vpop.permute.xlu0 %2904  ;;  %3694 = vmatprep.subr.bf16.mxu0 %v5869_v33 }
 0x4d8   : > { %v2912_v36 = vsel %vm5915_vm8, %v5730_v32, %v2903_v48  ;;  %v2913_v29 = vsel %vm5916_vm12, %v2903_v48, %v2905_v21  ;;  %v3141_v49 = vsel %vm541_vm10, %v5546_v3, %v2905_v21 }
 0x4d9   : > { %v3137_v2 = vsel %vm541_vm10, %v5527_v50, %v2913_v29  ;;  %v3133_v59 = vsel %vm541_vm10, %v5498_v52, %v2912_v36  ;;  %vm3535_vm10 = vcmask 523264  }
 0x4da   : > { %3425 = vmatprep.subr.bf16.mxu1 %v3137_v2  ;;  %3695 = vmatpush3.bf16.msra.mxu0 %v3141_v49 }
 0x4db   : > { %3426 = vmatpush1.bf16.msra.mxu1 %v3133_v59 }
 0x4dd   : > { %3697 = vmatmul.mubr.msk.bf16.vlgmr.msra.gmra.mxu0 %vm5902_vm0, %v5644_v31 }
 0x4de   : > { %3639 = vmatmul.mubr.msk.bf16.vlgmr.msra.gmra.mxu1 %vm5917_vm13, %v5644_v31 }
 0x4e4   : > { %v3256_v33 = vpop.permute.xlu1 %3255  ;;  %v3503_v53 = vpop.permute.xlu0 %3502 }
 0x4e9   : > { %v3516_v5 = vpop.permute.xlu1 %3515 }
 0x54e   : > { %v3322_v62 = vpop.f32.mrf.mxu0 }
 0x54f   : > { %v3323_v35 = vadd.f32 %v3322_v62, %v3256_v33 }
 0x550   : > { %v3324_v3 = vpop.f32.mrf.mxu0 }
 0x551   : > { %v3325_v15 = vadd.f32 %v3324_v3, %v3256_v33  ;;  %v3492_v50 = vmax.f32 %v3323_v35, 0.0 }
 0x552   : > { %v3326_v41 = vpop.f32.mrf.mxu0 }
 0x553   : > { %v3493_v52 = vmax.f32 %v3325_v15, 0.0  ;;  %v3505_v6 = vmul.f32 %v3503_v53, %v3492_v50 }
 0x554   : > { %v3327_v31 = vpop.f32.mrf.mxu0 }
 0x555   : > { %v3506_v7 = vmul.f32 %v3503_v53, %v3493_v52  ;;  %v3518_v44 = vadd.f32 %v3516_v5, %v3505_v6 }
 0x557   : > { %v3519_v32 = vadd.f32 %v3516_v5, %v3506_v7  ;;  %3527 = vst [vmem:[%s5805_s15] sm:$0xff] %v3518_v44 }
 0x559   : > { %3528 = vst [vmem:[%s5805_s15 + $0x8] sm:$0xff] %v3519_v32 }
 0x56e   : > { %v3363_v46 = vpop.f32.mrf.mxu1 }
 0x56f   : > { %v3364_v42 = vadd.f32 %v3363_v46, %v3256_v33 }
 0x570   : > { %v3365_v25 = vpop.f32.mrf.mxu1 }
 0x571   : > { %v3494_v37 = vmax.f32 %v3364_v42, 0.0  ;;  %v3366_v1 = vadd.f32 %v3365_v25, %v3256_v33 }
 0x572   : > { %v3367_v20 = vpop.f32.mrf.mxu1 }
 0x573   : > { %v3507_v43 = vmul.f32 %v3503_v53, %v3494_v37  ;;  %v3495_v14 = vmax.f32 %v3366_v1, 0.0 }
 0x574   : > { %v3368_v45 = vpop.f32.mrf.mxu1 }
 0x575   : > { %v3520_v47 = vadd.f32 %v3516_v5, %v3507_v43  ;;  %v3508_v22 = vmul.f32 %v3503_v53, %v3495_v14 }
 0x577   : > { %3529 = vst [vmem:[%s5805_s15 + $0x10] sm:$0xff] %v3520_v47  ;;  %v3521_v18 = vadd.f32 %v3516_v5, %v3508_v22 }
 0x579   : > { %3530 = vst [vmem:[%s5805_s15 + $0x18] sm:$0xff] %v3521_v18 }
 0x586   : > { %v3404_v17 = vpop.f32.mrf.mxu0 }
 0x587   : > { %v3405_v63 = vadd.f32 %v3404_v17, %v3256_v33 }
 0x588   : > { %v3406_v11 = vpop.f32.mrf.mxu0 }
 0x589   : > { %v3496_v0 = vmax.f32 %v3405_v63, 0.0  ;;  %v3407_v55 = vadd.f32 %v3406_v11, %v3256_v33 }
 0x58a   : > { %v3408_v26 = vpop.f32.mrf.mxu0 }
 0x58b   : > { %v3509_v34 = vmul.f32 %v3503_v53, %v3496_v0  ;;  %v3497_v4 = vmax.f32 %v3407_v55, 0.0 }
 0x58c   : > { %v3409_v24 = vpop.f32.mrf.mxu0 }
 0x58d   : > { %v3522_v60 = vadd.f32 %v3516_v5, %v3509_v34  ;;  %v3510_v38 = vmul.f32 %v3503_v53, %v3497_v4 }
 0x58f   : > { %3531 = vst [vmem:[%s5805_s15 + $0x20] sm:$0xff] %v3522_v60  ;;  %v3523_v58 = vadd.f32 %v3516_v5, %v3510_v38 }
 0x591   : > { %3532 = vst [vmem:[%s5805_s15 + $0x28] sm:$0xff] %v3523_v58 }
 0x59d   : > { %v3486_v39 = vpop.f32.mrf.mxu0 }
 0x59e   : > { %v3487_v8 = vadd.f32 %v3486_v39, %v3256_v33  ;;  %v3445_v51 = vpop.f32.mrf.mxu1 }
 0x59f   : > { %v3446_v57 = vadd.f32 %v3445_v51, %v3256_v33  ;;  %v3698_v61 = vpop.f32.mrf.mxu0 }
 0x5a0   : > { %v3500_v12 = vmax.f32 %v3487_v8, 0.0  ;;  %v3447_v13 = vpop.f32.mrf.mxu1 }
 0x5a1   : > { %v3498_v28 = vmax.f32 %v3446_v57, 0.0  ;;  %v3448_v30 = vadd.f32 %v3447_v13, %v3256_v33  ;;  %v3489_v9 = vpop.f32.mrf.mxu0 }
 0x5a2   : > { %v3513_v16 = vmul.f32 %v3503_v53, %v3500_v12  ;;  %v3449_v56 = vpop.f32.mrf.mxu1 }
 0x5a3   : > { %v3511_v23 = vmul.f32 %v3503_v53, %v3498_v28  ;;  %v3499_v19 = vmax.f32 %v3448_v30, 0.0  ;;  %v3699_v40 = vpop.f32.mrf.mxu0 }
 0x5a4   : > { %v3526_v10 = vadd.f32 %v3516_v5, %v3513_v16  ;;  %v3450_v54 = vpop.f32.mrf.mxu1 }
 0x5a5   : > { %v3524_v27 = vadd.f32 %v3516_v5, %v3511_v23  ;;  %v3512_v48 = vmul.f32 %v3503_v53, %v3499_v19 }
 0x5a6   : > { %3536 = vst.msk [vmem:[%s5805_s15 + $0x40] sm:$0xff] %vm3535_vm10, %v3526_v10 }
 0x5a7   : > { %3533 = vst [vmem:[%s5805_s15 + $0x30] sm:$0xff] %v3524_v27  ;;  %v3525_v21 = vadd.f32 %v3516_v5, %v3512_v48 }
 0x5a9   : > { %3534 = vst [vmem:[%s5805_s15 + $0x38] sm:$0xff] %v3525_v21 }
 0x5aa PF: > { %s16_s21 = sadd.s32 1, %s3872_s21  }
 0x5ab   : > { %p13_p4 = scmp.ge.s32.totalorder %s16_s21, 4  }
 0x5ad   :  { %15 = sbr.rel (!%p13_p4) target bundleno = 1 (0x1), region = 77 }

</bundles_post_ra>
